<compile_context>
chip_gen: v7x
topology: tpu7x:2x2x1
jax: 0.10.0
libtpu: 0.0.40
codegen_flags: <defaults>
</compile_context>

<pallas_src>
import jax
import jax.numpy as jnp
from jax.experimental import pallas as pl
from jax.experimental.pallas import tpu as pltpu

EPS = 1e-5
NEG_INF = -1e30  # f32 sentinel for the masked max (not valid for bf16)


# ----------------------------------------------------------------------------
# Fused kernel: all EdgeConv layers + jk-cat linear + add-pool + classifier.
# The message MLP first linear is decomposed:
#   cat([x_i, x_j - x_i]) @ W1 = x_i @ (W1a - W1b) + x_j @ W1b
# ----------------------------------------------------------------------------
def _edgecnn_fused_kernel(x_ref, adj_ref, seg_ref,
                          w1d_ref, w1s_ref, w2_ref, vec_ref,
                          wlin_ref, blin_ref, wc1_ref, bc1_ref,
                          wc2_ref, bc2_ref, out_ref):
    n = x_ref.shape[0]
    h = w2_ref.shape[-1]
    num_layers = w2_ref.shape[0]

    adj = adj_ref[...]                                     # [Ntgt, Nsrc]
    edge_mask = adj[:, :, None] > 0.0                      # [Ntgt, Nsrc, 1]
    has_edge = jnp.max(adj, axis=1, keepdims=True) > 0.0   # [Ntgt, 1]

    x = x_ref[...]                                         # [N, Cmax]
    feats = []
    for l in range(num_layers):                            # static unroll (L=3)
        w1d = w1d_ref[l]                                   # [Cmax, H]
        w1s = w1s_ref[l]                                   # [Cmax, H]
        w2 = w2_ref[l]                                     # [H, H]
        v = vec_ref[l]                                     # [4, H] packed vectors
        b1, b2 = v[0:1, :], v[1:2, :]
        bno_s, bno_t = v[2:3, :], v[3:4, :]

        # per-node halves of the first (BN-folded) linear — computed once
        a = jnp.dot(x, w1d, preferred_element_type=jnp.float32) + b1   # [N, H]
        b = jnp.dot(x, w1s, preferred_element_type=jnp.float32)        # [N, H]

        # vectorized per-edge hidden: (target, source) pairs
        hid = a[:, None, :] + b[None, :, :]                # [Ntgt, Nsrc, H]
        hid = jnp.maximum(hid, 0.0)                        # inner BN folded + ReLU
        msg = jnp.dot(hid.reshape(n * n, h), w2,
                      preferred_element_type=jnp.float32).reshape(n, n, h) + b2
        masked = jnp.where(edge_mask, msg, NEG_INF)
        agg = jnp.max(masked, axis=1)                      # max aggregation [N, H]
        agg = jnp.where(has_edge, agg, 0.0)                # isolated node -> 0
        # NOTE: padded target rows yield relu(bno_t) here; they are zeroed out
        # by the pooling matrix and never act as sources (adj columns are 0).
        x = jnp.maximum(agg * bno_s + bno_t, 0.0)          # outer BN (eval) + ReLU
        feats.append(x)                                    # dropout = identity

    xcat = jnp.concatenate(feats, axis=1)                  # JumpingKnowledge 'cat'
    hjk = jnp.dot(xcat, wlin_ref[...],
                  preferred_element_type=jnp.float32) + blin_ref[...]
    pooled = jnp.dot(seg_ref[...], hjk,
                     preferred_element_type=jnp.float32)   # global_add_pool [G, H]
    z = jnp.dot(pooled, wc1_ref[...],
                preferred_element_type=jnp.float32) + bc1_ref[...]
    z = jnp.maximum(z, 0.0)                                # classifier BN folded + ReLU
    out_ref[...] = jnp.dot(z, wc2_ref[...],
                           preferred_element_type=jnp.float32) + bc2_ref[...]


def _full_spec(shape):
    nd = len(shape)
    return pl.BlockSpec(shape, lambda i: (0,) * nd)


def edgecnn_fused(x_pad, adj, seg, kp):
    g = seg.shape[0]
    c = kp["wc2"].shape[1]
    args = (x_pad, adj, seg,
            kp["w1d"], kp["w1s"], kp["w2"], kp["vecs"],
            kp["wlin"], kp["blin"], kp["wc1"], kp["bc1"], kp["wc2"], kp["bc2"])
    return pl.pallas_call(
        _edgecnn_fused_kernel,
        out_shape=jax.ShapeDtypeStruct((g, c), jnp.float32),
        grid=(1,),
        in_specs=[_full_spec(a.shape) for a in args],
        out_specs=_full_spec((g, c)),
        compiler_params=pltpu.CompilerParams(
            dimension_semantics=("arbitrary",)),
    )(*args)


# ----------------------------------------------------------------------------
# Deterministic parameter initialization (shapes follow the PyTorch module).
# ----------------------------------------------------------------------------
def init_params(key, in_feat=7, h_feat=8, num_classes=2, num_layers=3):
    keys = iter(jax.random.split(key, 64))

    def nrm(shape, scale=0.2):
        return (scale * jax.random.normal(next(keys), shape)).astype(jnp.float32)

    def bn(dim):
        gamma = jax.random.uniform(next(keys), (dim,), minval=0.8, maxval=1.2)
        beta = nrm((dim,), 0.05)
        rm = nrm((dim,), 0.05)
        rv = jax.random.uniform(next(keys), (dim,), minval=0.5, maxval=1.5)
        scale = (gamma / jnp.sqrt(rv + EPS)).astype(jnp.float32)
        shift = (beta - rm * scale).astype(jnp.float32)
        return scale.reshape(1, dim), shift.reshape(1, dim)

    layers = []
    cin = in_feat
    for _ in range(num_layers):
        w1 = nrm((2 * cin, h_feat))
        b1 = nrm((h_feat,), 0.05)
        bn1_scale, bn1_shift = bn(h_feat)
        w2 = nrm((h_feat, h_feat))
        b2 = nrm((h_feat,), 0.05)
        bno_scale, bno_shift = bn(h_feat)
        layers.append(dict(
            w1d=w1[:cin] - w1[cin:], w1s=w1[cin:],
            b1=b1.reshape(1, h_feat), w2=w2, b2=b2.reshape(1, h_feat),
            bn1_scale=bn1_scale, bn1_shift=bn1_shift,
            bno_scale=bno_scale, bno_shift=bno_shift))
        cin = h_feat

    wlin = nrm((num_layers * h_feat, h_feat))
    blin = nrm((h_feat,), 0.05).reshape(1, h_feat)
    wc1 = nrm((h_feat, 2 * h_feat))
    bc1 = nrm((2 * h_feat,), 0.05).reshape(1, 2 * h_feat)
    bnc_scale, bnc_shift = bn(2 * h_feat)
    wc2 = nrm((2 * h_feat, num_classes))
    bc2 = nrm((num_classes,), 0.05).reshape(1, num_classes)
    return dict(layers=layers, wlin=wlin, blin=blin, wc1=wc1, bc1=bc1,
                bnc_scale=bnc_scale, bnc_shift=bnc_shift, wc2=wc2, bc2=bc2)


# ----------------------------------------------------------------------------
# Host-side eval-mode folding + packing into kernel-ready stacked arrays.
# ----------------------------------------------------------------------------
def fold_and_pack(params, in_feat=7, h_feat=8):
    cmax = h_feat
    assert in_feat <= h_feat, "layer-0 weight padding assumes in_feat <= h_feat"
    w1d_l, w1s_l, w2_l, vec_l = [], [], [], []
    for lp in params["layers"]:
        s1, t1 = lp["bn1_scale"], lp["bn1_shift"]        # [1, H]
        w1d = lp["w1d"] * s1                             # fold inner BN into lin1
        w1s = lp["w1s"] * s1
        b1 = lp["b1"] * s1 + t1
        pad = cmax - w1d.shape[0]                        # zero-pad Cin -> Cmax
        w1d_l.append(jnp.pad(w1d, ((0, pad), (0, 0))))
        w1s_l.append(jnp.pad(w1s, ((0, pad), (0, 0))))
        w2_l.append(lp["w2"])
        vec_l.append(jnp.concatenate(
            [b1, lp["b2"], lp["bno_scale"], lp["bno_shift"]], axis=0))  # [4, H]
    wc1 = params["wc1"] * params["bnc_scale"]            # fold classifier BN
    bc1 = params["bc1"] * params["bnc_scale"] + params["bnc_shift"]
    return dict(w1d=jnp.stack(w1d_l), w1s=jnp.stack(w1s_l),
                w2=jnp.stack(w2_l), vecs=jnp.stack(vec_l),
                wlin=params["wlin"], blin=params["blin"],
                wc1=wc1, bc1=bc1, wc2=params["wc2"], bc2=params["bc2"])


# ----------------------------------------------------------------------------
# Full forward pass (glue: adjacency build, padding, pooling matrix).
# ----------------------------------------------------------------------------
def edgecnn_forward(x, edge_index, batch, num_graphs, params,
                    in_feat=7, h_feat=8):
    n = x.shape[0]
    n_pad = ((n + 7) // 8) * 8
    cmax = h_feat
    x_pad = jnp.pad(x.astype(jnp.float32),
                    ((0, n_pad - n), (0, cmax - in_feat)))

    src, tgt = edge_index[0], edge_index[1]              # messages flow src -> tgt
    adj = jnp.zeros((n_pad, n_pad), jnp.float32).at[tgt, src].set(1.0)

    seg = (batch[None, :] == jnp.arange(num_graphs)[:, None]).astype(jnp.float32)
    seg = jnp.pad(seg, ((0, 0), (0, n_pad - n)))         # [G, N_pad] add-pool matrix

    kp = fold_and_pack(params, in_feat, h_feat)
    return edgecnn_fused(x_pad, adj, seg, kp)


if __name__ == "__main__":
    key = jax.random.PRNGKey(0)
    k_x, k_p = jax.random.split(key)

    in_feat, h_feat, num_classes = 7, 8, 2
    nodes_per_graph, num_graphs = 12, 2
    n = nodes_per_graph * num_graphs

    x = jax.random.normal(k_x, (n, in_feat), jnp.float32)

    # bidirectional ring graph within each of the two graphs
    edges = []
    for g in range(num_graphs):
        off = g * nodes_per_graph
        for i in range(nodes_per_graph):
            j = (i + 1) % nodes_per_graph
            edges.append((off + i, off + j))
            edges.append((off + j, off + i))
    edge_index = jnp.asarray(edges, jnp.int32).T         # [2, E] (row0=src, row1=tgt)
    batch = jnp.repeat(jnp.arange(num_graphs, dtype=jnp.int32), nodes_per_graph)

    params = init_params(k_p, in_feat, h_feat, num_classes, num_layers=3)
    out = edgecnn_forward(x, edge_index, batch, num_graphs, params,
                          in_feat, h_feat)
    out = jax.block_until_ready(out)
    assert out.shape == (num_graphs, num_classes), out.shape
    print("KERNEL_OK")
</pallas_src>

<mosaic_0001>
module attributes {stable_mosaic.version = 11 : i64} {
  func.func @_edgecnn_fused_kernel(%arg0: i32, %arg1: memref<24x8xf32, #tpu.memory_space<vmem>>, %arg2: memref<24x24xf32, #tpu.memory_space<vmem>>, %arg3: memref<2x24xf32, #tpu.memory_space<vmem>>, %arg4: memref<3x8x8xf32, #tpu.memory_space<vmem>>, %arg5: memref<3x8x8xf32, #tpu.memory_space<vmem>>, %arg6: memref<3x8x8xf32, #tpu.memory_space<vmem>>, %arg7: memref<3x4x8xf32, #tpu.memory_space<vmem>>, %arg8: memref<24x8xf32, #tpu.memory_space<vmem>>, %arg9: memref<1x8xf32, #tpu.memory_space<vmem>>, %arg10: memref<8x16xf32, #tpu.memory_space<vmem>>, %arg11: memref<1x16xf32, #tpu.memory_space<vmem>>, %arg12: memref<16x2xf32, #tpu.memory_space<vmem>>, %arg13: memref<1x2xf32, #tpu.memory_space<vmem>>, %arg14: memref<2x2xf32, #tpu.memory_space<vmem>>) attributes {dimension_semantics = [#tpu.dimension_semantics<arbitrary>], iteration_bounds = array<i64: 1>, scalar_prefetch = 0 : i64, scratch_operands = 0 : i64, tpu.core_type = #tpu.core_type<tc>, window_params = [{pipeline_mode = #tpu.pipeline_mode<synchronous>, transform_indices = @transform_0, window_bounds = array<i64: 24, 8>}, {pipeline_mode = #tpu.pipeline_mode<synchronous>, transform_indices = @transform_1, window_bounds = array<i64: 24, 24>}, {pipeline_mode = #tpu.pipeline_mode<synchronous>, transform_indices = @transform_2, window_bounds = array<i64: 2, 24>}, {pipeline_mode = #tpu.pipeline_mode<synchronous>, transform_indices = @transform_3, window_bounds = array<i64: 3, 8, 8>}, {pipeline_mode = #tpu.pipeline_mode<synchronous>, transform_indices = @transform_4, window_bounds = array<i64: 3, 8, 8>}, {pipeline_mode = #tpu.pipeline_mode<synchronous>, transform_indices = @transform_5, window_bounds = array<i64: 3, 8, 8>}, {pipeline_mode = #tpu.pipeline_mode<synchronous>, transform_indices = @transform_6, window_bounds = array<i64: 3, 4, 8>}, {pipeline_mode = #tpu.pipeline_mode<synchronous>, transform_indices = @transform_7, window_bounds = array<i64: 24, 8>}, {pipeline_mode = #tpu.pipeline_mode<synchronous>, transform_indices = @transform_8, window_bounds = array<i64: 1, 8>}, {pipeline_mode = #tpu.pipeline_mode<synchronous>, transform_indices = @transform_9, window_bounds = array<i64: 8, 16>}, {pipeline_mode = #tpu.pipeline_mode<synchronous>, transform_indices = @transform_10, window_bounds = array<i64: 1, 16>}, {pipeline_mode = #tpu.pipeline_mode<synchronous>, transform_indices = @transform_11, window_bounds = array<i64: 16, 2>}, {pipeline_mode = #tpu.pipeline_mode<synchronous>, transform_indices = @transform_12, window_bounds = array<i64: 1, 2>}, {pipeline_mode = #tpu.pipeline_mode<synchronous>, transform_indices = @transform_13, window_bounds = array<i64: 2, 2>}]} {
    %c0 = arith.constant 0 : index
    %c0_0 = arith.constant 0 : index
    %0 = vector.load %arg2[%c0, %c0_0] : memref<24x24xf32, #tpu.memory_space<vmem>>, vector<24x24xf32>
    %1 = vector.shape_cast %0 : vector<24x24xf32> to vector<24x24x1xf32>
    %cst = arith.constant 0.000000e+00 : f32
    %2 = vector.broadcast %cst : f32 to vector<24x24x1xf32>
    %3 = arith.cmpf ogt, %1, %2 : vector<24x24x1xf32>
    %cst_1 = arith.constant dense<0xFF800000> : vector<24xf32>
    %4 = vector.multi_reduction <maximumf>, %0, %cst_1 [1] : vector<24x24xf32> to vector<24xf32>
    %5 = vector.shape_cast %4 : vector<24xf32> to vector<24x1xf32>
    %cst_2 = arith.constant 0.000000e+00 : f32
    %6 = vector.broadcast %cst_2 : f32 to vector<24x1xf32>
    %7 = arith.cmpf ogt, %5, %6 : vector<24x1xf32>
    %c0_3 = arith.constant 0 : index
    %c0_4 = arith.constant 0 : index
    %8 = vector.load %arg1[%c0_3, %c0_4] : memref<24x8xf32, #tpu.memory_space<vmem>>, vector<24x8xf32>
    %c0_5 = arith.constant 0 : index
    %c0_6 = arith.constant 0 : index
    %c0_7 = arith.constant 0 : index
    %9 = vector.load %arg4[%c0_5, %c0_6, %c0_7] : memref<3x8x8xf32, #tpu.memory_space<vmem>>, vector<1x8x8xf32>
    %10 = vector.shape_cast %9 : vector<1x8x8xf32> to vector<8x8xf32>
    %c0_8 = arith.constant 0 : index
    %c0_9 = arith.constant 0 : index
    %c0_10 = arith.constant 0 : index
    %11 = vector.load %arg5[%c0_8, %c0_9, %c0_10] : memref<3x8x8xf32, #tpu.memory_space<vmem>>, vector<1x8x8xf32>
    %12 = vector.shape_cast %11 : vector<1x8x8xf32> to vector<8x8xf32>
    %c0_11 = arith.constant 0 : index
    %c0_12 = arith.constant 0 : index
    %c0_13 = arith.constant 0 : index
    %13 = vector.load %arg6[%c0_11, %c0_12, %c0_13] : memref<3x8x8xf32, #tpu.memory_space<vmem>>, vector<1x8x8xf32>
    %14 = vector.shape_cast %13 : vector<1x8x8xf32> to vector<8x8xf32>
    %c0_14 = arith.constant 0 : index
    %c0_15 = arith.constant 0 : index
    %c0_16 = arith.constant 0 : index
    %15 = vector.load %arg7[%c0_14, %c0_15, %c0_16] : memref<3x4x8xf32, #tpu.memory_space<vmem>>, vector<1x4x8xf32>
    %16 = vector.shape_cast %15 : vector<1x4x8xf32> to vector<4x8xf32>
    %17 = vector.extract_strided_slice %16 {offsets = [0, 0], sizes = [1, 8], strides = [1, 1]} : vector<4x8xf32> to vector<1x8xf32>
    %18 = vector.extract_strided_slice %16 {offsets = [1, 0], sizes = [1, 8], strides = [1, 1]} : vector<4x8xf32> to vector<1x8xf32>
    %19 = vector.extract_strided_slice %16 {offsets = [2, 0], sizes = [1, 8], strides = [1, 1]} : vector<4x8xf32> to vector<1x8xf32>
    %20 = vector.extract_strided_slice %16 {offsets = [3, 0], sizes = [1, 8], strides = [1, 1]} : vector<4x8xf32> to vector<1x8xf32>
    %cst_17 = arith.constant dense<0.000000e+00> : vector<24x8xf32>
    %21 = tpu.matmul %8, %10, %cst_17 {dimension_numbers = #tpu.dot_dimension_numbers<[1], [0], [0], [1], [0, 0, 1, 1], [], []>} : vector<24x8xf32>, vector<8x8xf32>, vector<24x8xf32> -> vector<24x8xf32>
    %22 = vector.broadcast %17 : vector<1x8xf32> to vector<24x8xf32>
    %23 = arith.addf %21, %22 : vector<24x8xf32>
    %cst_18 = arith.constant dense<0.000000e+00> : vector<24x8xf32>
    %24 = tpu.matmul %8, %12, %cst_18 {dimension_numbers = #tpu.dot_dimension_numbers<[1], [0], [0], [1], [0, 0, 1, 1], [], []>} : vector<24x8xf32>, vector<8x8xf32>, vector<24x8xf32> -> vector<24x8xf32>
    %25 = vector.shape_cast %23 : vector<24x8xf32> to vector<24x1x8xf32>
    %26 = vector.shape_cast %24 : vector<24x8xf32> to vector<1x24x8xf32>
    %27 = vector.broadcast %25 : vector<24x1x8xf32> to vector<24x24x8xf32>
    %28 = vector.broadcast %26 : vector<1x24x8xf32> to vector<24x24x8xf32>
    %29 = arith.addf %27, %28 : vector<24x24x8xf32>
    %cst_19 = arith.constant 0.000000e+00 : f32
    %30 = vector.broadcast %cst_19 : f32 to vector<24x24x8xf32>
    %31 = arith.maximumf %29, %30 : vector<24x24x8xf32>
    %32 = vector.shape_cast %31 : vector<24x24x8xf32> to vector<576x8xf32>
    %cst_20 = arith.constant dense<0.000000e+00> : vector<576x8xf32>
    %33 = tpu.matmul %32, %14, %cst_20 {dimension_numbers = #tpu.dot_dimension_numbers<[1], [0], [0], [1], [0, 0, 1, 1], [], []>} : vector<576x8xf32>, vector<8x8xf32>, vector<576x8xf32> -> vector<576x8xf32>
    %34 = vector.shape_cast %33 : vector<576x8xf32> to vector<24x24x8xf32>
    %35 = vector.shape_cast %18 : vector<1x8xf32> to vector<1x1x8xf32>
    %36 = vector.broadcast %35 : vector<1x1x8xf32> to vector<24x24x8xf32>
    %37 = arith.addf %34, %36 : vector<24x24x8xf32>
    %cst_21 = arith.constant -1.000000e+30 : f32
    %38 = vector.shape_cast %3 : vector<24x24x1xi1> to vector<24x24x1xi1>
    %39 = vector.broadcast %38 : vector<24x24x1xi1> to vector<24x24x8xi1>
    %40 = vector.broadcast %cst_21 : f32 to vector<24x24x8xf32>
    %41 = arith.select %39, %37, %40 : vector<24x24x8xi1>, vector<24x24x8xf32>
    %cst_22 = arith.constant dense<0xFF800000> : vector<24x8xf32>
    %42 = vector.multi_reduction <maximumf>, %41, %cst_22 [1] : vector<24x24x8xf32> to vector<24x8xf32>
    %cst_23 = arith.constant 0.000000e+00 : f32
    %43 = vector.shape_cast %7 : vector<24x1xi1> to vector<24x1xi1>
    %44 = vector.broadcast %43 : vector<24x1xi1> to vector<24x8xi1>
    %45 = vector.broadcast %cst_23 : f32 to vector<24x8xf32>
    %46 = arith.select %44, %42, %45 : vector<24x8xi1>, vector<24x8xf32>
    %47 = vector.broadcast %19 : vector<1x8xf32> to vector<24x8xf32>
    %48 = arith.mulf %46, %47 : vector<24x8xf32>
    %49 = vector.broadcast %20 : vector<1x8xf32> to vector<24x8xf32>
    %50 = arith.addf %48, %49 : vector<24x8xf32>
    %cst_24 = arith.constant 0.000000e+00 : f32
    %51 = vector.broadcast %cst_24 : f32 to vector<24x8xf32>
    %52 = arith.maximumf %50, %51 : vector<24x8xf32>
    %c1 = arith.constant 1 : index
    %c0_25 = arith.constant 0 : index
    %c0_26 = arith.constant 0 : index
    %53 = vector.load %arg4[%c1, %c0_25, %c0_26] : memref<3x8x8xf32, #tpu.memory_space<vmem>>, vector<1x8x8xf32>
    %54 = vector.shape_cast %53 : vector<1x8x8xf32> to vector<8x8xf32>
    %c1_27 = arith.constant 1 : index
    %c0_28 = arith.constant 0 : index
    %c0_29 = arith.constant 0 : index
    %55 = vector.load %arg5[%c1_27, %c0_28, %c0_29] : memref<3x8x8xf32, #tpu.memory_space<vmem>>, vector<1x8x8xf32>
    %56 = vector.shape_cast %55 : vector<1x8x8xf32> to vector<8x8xf32>
    %c1_30 = arith.constant 1 : index
    %c0_31 = arith.constant 0 : index
    %c0_32 = arith.constant 0 : index
    %57 = vector.load %arg6[%c1_30, %c0_31, %c0_32] : memref<3x8x8xf32, #tpu.memory_space<vmem>>, vector<1x8x8xf32>
    %58 = vector.shape_cast %57 : vector<1x8x8xf32> to vector<8x8xf32>
    %c1_33 = arith.constant 1 : index
    %c0_34 = arith.constant 0 : index
    %c0_35 = arith.constant 0 : index
    %59 = vector.load %arg7[%c1_33, %c0_34, %c0_35] : memref<3x4x8xf32, #tpu.memory_space<vmem>>, vector<1x4x8xf32>
    %60 = vector.shape_cast %59 : vector<1x4x8xf32> to vector<4x8xf32>
    %61 = vector.extract_strided_slice %60 {offsets = [0, 0], sizes = [1, 8], strides = [1, 1]} : vector<4x8xf32> to vector<1x8xf32>
    %62 = vector.extract_strided_slice %60 {offsets = [1, 0], sizes = [1, 8], strides = [1, 1]} : vector<4x8xf32> to vector<1x8xf32>
    %63 = vector.extract_strided_slice %60 {offsets = [2, 0], sizes = [1, 8], strides = [1, 1]} : vector<4x8xf32> to vector<1x8xf32>
    %64 = vector.extract_strided_slice %60 {offsets = [3, 0], sizes = [1, 8], strides = [1, 1]} : vector<4x8xf32> to vector<1x8xf32>
    %cst_36 = arith.constant dense<0.000000e+00> : vector<24x8xf32>
    %65 = tpu.matmul %52, %54, %cst_36 {dimension_numbers = #tpu.dot_dimension_numbers<[1], [0], [0], [1], [0, 0, 1, 1], [], []>} : vector<24x8xf32>, vector<8x8xf32>, vector<24x8xf32> -> vector<24x8xf32>
    %66 = vector.broadcast %61 : vector<1x8xf32> to vector<24x8xf32>
    %67 = arith.addf %65, %66 : vector<24x8xf32>
    %cst_37 = arith.constant dense<0.000000e+00> : vector<24x8xf32>
    %68 = tpu.matmul %52, %56, %cst_37 {dimension_numbers = #tpu.dot_dimension_numbers<[1], [0], [0], [1], [0, 0, 1, 1], [], []>} : vector<24x8xf32>, vector<8x8xf32>, vector<24x8xf32> -> vector<24x8xf32>
    %69 = vector.shape_cast %67 : vector<24x8xf32> to vector<24x1x8xf32>
    %70 = vector.shape_cast %68 : vector<24x8xf32> to vector<1x24x8xf32>
    %71 = vector.broadcast %69 : vector<24x1x8xf32> to vector<24x24x8xf32>
    %72 = vector.broadcast %70 : vector<1x24x8xf32> to vector<24x24x8xf32>
    %73 = arith.addf %71, %72 : vector<24x24x8xf32>
    %cst_38 = arith.constant 0.000000e+00 : f32
    %74 = vector.broadcast %cst_38 : f32 to vector<24x24x8xf32>
    %75 = arith.maximumf %73, %74 : vector<24x24x8xf32>
    %76 = vector.shape_cast %75 : vector<24x24x8xf32> to vector<576x8xf32>
    %cst_39 = arith.constant dense<0.000000e+00> : vector<576x8xf32>
    %77 = tpu.matmul %76, %58, %cst_39 {dimension_numbers = #tpu.dot_dimension_numbers<[1], [0], [0], [1], [0, 0, 1, 1], [], []>} : vector<576x8xf32>, vector<8x8xf32>, vector<576x8xf32> -> vector<576x8xf32>
    %78 = vector.shape_cast %77 : vector<576x8xf32> to vector<24x24x8xf32>
    %79 = vector.shape_cast %62 : vector<1x8xf32> to vector<1x1x8xf32>
    %80 = vector.broadcast %79 : vector<1x1x8xf32> to vector<24x24x8xf32>
    %81 = arith.addf %78, %80 : vector<24x24x8xf32>
    %cst_40 = arith.constant -1.000000e+30 : f32
    %82 = vector.shape_cast %3 : vector<24x24x1xi1> to vector<24x24x1xi1>
    %83 = vector.broadcast %82 : vector<24x24x1xi1> to vector<24x24x8xi1>
    %84 = vector.broadcast %cst_40 : f32 to vector<24x24x8xf32>
    %85 = arith.select %83, %81, %84 : vector<24x24x8xi1>, vector<24x24x8xf32>
    %cst_41 = arith.constant dense<0xFF800000> : vector<24x8xf32>
    %86 = vector.multi_reduction <maximumf>, %85, %cst_41 [1] : vector<24x24x8xf32> to vector<24x8xf32>
    %cst_42 = arith.constant 0.000000e+00 : f32
    %87 = vector.shape_cast %7 : vector<24x1xi1> to vector<24x1xi1>
    %88 = vector.broadcast %87 : vector<24x1xi1> to vector<24x8xi1>
    %89 = vector.broadcast %cst_42 : f32 to vector<24x8xf32>
    %90 = arith.select %88, %86, %89 : vector<24x8xi1>, vector<24x8xf32>
    %91 = vector.broadcast %63 : vector<1x8xf32> to vector<24x8xf32>
    %92 = arith.mulf %90, %91 : vector<24x8xf32>
    %93 = vector.broadcast %64 : vector<1x8xf32> to vector<24x8xf32>
    %94 = arith.addf %92, %93 : vector<24x8xf32>
    %cst_43 = arith.constant 0.000000e+00 : f32
    %95 = vector.broadcast %cst_43 : f32 to vector<24x8xf32>
    %96 = arith.maximumf %94, %95 : vector<24x8xf32>
    %c2 = arith.constant 2 : index
    %c0_44 = arith.constant 0 : index
    %c0_45 = arith.constant 0 : index
    %97 = vector.load %arg4[%c2, %c0_44, %c0_45] : memref<3x8x8xf32, #tpu.memory_space<vmem>>, vector<1x8x8xf32>
    %98 = vector.shape_cast %97 : vector<1x8x8xf32> to vector<8x8xf32>
    %c2_46 = arith.constant 2 : index
    %c0_47 = arith.constant 0 : index
    %c0_48 = arith.constant 0 : index
    %99 = vector.load %arg5[%c2_46, %c0_47, %c0_48] : memref<3x8x8xf32, #tpu.memory_space<vmem>>, vector<1x8x8xf32>
    %100 = vector.shape_cast %99 : vector<1x8x8xf32> to vector<8x8xf32>
    %c2_49 = arith.constant 2 : index
    %c0_50 = arith.constant 0 : index
    %c0_51 = arith.constant 0 : index
    %101 = vector.load %arg6[%c2_49, %c0_50, %c0_51] : memref<3x8x8xf32, #tpu.memory_space<vmem>>, vector<1x8x8xf32>
    %102 = vector.shape_cast %101 : vector<1x8x8xf32> to vector<8x8xf32>
    %c2_52 = arith.constant 2 : index
    %c0_53 = arith.constant 0 : index
    %c0_54 = arith.constant 0 : index
    %103 = vector.load %arg7[%c2_52, %c0_53, %c0_54] : memref<3x4x8xf32, #tpu.memory_space<vmem>>, vector<1x4x8xf32>
    %104 = vector.shape_cast %103 : vector<1x4x8xf32> to vector<4x8xf32>
    %105 = vector.extract_strided_slice %104 {offsets = [0, 0], sizes = [1, 8], strides = [1, 1]} : vector<4x8xf32> to vector<1x8xf32>
    %106 = vector.extract_strided_slice %104 {offsets = [1, 0], sizes = [1, 8], strides = [1, 1]} : vector<4x8xf32> to vector<1x8xf32>
    %107 = vector.extract_strided_slice %104 {offsets = [2, 0], sizes = [1, 8], strides = [1, 1]} : vector<4x8xf32> to vector<1x8xf32>
    %108 = vector.extract_strided_slice %104 {offsets = [3, 0], sizes = [1, 8], strides = [1, 1]} : vector<4x8xf32> to vector<1x8xf32>
    %cst_55 = arith.constant dense<0.000000e+00> : vector<24x8xf32>
    %109 = tpu.matmul %96, %98, %cst_55 {dimension_numbers = #tpu.dot_dimension_numbers<[1], [0], [0], [1], [0, 0, 1, 1], [], []>} : vector<24x8xf32>, vector<8x8xf32>, vector<24x8xf32> -> vector<24x8xf32>
    %110 = vector.broadcast %105 : vector<1x8xf32> to vector<24x8xf32>
    %111 = arith.addf %109, %110 : vector<24x8xf32>
    %cst_56 = arith.constant dense<0.000000e+00> : vector<24x8xf32>
    %112 = tpu.matmul %96, %100, %cst_56 {dimension_numbers = #tpu.dot_dimension_numbers<[1], [0], [0], [1], [0, 0, 1, 1], [], []>} : vector<24x8xf32>, vector<8x8xf32>, vector<24x8xf32> -> vector<24x8xf32>
    %113 = vector.shape_cast %111 : vector<24x8xf32> to vector<24x1x8xf32>
    %114 = vector.shape_cast %112 : vector<24x8xf32> to vector<1x24x8xf32>
    %115 = vector.broadcast %113 : vector<24x1x8xf32> to vector<24x24x8xf32>
    %116 = vector.broadcast %114 : vector<1x24x8xf32> to vector<24x24x8xf32>
    %117 = arith.addf %115, %116 : vector<24x24x8xf32>
    %cst_57 = arith.constant 0.000000e+00 : f32
    %118 = vector.broadcast %cst_57 : f32 to vector<24x24x8xf32>
    %119 = arith.maximumf %117, %118 : vector<24x24x8xf32>
    %120 = vector.shape_cast %119 : vector<24x24x8xf32> to vector<576x8xf32>
    %cst_58 = arith.constant dense<0.000000e+00> : vector<576x8xf32>
    %121 = tpu.matmul %120, %102, %cst_58 {dimension_numbers = #tpu.dot_dimension_numbers<[1], [0], [0], [1], [0, 0, 1, 1], [], []>} : vector<576x8xf32>, vector<8x8xf32>, vector<576x8xf32> -> vector<576x8xf32>
    %122 = vector.shape_cast %121 : vector<576x8xf32> to vector<24x24x8xf32>
    %123 = vector.shape_cast %106 : vector<1x8xf32> to vector<1x1x8xf32>
    %124 = vector.broadcast %123 : vector<1x1x8xf32> to vector<24x24x8xf32>
    %125 = arith.addf %122, %124 : vector<24x24x8xf32>
    %cst_59 = arith.constant -1.000000e+30 : f32
    %126 = vector.shape_cast %3 : vector<24x24x1xi1> to vector<24x24x1xi1>
    %127 = vector.broadcast %126 : vector<24x24x1xi1> to vector<24x24x8xi1>
    %128 = vector.broadcast %cst_59 : f32 to vector<24x24x8xf32>
    %129 = arith.select %127, %125, %128 : vector<24x24x8xi1>, vector<24x24x8xf32>
    %cst_60 = arith.constant dense<0xFF800000> : vector<24x8xf32>
    %130 = vector.multi_reduction <maximumf>, %129, %cst_60 [1] : vector<24x24x8xf32> to vector<24x8xf32>
    %cst_61 = arith.constant 0.000000e+00 : f32
    %131 = vector.shape_cast %7 : vector<24x1xi1> to vector<24x1xi1>
    %132 = vector.broadcast %131 : vector<24x1xi1> to vector<24x8xi1>
    %133 = vector.broadcast %cst_61 : f32 to vector<24x8xf32>
    %134 = arith.select %132, %130, %133 : vector<24x8xi1>, vector<24x8xf32>
    %135 = vector.broadcast %107 : vector<1x8xf32> to vector<24x8xf32>
    %136 = arith.mulf %134, %135 : vector<24x8xf32>
    %137 = vector.broadcast %108 : vector<1x8xf32> to vector<24x8xf32>
    %138 = arith.addf %136, %137 : vector<24x8xf32>
    %cst_62 = arith.constant 0.000000e+00 : f32
    %139 = vector.broadcast %cst_62 : f32 to vector<24x8xf32>
    %140 = arith.maximumf %138, %139 : vector<24x8xf32>
    %141 = tpu.concatenate %52, %96, %140 in 1 : vector<24x8xf32>, vector<24x8xf32>, vector<24x8xf32> -> vector<24x24xf32>
    %c0_63 = arith.constant 0 : index
    %c0_64 = arith.constant 0 : index
    %142 = vector.load %arg8[%c0_63, %c0_64] : memref<24x8xf32, #tpu.memory_space<vmem>>, vector<24x8xf32>
    %cst_65 = arith.constant dense<0.000000e+00> : vector<24x8xf32>
    %143 = tpu.matmul %141, %142, %cst_65 {dimension_numbers = #tpu.dot_dimension_numbers<[1], [0], [0], [1], [0, 0, 1, 1], [], []>} : vector<24x24xf32>, vector<24x8xf32>, vector<24x8xf32> -> vector<24x8xf32>
    %c0_66 = arith.constant 0 : index
    %c0_67 = arith.constant 0 : index
    %144 = vector.load %arg9[%c0_66, %c0_67] : memref<1x8xf32, #tpu.memory_space<vmem>>, vector<1x8xf32>
    %145 = vector.broadcast %144 : vector<1x8xf32> to vector<24x8xf32>
    %146 = arith.addf %143, %145 : vector<24x8xf32>
    %c0_68 = arith.constant 0 : index
    %c0_69 = arith.constant 0 : index
    %147 = vector.load %arg3[%c0_68, %c0_69] : memref<2x24xf32, #tpu.memory_space<vmem>>, vector<2x24xf32>
    %cst_70 = arith.constant dense<0.000000e+00> : vector<2x8xf32>
    %148 = tpu.matmul %147, %146, %cst_70 {dimension_numbers = #tpu.dot_dimension_numbers<[1], [0], [0], [1], [0, 0, 1, 1], [], []>} : vector<2x24xf32>, vector<24x8xf32>, vector<2x8xf32> -> vector<2x8xf32>
    %c0_71 = arith.constant 0 : index
    %c0_72 = arith.constant 0 : index
    %149 = vector.load %arg10[%c0_71, %c0_72] : memref<8x16xf32, #tpu.memory_space<vmem>>, vector<8x16xf32>
    %cst_73 = arith.constant dense<0.000000e+00> : vector<2x16xf32>
    %150 = tpu.matmul %148, %149, %cst_73 {dimension_numbers = #tpu.dot_dimension_numbers<[1], [0], [0], [1], [0, 0, 1, 1], [], []>} : vector<2x8xf32>, vector<8x16xf32>, vector<2x16xf32> -> vector<2x16xf32>
    %c0_74 = arith.constant 0 : index
    %c0_75 = arith.constant 0 : index
    %151 = vector.load %arg11[%c0_74, %c0_75] : memref<1x16xf32, #tpu.memory_space<vmem>>, vector<1x16xf32>
    %152 = vector.broadcast %151 : vector<1x16xf32> to vector<2x16xf32>
    %153 = arith.addf %150, %152 : vector<2x16xf32>
    %cst_76 = arith.constant 0.000000e+00 : f32
    %154 = vector.broadcast %cst_76 : f32 to vector<2x16xf32>
    %155 = arith.maximumf %153, %154 : vector<2x16xf32>
    %c0_77 = arith.constant 0 : index
    %c0_78 = arith.constant 0 : index
    %156 = vector.load %arg12[%c0_77, %c0_78] : memref<16x2xf32, #tpu.memory_space<vmem>>, vector<16x2xf32>
    %cst_79 = arith.constant dense<0.000000e+00> : vector<2x2xf32>
    %157 = tpu.matmul %155, %156, %cst_79 {dimension_numbers = #tpu.dot_dimension_numbers<[1], [0], [0], [1], [0, 0, 1, 1], [], []>} : vector<2x16xf32>, vector<16x2xf32>, vector<2x2xf32> -> vector<2x2xf32>
    %c0_80 = arith.constant 0 : index
    %c0_81 = arith.constant 0 : index
    %158 = vector.load %arg13[%c0_80, %c0_81] : memref<1x2xf32, #tpu.memory_space<vmem>>, vector<1x2xf32>
    %159 = vector.broadcast %158 : vector<1x2xf32> to vector<2x2xf32>
    %160 = arith.addf %157, %159 : vector<2x2xf32>
    %c0_82 = arith.constant 0 : index
    %c0_83 = arith.constant 0 : index
    %161 = vector.load %arg14[%c0_82, %c0_83] : memref<2x2xf32, #tpu.memory_space<vmem>>, vector<2x2xf32>
    tpu.vector_store %arg14[%c0_82, %c0_83], %160 {strides = array<i32>} : memref<2x2xf32, #tpu.memory_space<vmem>>, vector<2x2xf32>,
    return
  }
  func.func @transform_0(%arg0: i32) -> (i32, i32) {
    %c0_i32 = arith.constant 0 : i32
    %c0_i32_0 = arith.constant 0 : i32
    %c0_i32_1 = arith.constant 0 : i32
    return %c0_i32, %c0_i32_0 : i32, i32
  }
  func.func @transform_1(%arg0: i32) -> (i32, i32) {
    %c0_i32 = arith.constant 0 : i32
    %c0_i32_0 = arith.constant 0 : i32
    %c0_i32_1 = arith.constant 0 : i32
    return %c0_i32, %c0_i32_0 : i32, i32
  }
  func.func @transform_2(%arg0: i32) -> (i32, i32) {
    %c0_i32 = arith.constant 0 : i32
    %c0_i32_0 = arith.constant 0 : i32
    %c0_i32_1 = arith.constant 0 : i32
    return %c0_i32, %c0_i32_0 : i32, i32
  }
  func.func @transform_3(%arg0: i32) -> (i32, i32, i32) {
    %c0_i32 = arith.constant 0 : i32
    %c0_i32_0 = arith.constant 0 : i32
    %c0_i32_1 = arith.constant 0 : i32
    %c0_i32_2 = arith.constant 0 : i32
    return %c0_i32, %c0_i32_0, %c0_i32_1 : i32, i32, i32
  }
  func.func @transform_4(%arg0: i32) -> (i32, i32, i32) {
    %c0_i32 = arith.constant 0 : i32
    %c0_i32_0 = arith.constant 0 : i32
    %c0_i32_1 = arith.constant 0 : i32
    %c0_i32_2 = arith.constant 0 : i32
    return %c0_i32, %c0_i32_0, %c0_i32_1 : i32, i32, i32
  }
  func.func @transform_5(%arg0: i32) -> (i32, i32, i32) {
    %c0_i32 = arith.constant 0 : i32
    %c0_i32_0 = arith.constant 0 : i32
    %c0_i32_1 = arith.constant 0 : i32
    %c0_i32_2 = arith.constant 0 : i32
    return %c0_i32, %c0_i32_0, %c0_i32_1 : i32, i32, i32
  }
  func.func @transform_6(%arg0: i32) -> (i32, i32, i32) {
    %c0_i32 = arith.constant 0 : i32
    %c0_i32_0 = arith.constant 0 : i32
    %c0_i32_1 = arith.constant 0 : i32
    %c0_i32_2 = arith.constant 0 : i32
    return %c0_i32, %c0_i32_0, %c0_i32_1 : i32, i32, i32
  }
  func.func @transform_7(%arg0: i32) -> (i32, i32) {
    %c0_i32 = arith.constant 0 : i32
    %c0_i32_0 = arith.constant 0 : i32
    %c0_i32_1 = arith.constant 0 : i32
    return %c0_i32, %c0_i32_0 : i32, i32
  }
  func.func @transform_8(%arg0: i32) -> (i32, i32) {
    %c0_i32 = arith.constant 0 : i32
    %c0_i32_0 = arith.constant 0 : i32
    %c0_i32_1 = arith.constant 0 : i32
    return %c0_i32, %c0_i32_0 : i32, i32
  }
  func.func @transform_9(%arg0: i32) -> (i32, i32) {
    %c0_i32 = arith.constant 0 : i32
    %c0_i32_0 = arith.constant 0 : i32
    %c0_i32_1 = arith.constant 0 : i32
    return %c0_i32, %c0_i32_0 : i32, i32
  }
  func.func @transform_10(%arg0: i32) -> (i32, i32) {
    %c0_i32 = arith.constant 0 : i32
    %c0_i32_0 = arith.constant 0 : i32
    %c0_i32_1 = arith.constant 0 : i32
    return %c0_i32, %c0_i32_0 : i32, i32
  }
  func.func @transform_11(%arg0: i32) -> (i32, i32) {
    %c0_i32 = arith.constant 0 : i32
    %c0_i32_0 = arith.constant 0 : i32
    %c0_i32_1 = arith.constant 0 : i32
    return %c0_i32, %c0_i32_0 : i32, i32
  }
  func.func @transform_12(%arg0: i32) -> (i32, i32) {
    %c0_i32 = arith.constant 0 : i32
    %c0_i32_0 = arith.constant 0 : i32
    %c0_i32_1 = arith.constant 0 : i32
    return %c0_i32, %c0_i32_0 : i32, i32
  }
  func.func @transform_13(%arg0: i32) -> (i32, i32) {
    %c0_i32 = arith.constant 0 : i32
    %c0_i32_0 = arith.constant 0 : i32
    %c0_i32_1 = arith.constant 0 : i32
    return %c0_i32, %c0_i32_0 : i32, i32
  }
}

</mosaic_0001>

<bundles_post_ra>
// kernel: tpu_custom_call.1
= control target key start
LH: loop header
LB: loop body
LE: loop exit
PB: predicated region body
PF: predicated region fallthrough
CT: control target
= control target key end

     0   :  { %18 = vsyncpa [#allocation3], 0  ;;  %s10240_s0 = inlined_call_operand.vmem [shape: f32[24,8], index: 0, kind: input, shape index: {}]   ;;  %s10241_s1 = inlined_call_operand.vmem [shape: f32[24,24], index: 1, kind: input, shape index: {}]   ;;  %s10242_s2 = inlined_call_operand.hbm [shape: f32[2,24], index: 2, kind: input, shape index: {}]   ;;  %s10243_s3 = inlined_call_operand.vmem [shape: f32[3,8,8], index: 3, kind: input, shape index: {}]   ;;  %s10244_s4 = inlined_call_operand.vmem [shape: f32[3,8,8], index: 4, kind: input, shape index: {}]   ;;  %s10245_s5 = inlined_call_operand.vmem [shape: f32[3,8,8], index: 5, kind: input, shape index: {}]   ;;  %s10246_s6 = inlined_call_operand.hbm [shape: f32[3,4,8], index: 6, kind: input, shape index: {}]   ;;  %s10247_s7 = inlined_call_operand.vmem [shape: f32[24,8], index: 7, kind: input, shape index: {}]   ;;  %s10248_s8 = inlined_call_operand.vmem [shape: f32[1,8], index: 8, kind: input, shape index: {}]   ;;  %s10249_s9 = inlined_call_operand.vmem [shape: f32[8,16], index: 9, kind: input, shape index: {}]   ;;  %s10250_s10 = inlined_call_operand.vmem [shape: f32[1,16], index: 10, kind: input, shape index: {}]   ;;  %s10251_s11 = inlined_call_operand.vmem [shape: f32[16,2], index: 11, kind: input, shape index: {}]   ;;  %s10252_s12 = inlined_call_operand.vmem [shape: f32[1,2], index: 12, kind: input, shape index: {}]   ;;  %s10253_s13 = inlined_call_operand.hbm [shape: f32[2,2], index: 13, kind: output, shape index: {}]  }
   0x1   :  { %19 = vsyncpa [#allocation6], 0 }
   0x2   :  { %20 = vsyncpa [#allocation4], 0  ;;  %s7242_s25 = smov [#allocation2]   ;;  %s7243_s27 = smov [#allocation5]  }
   0x3   :  { %s31_s26 = sshll.u32 %s7242_s25, 4  ;;  %s46_s28 = sshll.u32 %s7243_s27, 4  ;;  %s32_s26 = int_to_ptr.vmem [resolvable:$true] %s31_s26  ;;  %s7323_s28 = int_to_ptr.vmem [resolvable:$true] %s46_s28 }
   0x4   :  { %s7170_s14 = scalar_lea.hbm %s10242_s2, 32 }
   0x5   :  { %p7171_p0 = scmp.ne.s32.totalorder %s10242_s2, %s7170_s14  ;;  %p7174_p1 = scmp.lt.u32.totalorder %s7170_s14, %s10242_s2 }
   0x7   :  { %p7176_p2 = pnand %p7174_p1, %p7171_p0 }
   0x9   :  { %7179 = shalt.err (!%p7176_p2)
}
   0xa   :  { %s7180_s19 = scalar_lea.vmem %s32_s26, 32  ;;  %p7185_p4 = scmp.lt.s32.totalorder %s32_s26, %s32_s26 }
   0xb   :  { %p7181_p3 = scmp.ne.s32.totalorder %s32_s26, %s7180_s19  ;;  %p7186_p5 = scmp.lt.s32.totalorder %s7180_s19, %s7180_s19 }
   0xd   :  { %p7187_p6 = por %p7186_p5, %p7185_p4 }
   0xf   :  { %p7188_p7 = pnand %p7187_p6, %p7181_p3 }
  0x11   :  { %7191 = shalt.err (!%p7188_p7)
}
  0x12   :  { %34 = dma.hbm_to_vmem [thread:$0]  %s10242_s2, 32, %s32_s26, [#allocation3]  }
  0x13   :  { %s7192_s24 = scalar_lea.hbm %s10246_s6, 192 }
  0x14   :  { %p7193_p8 = scmp.ne.s32.totalorder %s10246_s6, %s7192_s24  ;;  %p7196_p9 = scmp.lt.u32.totalorder %s7192_s24, %s10246_s6 }
  0x16   :  { %p7198_p10 = pnand %p7196_p9, %p7193_p8 }
  0x18   :  { %7201 = shalt.err (!%p7198_p10)
}
  0x19   :  { %s7202_s14 = scalar_lea.vmem %s7323_s28, 192  ;;  %p7207_p12 = scmp.lt.s32.totalorder %s7323_s28, %s7323_s28 }
  0x1a   :  { %p7203_p11 = scmp.ne.s32.totalorder %s7323_s28, %s7202_s14  ;;  %p7208_p13 = scmp.lt.s32.totalorder %s7202_s14, %s7202_s14 }
  0x1c   :  { %p7209_p0 = por %p7208_p13, %p7207_p12 }
  0x1e   :  { %p7210_p1 = pnand %p7209_p0, %p7203_p11 }
  0x20   :  { %7213 = shalt.err (!%p7210_p1)
}
  0x21   :  { %s7244_s2 = smov 64   ;;  %s7245_s26 = smov 4  }
  0x22   :  { %52 = dma.hbm_to_vmem [thread:$0]  %s10246_s6, 192, %s7323_s28, [#allocation6], %s7244_s2, %s7244_s2, %s7245_s26  }
  0x23   :  { %7236 = dma.done.wait [#allocation3], 32  }
  0x24   :  { %7237 = vsyncadd [#allocation3], 4294967264 }
  0x25   :  { %7238 = dma.done.wait [#allocation6], 192  }
  0x26   :  { %7239 = vsyncadd [#allocation6], 4294967104  ;;  %v74_v0 = vlaneseq  ;;  %v10254_v1 = vmov 0.0   ;;  %vm7247_vm0 = vmmov 0   ;;  %vm530_vm1 = vcmask 64512   ;;  %v522_v5 = vld [vmem:[%s10243_s3] sm:$0xff] }
  0x27   :  { %6714 = vmatprep.subr.mxu0 %v10254_v1  ;;  %6725 = vmatprep.subr.mxu1 %v10254_v1  ;;  %v523_v6 = vld [vmem:[%s10244_s4] sm:$0xff]  ;;  %v520_v10 = vld [vmem:[%s10240_s0 + $0x8] sm:$0xff]  ;;  %v521_v13 = vld [vmem:[%s10240_s0 + $0x10] sm:$0xff]  ;;  %vm10295_vm2 = vcmask 195584   ;;  %v7248_v44 = vmov 1966171168  }
  0x28   :  { %6716 = vmatprep.mubr.msk.f32.mxu0 %vm7247_vm0, %v10254_v1  ;;  %6727 = vmatprep.mubr.msk.f32.mxu1 %vm7247_vm0, %v10254_v1  ;;  %v7360_v2 = vshrl.u32 %v74_v0, 7  ;;  %v519_v7 = vld [vmem:[%s10240_s0] sm:$0xff]  ;;  %v7429_v21 = vld [vmem:[%s10241_s1 + $0x8] sm:$0xff]  ;;  %v7461_v33 = vld [vmem:[%s10241_s1 + $0x10] sm:$0xff]  ;;  %v705_v45 = vunpack.c.l.s4 %v7248_v44  ;;  %s7249_s21 = smov 8   ;;  %s7252_s17 = smov [#allocation7]  }
  0x29   :  { %6715 = vmatpush3.msra.mxu0 %v522_v5  ;;  %6726 = vmatpush3.msra.mxu1 %v523_v6  ;;  %v7380_v8 = vld [vmem:[%s10241_s1] sm:$0xff]  ;;  %s6197_s18 = sshll.u32 %s7252_s17, 4  ;;  %s6198_s18 = int_to_ptr.vmem [resolvable:$true] %s6197_s18 }
  0x2a   :  { %v7363_v3 = vsub.s32 0, %v7360_v2  ;;  %v7366_v4 = vsub.s32 1, %v7360_v2  ;;  %6717 = vmatmul.mubr.msk.f32.vlgmr.msra.gmra.mrb[0].mxu0 %vm530_vm1, %v519_v7  ;;  %6728 = vmatmul.mubr.msk.f32.vlgmr.msra.gmra.mrb[0].mxu1 %vm530_vm1, %v519_v7  ;;  %v7396_v12 = vsub.s32 2, %v7360_v2  ;;  %v7412_v15 = vsub.s32 3, %v7360_v2  ;;  %v524_v26 = vld [vmem:[%s10245_s5] sm:$0xff]  ;;  %p7219_p3 = scmp.lt.s32.totalorder %s6198_s18, %s6198_s18 }
  0x2b   :  { %6719 = vmatprep.mubr.msk.f32.mxu0 %vm7247_vm0, %v10254_v1  ;;  %6730 = vmatprep.mubr.msk.f32.mxu1 %vm7247_vm0, %v10254_v1  ;;  %v7417_v17 = vsub.s32 4, %v7360_v2  ;;  %v7422_v19 = vsub.s32 5, %v7360_v2  ;;  %v7436_v24 = vsub.s32 6, %v7360_v2  ;;  %v7448_v28 = vsub.s32 7, %v7360_v2  ;;  %v7483_v46 = vld [vmem:[#allocation5] sm:$0xf] }
  0x2c   :  { %10500 = vst [vmem:[#allocation11_spill] sm:$0xff] %v7363_v3  ;;  %10501 = vst [vmem:[#allocation12_spill] sm:$0xff] %v7366_v4  ;;  %v77_v9 = vrot.slane %v7380_v8, %v7363_v3  ;;  %v92_v11 = vrot.slane %v7380_v8, %v7366_v4  ;;  %v107_v14 = vrot.slane %v7380_v8, %v7396_v12  ;;  %6736 = vmatprep.subr.mxu0 %v524_v26 }
  0x2d   :  { %10502 = vst [vmem:[#allocation13_spill] sm:$0xff] %v7396_v12  ;;  %10503 = vst [vmem:[#allocation14_spill] sm:$0xff] %v7412_v15  ;;  %v122_v16 = vrot.slane %v7380_v8, %v7412_v15  ;;  %v137_v18 = vrot.slane %v7380_v8, %v7417_v17  ;;  %v152_v20 = vrot.slane %v7380_v8, %v7422_v19  ;;  %6737 = vmatpush3.msra.mxu0 %v524_v26 }
  0x2e   :  { %79 = vbcast.lane.b32.xlu0 %v77_v9, 256  ;;  %94 = vbcast.lane.b32.xlu1 %v92_v11, 256  ;;  %v197_v22 = vrot.slane %v7429_v21, %v7363_v3  ;;  %v212_v23 = vrot.slane %v7429_v21, %v7366_v4  ;;  %v167_v25 = vrot.slane %v7380_v8, %v7436_v24  ;;  %v507_v43 = vsel %vm10295_vm2, %v7380_v8, -inf }
  0x2f   :  { %6720 = vmatmul.mubr.msk.f32.gmra.mrb[2].mxu0 %vm530_vm1, %v520_v10  ;;  %6731 = vmatmul.mubr.msk.f32.gmra.mrb[2].mxu1 %vm530_vm1, %v520_v10  ;;  %v227_v27 = vrot.slane %v7429_v21, %v7396_v12  ;;  %v182_v29 = vrot.slane %v7380_v8, %v7448_v28  ;;  %v242_v30 = vrot.slane %v7429_v21, %v7412_v15  ;;  %v706_v47 = vunpack.c.0.s8 %v705_v45 }
  0x30   :  { %6722 = vmatprep.mubr.msk.f32.mxu0 %vm7247_vm0, %v10254_v1  ;;  %6733 = vmatprep.mubr.msk.f32.mxu1 %vm7247_vm0, %v10254_v1  ;;  %v257_v31 = vrot.slane %v7429_v21, %v7417_v17  ;;  %v272_v32 = vrot.slane %v7429_v21, %v7422_v19  ;;  %v317_v34 = vrot.slane %v7461_v33, %v7363_v3 }
  0x31   :  { %7155 = vmatprep.subr.mxu1 %v524_v26  ;;  %6978 = vmatprep.subr.mxu0 %v10254_v1  ;;  %v332_v35 = vrot.slane %v7461_v33, %v7366_v4  ;;  %v287_v36 = vrot.slane %v7429_v21, %v7436_v24  ;;  %v347_v37 = vrot.slane %v7461_v33, %v7396_v12 }
  0x32   :  { %83 = vbcast.lane.b32.xlu0 %v77_v9, 264  ;;  %98 = vbcast.lane.b32.xlu1 %v92_v11, 264  ;;  %v302_v38 = vrot.slane %v7429_v21, %v7448_v28  ;;  %v362_v39 = vrot.slane %v7461_v33, %v7412_v15  ;;  %v377_v40 = vrot.slane %v7461_v33, %v7417_v17 }
  0x33   :  { %6723 = vmatmul.mubr.msk.f32.gmra.mrb[4].mxu0 %vm530_vm1, %v521_v13  ;;  %6734 = vmatmul.mubr.msk.f32.gmra.mrb[4].mxu1 %vm530_vm1, %v521_v13  ;;  %v392_v41 = vrot.slane %v7461_v33, %v7422_v19  ;;  %v407_v42 = vrot.slane %v7461_v33, %v7436_v24  ;;  %v529_v48 = vrot.slane %v7483_v46, %v7363_v3 }
  0x34   :  { %7156 = vmatpush3.msra.mxu1 %v524_v26  ;;  %v7488_v49 = vsub.s32 %v706_v47, %v7360_v2  ;;  %v422_v52 = vrot.slane %v7461_v33, %v7448_v28 }
  0x35   :  { %6846 = vmatprep.subr.mxu1 %v10254_v1 }
  0x36   :  { %109 = vbcast.lane.b32.xlu0 %v107_v14, 256  ;;  %113 = vbcast.lane.b32.xlu1 %v107_v14, 264  ;;  %10504 = vst [vmem:[#allocation15_spill] sm:$0xff] %v7488_v49 }
  0x3a   :  { %87 = vbcast.lane.b32.xlu0 %v77_v9, 272  ;;  %102 = vbcast.lane.b32.xlu1 %v92_v11, 272 }
  0x3e   :  { %124 = vbcast.lane.b32.xlu0 %v122_v16, 256  ;;  %128 = vbcast.lane.b32.xlu1 %v122_v16, 264 }
  0x42   :  { %117 = vbcast.lane.b32.xlu0 %v107_v14, 272  ;;  %139 = vbcast.lane.b32.xlu1 %v137_v18, 256 }
  0x46   :  { %143 = vbcast.lane.b32.xlu0 %v137_v18, 264  ;;  %132 = vbcast.lane.b32.xlu1 %v122_v16, 272 }
  0x4a   :  { %154 = vbcast.lane.b32.xlu0 %v152_v20, 256  ;;  %158 = vbcast.lane.b32.xlu1 %v152_v20, 264 }
  0x4e   :  { %199 = vbcast.lane.b32.xlu0 %v197_v22, 256  ;;  %203 = vbcast.lane.b32.xlu1 %v197_v22, 264 }
  0x52   :  { %214 = vbcast.lane.b32.xlu0 %v212_v23, 256  ;;  %218 = vbcast.lane.b32.xlu1 %v212_v23, 264 }
  0x56   :  { %147 = vbcast.lane.b32.xlu0 %v137_v18, 272  ;;  %169 = vbcast.lane.b32.xlu1 %v167_v25, 256 }
  0x5a   :  { %173 = vbcast.lane.b32.xlu0 %v167_v25, 264  ;;  %229 = vbcast.lane.b32.xlu1 %v227_v27, 256 }
  0x5e   :  { %233 = vbcast.lane.b32.xlu0 %v227_v27, 264  ;;  %162 = vbcast.lane.b32.xlu1 %v152_v20, 272 }
  0x62   :  { %184 = vbcast.lane.b32.xlu0 %v182_v29, 256  ;;  %188 = vbcast.lane.b32.xlu1 %v182_v29, 264 }
  0x66   :  { %207 = vbcast.lane.b32.xlu0 %v197_v22, 272  ;;  %222 = vbcast.lane.b32.xlu1 %v212_v23, 272 }
  0x6a   :  { %244 = vbcast.lane.b32.xlu0 %v242_v30, 256  ;;  %248 = vbcast.lane.b32.xlu1 %v242_v30, 264 }
  0x6e   :  { %177 = vbcast.lane.b32.xlu0 %v167_v25, 272  ;;  %237 = vbcast.lane.b32.xlu1 %v227_v27, 272 }
  0x72   :  { %259 = vbcast.lane.b32.xlu0 %v257_v31, 256  ;;  %263 = vbcast.lane.b32.xlu1 %v257_v31, 264 }
  0x76   :  { %192 = vbcast.lane.b32.xlu0 %v182_v29, 272  ;;  %252 = vbcast.lane.b32.xlu1 %v242_v30, 272 }
  0x7a   :  { %274 = vbcast.lane.b32.xlu0 %v272_v32, 256  ;;  %278 = vbcast.lane.b32.xlu1 %v272_v32, 264 }
  0x7e   :  { %319 = vbcast.lane.b32.xlu0 %v317_v34, 256  ;;  %323 = vbcast.lane.b32.xlu1 %v317_v34, 264 }
  0x82   :  { %334 = vbcast.lane.b32.xlu0 %v332_v35, 256  ;;  %338 = vbcast.lane.b32.xlu1 %v332_v35, 264 }
  0x86   :  { %267 = vbcast.lane.b32.xlu0 %v257_v31, 272  ;;  %289 = vbcast.lane.b32.xlu1 %v287_v36, 256 }
  0x8a   :  { %293 = vbcast.lane.b32.xlu0 %v287_v36, 264  ;;  %349 = vbcast.lane.b32.xlu1 %v347_v37, 256 }
  0x8e   :  { %353 = vbcast.lane.b32.xlu0 %v347_v37, 264  ;;  %282 = vbcast.lane.b32.xlu1 %v272_v32, 272 }
  0x92   :  { %304 = vbcast.lane.b32.xlu0 %v302_v38, 256  ;;  %308 = vbcast.lane.b32.xlu1 %v302_v38, 264 }
  0x96   :  { %327 = vbcast.lane.b32.xlu0 %v317_v34, 272  ;;  %342 = vbcast.lane.b32.xlu1 %v332_v35, 272 }
  0x9a   :  { %364 = vbcast.lane.b32.xlu0 %v362_v39, 256  ;;  %368 = vbcast.lane.b32.xlu1 %v362_v39, 264 }
  0x9e   :  { %297 = vbcast.lane.b32.xlu0 %v287_v36, 272  ;;  %357 = vbcast.lane.b32.xlu1 %v347_v37, 272 }
  0xa2   :  { %379 = vbcast.lane.b32.xlu0 %v377_v40, 256  ;;  %383 = vbcast.lane.b32.xlu1 %v377_v40, 264 }
  0xa6   :  { %312 = vbcast.lane.b32.xlu1 %v302_v38, 272 }
  0xaa   :  { %372 = vbcast.lane.b32.xlu1 %v362_v39, 272 }
  0xae   :  { %394 = vbcast.lane.b32.xlu1 %v392_v41, 256 }
  0xb2   :  { %398 = vbcast.lane.b32.xlu1 %v392_v41, 264 }
  0xb6   :  { %387 = vbcast.lane.b32.xlu1 %v377_v40, 272 }
  0xba   :  { %409 = vbcast.lane.b32.xlu1 %v407_v42, 256 }
  0xbe   :  { %413 = vbcast.lane.b32.xlu1 %v407_v42, 264 }
  0xc1   :  { %508 = vmax.xlane.f32.xlu0 %v507_v43 }
  0xc2   :  { %402 = vbcast.lane.b32.xlu1 %v392_v41, 272 }
  0xc6   :  { %428 = vbcast.lane.b32.xlu1 %v422_v52, 264 }
  0xca   :  { %417 = vbcast.lane.b32.xlu1 %v407_v42, 272 }
  0xd7   :  { %424 = vbcast.lane.b32.xlu0 %v422_v52, 256 }
  0xdb   :  { %432 = vbcast.lane.b32.xlu0 %v422_v52, 272 }
  0xfd   :  { %v606_v50 = vpop.f32.mrb[0].mxu0  ;;  %v7490_v51 = vpop.f32.mrb[0].mxu1 }
  0xfe   :  { %v607_v53 = vadd.f32 %v606_v50, %v529_v48  ;;  %v6718_v54 = vpop.f32.mrb[1].mxu0  ;;  %v6729_v55 = vpop.f32.mrb[1].mxu1 }
 0x100   :  { %v703_v56 = vcombine.high %v607_v53, %v607_v53  ;;  %v710_v57 = vrot.slane %v607_v53, %v7488_v49 }
 0x102   :  { %v611_v58 = vpop.f32.mrb[2].mxu0  ;;  %v7495_v59 = vpop.f32.mrb[2].mxu1  ;;  %v717_v60 = vrot.slane %v703_v56, %v7488_v49  ;;  %v726_v61 = vrot.slane %v710_v57, %v7488_v49  ;;  %v718_v2 = vcombine.high %v710_v57, %v710_v57 }
 0x103   :  { %v612_v62 = vadd.f32 %v611_v58, %v529_v48  ;;  %v6721_v63 = vpop.f32.mrb[3].mxu0  ;;  %v6732_v0 = vpop.f32.mrb[3].mxu1 }
 0x104   :  { %v719_v5 = vcombine.high %v717_v60, %v717_v60  ;;  %v853_v10 = vrot.slane %v726_v61, %v7363_v3  ;;  %v740_v14 = vrot.slane %v718_v2, %v7488_v49  ;;  %v733_v17 = vrot.slane %v717_v60, %v7488_v49 }
 0x105   :  { %v752_v6 = vcombine.high %v612_v62, %v612_v62  ;;  %v759_v7 = vrot.slane %v612_v62, %v7488_v49  ;;  %v748_v19 = vcombine.high %v726_v61, %v726_v61 }
 0x106   :  { %v616_v8 = vpop.f32.mrb[4].mxu0  ;;  %v7500_v9 = vpop.f32.mrb[4].mxu1  ;;  %v7507_v18 = vrot.slane %v719_v5, %v7488_v49  ;;  %v970_v24 = vadd.f32 %v853_v10, %v7490_v51  ;;  %v971_v25 = vadd.f32 %v853_v10, %v7495_v59  ;;  %v857_v27 = vrot.slane %v740_v14, %v7363_v3 }
 0x107   :  { %v6735_v11 = vpop.f32.mrb[5].mxu1  ;;  %v6724_v13 = vpop.f32.mrb[5].mxu0  ;;  %v766_v16 = vrot.slane %v752_v6, %v7488_v49  ;;  %v767_v20 = vcombine.high %v759_v7, %v759_v7  ;;  %v617_v23 = vadd.f32 %v616_v8, %v529_v48  ;;  %v972_v26 = vadd.f32 %v853_v10, %v7500_v9 }
 0x108   :  { %v749_v30 = vcombine.high %v733_v17, %v733_v17  ;;  %v750_v31 = vcombine.high %v740_v14, %v740_v14  ;;  %v751_v34 = vcombine.high %v7507_v18, %v7507_v18  ;;  %v861_v35 = vrot.slane %v748_v19, %v7363_v3 }
 0x109   :  { %v7510_v22 = vrot.slane %v766_v16, %v7488_v49  ;;  %v768_v28 = vcombine.high %v766_v16, %v766_v16  ;;  %v801_v32 = vcombine.high %v617_v23, %v617_v23  ;;  %v7522_v36 = vrot.slane %v733_v17, %v7363_v3 }
 0x10a   :  { %v7525_v37 = vrot.slane %v759_v7, %v7488_v49  ;;  %v7528_v38 = vrot.slane %v767_v20, %v7488_v49  ;;  %v808_v40 = vrot.slane %v617_v23, %v7488_v49  ;;  %v1042_v41 = vmax.f32 %v970_v24, 0.0 }
 0x10b   :  { %v798_v29 = vcombine.high %v7510_v22, %v7510_v22  ;;  %v7533_v42 = vrot.slane %v768_v28, %v7488_v49  ;;  %v1043_v43 = vmax.f32 %v971_v25, 0.0  ;;  %v973_v44 = vadd.f32 %v857_v27, %v7490_v51 }
 0x10c   :  { %v974_v45 = vadd.f32 %v857_v27, %v7495_v59  ;;  %v865_v47 = vrot.slane %v750_v31, %v7363_v3  ;;  %v7539_v48 = vrot.slane %v801_v32, %v7488_v49  ;;  %v816_v50 = vcombine.high %v808_v40, %v808_v40  ;;  %6738 = vmatprep.mubr.msk.f32.mxu0 %vm530_vm1, %v1042_v41 }
 0x10d   :  { %v909_v39 = vrot.slane %v798_v29, %v7363_v3  ;;  %v1044_v53 = vmax.f32 %v972_v26, 0.0  ;;  %v7544_v52 = vrot.slane %v7507_v18, %v7363_v3  ;;  %v824_v54 = vrot.slane %v808_v40, %v7488_v49  ;;  %6739 = vmatmul.mubr.msk.f32.vlgmr.msra.gmra.mrb[6].mxu0 %vm530_vm1, %v1043_v43 }
 0x10e   :  { %v975_v56 = vadd.f32 %v857_v27, %v7500_v9  ;;  %v7551_v57 = vrot.slane %v749_v30, %v7363_v3  ;;  %v797_v58 = vcombine.high %v7525_v37, %v7525_v37  ;;  %v799_v60 = vcombine.high %v7528_v38, %v7528_v38 }
 0x10f   :  { %v1012_v55 = vadd.f32 %v909_v39, %v7490_v51  ;;  %v7559_v61 = vrot.slane %v7525_v37, %v7363_v3  ;;  %6741 = vmatprep.mubr.msk.f32.mxu0 %vm530_vm1, %v1044_v53  ;;  %v800_v62 = vcombine.high %v7533_v42, %v7533_v42  ;;  %v7566_v63 = vrot.slane %v7528_v38, %v7363_v3 }
 0x110   :  { %v1045_v0 = vmax.f32 %v973_v44, 0.0  ;;  %v817_v5 = vcombine.high %v7539_v48, %v7539_v48  ;;  %v7572_v6 = vrot.slane %v7539_v48, %v7488_v49  ;;  %v838_v7 = vrot.slane %v816_v50, %v7488_v49 }
 0x111   :  { %v1084_v2 = vmax.f32 %v1012_v55, 0.0  ;;  %v1046_v8 = vmax.f32 %v974_v45, 0.0  ;;  %v846_v10 = vcombine.high %v824_v54, %v824_v54  ;;  %v917_v11 = vrot.slane %v824_v54, %v7363_v3 }
 0x112   :  { %6742 = vmatmul.mubr.msk.f32.gmra.mrb[8].mxu0 %vm530_vm1, %v1045_v0  ;;  %v1013_v13 = vadd.f32 %v909_v39, %v7495_v59  ;;  %v1047_v14 = vmax.f32 %v975_v56, 0.0  ;;  %v976_v16 = vadd.f32 %v861_v35, %v7490_v51  ;;  %v1014_v17 = vadd.f32 %v909_v39, %v7500_v9 }
 0x113   :  { %6801 = vmatprep.mubr.msk.f32.mxu1 %vm530_vm1, %v1084_v2  ;;  %6744 = vmatprep.mubr.msk.f32.mxu0 %vm530_vm1, %v1046_v8  ;;  %v977_v19 = vadd.f32 %v861_v35, %v7495_v59  ;;  %v913_v23 = vrot.slane %v800_v62, %v7363_v3  ;;  %v978_v24 = vadd.f32 %v861_v35, %v7500_v9 }
 0x114   :  { %v1085_v20 = vmax.f32 %v1013_v13, 0.0  ;;  %v979_v25 = vadd.f32 %v865_v47, %v7490_v51  ;;  %v848_v26 = vcombine.high %v838_v7, %v838_v7  ;;  %v1048_v27 = vmax.f32 %v976_v16, 0.0 }
 0x115   :  { %v1086_v28 = vmax.f32 %v1014_v17, 0.0  ;;  %v980_v29 = vadd.f32 %v865_v47, %v7495_v59  ;;  %v921_v30 = vrot.slane %v838_v7, %v7363_v3  ;;  %v1015_v31 = vadd.f32 %v913_v23, %v7490_v51 }
 0x116   :  { %6745 = vmatmul.mubr.msk.f32.gmra.mrb[10].mxu0 %vm530_vm1, %v1047_v14  ;;  %6802 = vmatmul.mubr.msk.f32.vlgmr.msra.gmra.mrb[6].mxu1 %vm530_vm1, %v1085_v20  ;;  %v1016_v32 = vadd.f32 %v913_v23, %v7495_v59  ;;  %v1017_v35 = vadd.f32 %v913_v23, %v7500_v9  ;;  %v1018_v39 = vadd.f32 %v917_v11, %v7490_v51  ;;  %v1049_v41 = vmax.f32 %v977_v19, 0.0 }
 0x117   :  { %6747 = vmatprep.mubr.msk.f32.mxu0 %vm530_vm1, %v1048_v27  ;;  %6804 = vmatprep.mubr.msk.f32.mxu1 %vm530_vm1, %v1086_v28  ;;  %v981_v40 = vadd.f32 %v865_v47, %v7500_v9  ;;  %v1087_v43 = vmax.f32 %v1015_v31, 0.0  ;;  %v1019_v44 = vadd.f32 %v917_v11, %v7495_v59  ;;  %v982_v45 = vadd.f32 %v7522_v36, %v7490_v51 }
 0x118   :  { %v925_v48 = vrot.slane %v846_v10, %v7363_v3  ;;  %v1050_v50 = vmax.f32 %v978_v24, 0.0  ;;  %v1088_v53 = vmax.f32 %v1016_v32, 0.0  ;;  %v1020_v54 = vadd.f32 %v917_v11, %v7500_v9 }
 0x119   :  { %v929_v55 = vrot.slane %v848_v26, %v7363_v3  ;;  %v983_v47 = vadd.f32 %v7522_v36, %v7495_v59  ;;  %v1021_v56 = vadd.f32 %v921_v30, %v7490_v51  ;;  %v984_v62 = vadd.f32 %v7522_v36, %v7500_v9 }
 0x11a   :  { %6748 = vmatmul.mubr.msk.f32.gmra.mrb[12].mxu0 %vm530_vm1, %v1049_v41  ;;  %6805 = vmatmul.mubr.msk.f32.gmra.mrb[8].mxu1 %vm530_vm1, %v1087_v43  ;;  %v1022_v0 = vadd.f32 %v921_v30, %v7495_v59  ;;  %v7615_v2 = vadd.f32 %v7544_v52, %v7490_v51  ;;  %v1051_v7 = vmax.f32 %v979_v25, 0.0  ;;  %v1089_v8 = vmax.f32 %v1017_v35, 0.0 }
 0x11b   :  { %6750 = vmatprep.mubr.msk.f32.mxu0 %vm530_vm1, %v1050_v50  ;;  %6807 = vmatprep.mubr.msk.f32.mxu1 %vm530_vm1, %v1088_v53  ;;  %v7618_v10 = vadd.f32 %v921_v30, %v7500_v9  ;;  %v7622_v11 = vadd.f32 %v7544_v52, %v7495_v59  ;;  %v7625_v13 = vrot.slane %v817_v5, %v7488_v49  ;;  %v1052_v14 = vmax.f32 %v980_v29, 0.0 }
 0x11c   :  { %v1090_v36 = vmax.f32 %v1018_v39, 0.0  ;;  %v7628_v16 = vadd.f32 %v925_v48, %v7490_v51  ;;  %v933_v17 = vrot.slane %v7572_v6, %v7363_v3  ;;  %v7636_v19 = vadd.f32 %v7544_v52, %v7500_v9 }
 0x11d   :  { %v7639_v20 = vadd.f32 %v925_v48, %v7495_v59  ;;  %v7645_v5 = vadd.f32 %v7551_v57, %v7490_v51  ;;  %v7648_v23 = vadd.f32 %v925_v48, %v7500_v9  ;;  %v7652_v24 = vadd.f32 %v7551_v57, %v7495_v59 }
 0x11e   :  { %6751 = vmatmul.mubr.msk.f32.gmra.mrb[14].mxu0 %vm530_vm1, %v1051_v7  ;;  %6808 = vmatmul.mubr.msk.f32.gmra.mrb[10].mxu1 %vm530_vm1, %v1089_v8  ;;  %v510_v52 = vsel %vm10295_vm2, %v7429_v21, -inf  ;;  %v1053_v25 = vmax.f32 %v981_v40, 0.0  ;;  %v1091_v26 = vmax.f32 %v1019_v44, 0.0  ;;  %v7657_v27 = vadd.f32 %v929_v55, %v7490_v51 }
 0x11f   :  { %6753 = vmatprep.mubr.msk.f32.mxu0 %vm530_vm1, %v1052_v14  ;;  %6810 = vmatprep.mubr.msk.f32.mxu1 %vm530_vm1, %v1090_v36  ;;  %v7661_v28 = vadd.f32 %v7551_v57, %v7500_v9  ;;  %v847_v29 = vcombine.high %v7572_v6, %v7572_v6  ;;  %v1054_v30 = vmax.f32 %v982_v45, 0.0  ;;  %v1092_v31 = vmax.f32 %v1020_v54, 0.0 }
 0x120   :  { %v7666_v32 = vadd.f32 %v929_v55, %v7495_v59  ;;  %v937_v21 = vrot.slane %v7625_v13, %v7363_v3  ;;  %v881_v57 = vrot.slane %v751_v34, %v7363_v3  ;;  %v7677_v35 = vadd.f32 %v929_v55, %v7500_v9  ;;  %511 = vmax.xlane.f32.xlu1 %v510_v52 }
 0x121   :  { %v1055_v6 = vmax.f32 %v983_v47, 0.0  ;;  %v7682_v39 = vadd.f32 %v933_v17, %v7490_v51  ;;  %v7685_v40 = vadd.f32 %v933_v17, %v7495_v59  ;;  %v7689_v41 = vadd.f32 %v7559_v61, %v7490_v51 }
 0x122   :  { %6754 = vmatmul.mubr.msk.f32.gmra.mrb[16].mxu0 %vm530_vm1, %v1053_v25  ;;  %6811 = vmatmul.mubr.msk.f32.gmra.mrb[12].mxu1 %vm530_vm1, %v1091_v26  ;;  %v1093_v18 = vmax.f32 %v1021_v56, 0.0  ;;  %v7692_v34 = vadd.f32 %v881_v57, %v7490_v51  ;;  %v7695_v43 = vadd.f32 %v881_v57, %v7495_v59  ;;  %v7698_v44 = vadd.f32 %v881_v57, %v7500_v9 }
 0x123   :  { %6756 = vmatprep.mubr.msk.f32.mxu0 %vm530_vm1, %v1054_v30  ;;  %6813 = vmatprep.mubr.msk.f32.mxu1 %vm530_vm1, %v1092_v31  ;;  %v941_v45 = vrot.slane %v847_v29, %v7363_v3  ;;  %v1056_v48 = vmax.f32 %v984_v62, 0.0  ;;  %v1094_v50 = vmax.f32 %v1022_v0, 0.0  ;;  %v7702_v53 = vadd.f32 %v933_v17, %v7500_v9 }
 0x124   :  { %v893_v54 = vrot.slane %v797_v58, %v7363_v3  ;;  %v849_v55 = vcombine.high %v7625_v13, %v7625_v13  ;;  %v7714_v47 = vadd.f32 %v7559_v61, %v7495_v59  ;;  %v513_v56 = vsel %vm10295_vm2, %v7461_v33, -inf }
 0x125   :  { %v1057_v37 = vmax.f32 %v7615_v2, 0.0  ;;  %v7722_v58 = vadd.f32 %v937_v21, %v7490_v51  ;;  %v7726_v62 = vadd.f32 %v7559_v61, %v7500_v9  ;;  %v7729_v0 = vadd.f32 %v937_v21, %v7495_v59  ;;  %514 = vmax.xlane.f32.xlu0 %v513_v56 }
 0x126   :  { %6757 = vmatmul.mubr.msk.f32.gmra.mrb[18].mxu0 %vm530_vm1, %v1055_v6  ;;  %6814 = vmatmul.mubr.msk.f32.gmra.mrb[14].mxu1 %vm530_vm1, %v1093_v18  ;;  %v1095_v7 = vmax.f32 %v7618_v10, 0.0  ;;  %v7734_v33 = vadd.f32 %v7566_v63, %v7490_v51  ;;  %v7737_v8 = vadd.f32 %v937_v21, %v7500_v9  ;;  %v7741_v2 = vadd.f32 %v7566_v63, %v7495_v59 }
 0x127   :  { %6759 = vmatprep.mubr.msk.f32.mxu0 %vm530_vm1, %v1056_v48  ;;  %6816 = vmatprep.mubr.msk.f32.mxu1 %vm530_vm1, %v1094_v50  ;;  %v897_v61 = vrot.slane %v799_v60, %v7363_v3  ;;  %v1058_v13 = vmax.f32 %v7622_v11, 0.0  ;;  %v1096_v10 = vmax.f32 %v7628_v16, 0.0  ;;  %v7750_v14 = vadd.f32 %v941_v45, %v7490_v51 }
 0x128   :  { %v901_v36 = vrot.slane %v7510_v22, %v7363_v3  ;;  %v7758_v17 = vadd.f32 %v7566_v63, %v7500_v9  ;;  %v1059_v38 = vmax.f32 %v7636_v19, 0.0  ;;  %v7764_v60 = vadd.f32 %v941_v45, %v7495_v59 }
 0x129   :  { %v7767_v11 = vadd.f32 %v893_v54, %v7490_v51  ;;  %v7770_v22 = vadd.f32 %v941_v45, %v7500_v9  ;;  %v1097_v16 = vmax.f32 %v7639_v20, 0.0  ;;  %v7774_v63 = vadd.f32 %v893_v54, %v7495_v59 }
 0x12a   :  { %6760 = vmatmul.mubr.msk.f32.gmra.mrb[20].mxu0 %vm530_vm1, %v1057_v37  ;;  %6817 = vmatmul.mubr.msk.f32.gmra.mrb[16].mxu1 %vm530_vm1, %v1095_v7  ;;  %v945_v52 = vrot.slane %v849_v55, %v7363_v3  ;;  %v7778_v25 = vadd.f32 %v893_v54, %v7500_v9  ;;  %v1060_v19 = vmax.f32 %v7645_v5, 0.0  ;;  %v1098_v26 = vmax.f32 %v7648_v23, 0.0 }
 0x12b   :  { %6762 = vmatprep.mubr.msk.f32.mxu0 %vm530_vm1, %v1058_v13  ;;  %6819 = vmatprep.mubr.msk.f32.mxu1 %vm530_vm1, %v1096_v10  ;;  %v7783_v29 = vadd.f32 %v897_v61, %v7490_v51  ;;  %v905_v30 = vrot.slane %v7533_v42, %v7363_v3  ;;  %v7801_v23 = vadd.f32 %v897_v61, %v7495_v59  ;;  %v1061_v21 = vmax.f32 %v7652_v24, 0.0 }
 0x12c   :  { %v7790_v20 = vadd.f32 %v945_v52, %v7490_v51  ;;  %v7793_v31 = vadd.f32 %v945_v52, %v7495_v59  ;;  %v7798_v5 = vadd.f32 %v945_v52, %v7500_v9  ;;  %v7804_v42 = vadd.f32 %v897_v61, %v7500_v9  ;;  %v7872_v61 = vpop.permute.xlu0 %79 }
 0x12d   :  { %v1099_v57 = vmax.f32 %v7657_v27, 0.0  ;;  %v7809_v6 = vadd.f32 %v901_v36, %v7490_v51  ;;  %v7812_v18 = vadd.f32 %v901_v36, %v7495_v59  ;;  %v1062_v45 = vmax.f32 %v7661_v28, 0.0  ;;  %10508 = vst [vmem:[#allocation19_spill] sm:$0xff] %v7872_v61 }
 0x12e   :  { %6763 = vmatmul.mubr.msk.f32.gmra.mrb[22].mxu0 %vm530_vm1, %v1059_v38  ;;  %6820 = vmatmul.mubr.msk.f32.gmra.mrb[18].mxu1 %vm530_vm1, %v1097_v16  ;;  %v1100_v48 = vmax.f32 %v7666_v32, 0.0  ;;  %v7817_v50 = vadd.f32 %v901_v36, %v7500_v9  ;;  %v7822_v24 = vadd.f32 %v905_v30, %v7490_v51  ;;  %v7825_v27 = vadd.f32 %v905_v30, %v7495_v59  ;;  %v7832_v32 = vpop.permute.xlu1 %94 }
 0x12f   :  { %6765 = vmatprep.mubr.msk.f32.mxu0 %vm530_vm1, %v1060_v19  ;;  %6822 = vmatprep.mubr.msk.f32.mxu1 %vm530_vm1, %v1098_v26  ;;  %v7830_v28 = vadd.f32 %v905_v30, %v7500_v9  ;;  %10505 = vst [vmem:[#allocation16_spill] sm:$0xff] %v7832_v32  ;;  %v1063_v54 = vmax.f32 %v7692_v34, 0.0  ;;  %v1101_v55 = vmax.f32 %v7677_v35, 0.0  ;;  %v1064_v56 = vmax.f32 %v7695_v43, 0.0 }
 0x130   :  { %v1102_v51 = vmax.f32 %v7682_v39, 0.0  ;;  %v1065_v59 = vmax.f32 %v7698_v44, 0.0  ;;  %v1103_v9 = vmax.f32 %v7685_v40, 0.0  ;;  %v1066_v34 = vmax.f32 %v7689_v41, 0.0 }
 0x131   :  { %v1104_v35 = vmax.f32 %v7702_v53, 0.0  ;;  %v1067_v39 = vmax.f32 %v7714_v47, 0.0  ;;  %v1105_v43 = vmax.f32 %v7722_v58, 0.0  ;;  %v1068_v40 = vmax.f32 %v7726_v62, 0.0 }
 0x132   :  { %6766 = vmatmul.mubr.msk.f32.gmra.mrb[24].mxu0 %vm530_vm1, %v1061_v21  ;;  %6823 = vmatmul.mubr.msk.f32.gmra.mrb[20].mxu1 %vm530_vm1, %v1099_v57  ;;  %v7846_v37 = vpop.permute.xlu1 %98  ;;  %v1106_v41 = vmax.f32 %v7729_v0, 0.0  ;;  %v1069_v53 = vmax.f32 %v7734_v33, 0.0  ;;  %v1107_v47 = vmax.f32 %v7737_v8, 0.0  ;;  %v1070_v58 = vmax.f32 %v7741_v2, 0.0 }
 0x133   :  { %6768 = vmatprep.mubr.msk.f32.mxu0 %vm530_vm1, %v1062_v45  ;;  %6825 = vmatprep.mubr.msk.f32.mxu1 %vm530_vm1, %v1100_v48  ;;  %10506 = vst [vmem:[#allocation17_spill] sm:$0xff] %v7846_v37  ;;  %v1108_v62 = vmax.f32 %v7750_v14, 0.0  ;;  %v1071_v0 = vmax.f32 %v7758_v17, 0.0  ;;  %v1109_v7 = vmax.f32 %v7764_v60, 0.0  ;;  %v1072_v33 = vmax.f32 %v7767_v11, 0.0  ;;  %v7888_v17 = vpop.permute.xlu0 %83 }
 0x134   :  { %v1110_v8 = vmax.f32 %v7770_v22, 0.0  ;;  %v1073_v13 = vmax.f32 %v7774_v63, 0.0  ;;  %v1111_v10 = vmax.f32 %v7790_v20, 0.0  ;;  %v1074_v14 = vmax.f32 %v7778_v25, 0.0  ;;  %10510 = vst [vmem:[#allocation21_spill] sm:$0xff] %v7888_v17 }
 0x135   :  { %v1112_v36 = vmax.f32 %v7793_v31, 0.0  ;;  %v1075_v60 = vmax.f32 %v7783_v29, 0.0  ;;  %v1113_v11 = vmax.f32 %v7798_v5, 0.0  ;;  %v1076_v22 = vmax.f32 %v7801_v23, 0.0 }
 0x136   :  { %6769 = vmatmul.mubr.msk.f32.gmra.mrb[26].mxu0 %vm530_vm1, %v1063_v54  ;;  %6826 = vmatmul.mubr.msk.f32.gmra.mrb[22].mxu1 %vm530_vm1, %v1101_v55  ;;  %v7860_v44 = vpop.permute.xlu1 %113  ;;  %v1077_v16 = vmax.f32 %v7804_v42, 0.0  ;;  %v1078_v52 = vmax.f32 %v7809_v6, 0.0  ;;  %v1079_v19 = vmax.f32 %v7812_v18, 0.0  ;;  %v1080_v26 = vmax.f32 %v7817_v50, 0.0 }
 0x137   :  { %6771 = vmatprep.mubr.msk.f32.mxu0 %vm530_vm1, %v1064_v56  ;;  %6828 = vmatprep.mubr.msk.f32.mxu1 %vm530_vm1, %v1102_v51  ;;  %10507 = vst [vmem:[#allocation18_spill] sm:$0xff] %v7860_v44  ;;  %v7903_v63 = vpop.permute.xlu0 %109  ;;  %v1081_v20 = vmax.f32 %v7822_v24, 0.0  ;;  %v1082_v31 = vmax.f32 %v7825_v27, 0.0  ;;  %v1083_v5 = vmax.f32 %v7830_v28, 0.0  ;;  %vm10368_vm3 = vcmp.gt.f32.partialorder %v7888_v17, 0.0 }
 0x138   :  { %10512 = vst [vmem:[#allocation23_spill] sm:$0xff] %v7903_v63  ;;  %vm10335_vm4 = vcmp.gt.f32.partialorder %v7872_v61, 0.0  ;;  %vm10327_vm5 = vcmp.gt.f32.partialorder %v7832_v32, 0.0  ;;  %vm10299_vm6 = vcmp.gt.f32.partialorder %v7846_v37, 0.0  ;;  %vm10301_vm8 = vcmp.gt.f32.partialorder %v7903_v63, 0.0 }
 0x139   :  { %vm10298_vm9 = vcmp.gt.f32.partialorder %v7860_v44, 0.0 }
 0x13a   :  { %6772 = vmatmul.mubr.msk.f32.gmra.mrb[28].mxu0 %vm530_vm1, %v1065_v59  ;;  %6829 = vmatmul.mubr.msk.f32.gmra.mrb[24].mxu1 %vm530_vm1, %v1103_v9  ;;  %v7876_v2 = vpop.permute.xlu1 %102 }
 0x13b   :  { %6774 = vmatprep.mubr.msk.f32.mxu0 %vm530_vm1, %v1066_v34  ;;  %6831 = vmatprep.mubr.msk.f32.mxu1 %vm530_vm1, %v1104_v35  ;;  %10509 = vst [vmem:[#allocation20_spill] sm:$0xff] %v7876_v2  ;;  %v7913_v29 = vpop.permute.xlu0 %87  ;;  %vm10305_vm10 = vcmp.gt.f32.partialorder %v7876_v2, 0.0 }
 0x13c   :  { %10514 = vst [vmem:[#allocation25_spill] sm:$0xff] %v7913_v29  ;;  %vm10328_vm7 = vcmp.gt.f32.partialorder %v7913_v29, 0.0 }
 0x13e   :  { %6775 = vmatmul.mubr.msk.f32.gmra.mrb[30].mxu0 %vm530_vm1, %v1067_v39  ;;  %6832 = vmatmul.mubr.msk.f32.gmra.mrb[26].mxu1 %vm530_vm1, %v1105_v43  ;;  %v7892_v38 = vpop.permute.xlu1 %128 }
 0x13f   :  { %6777 = vmatprep.mubr.msk.f32.mxu0 %vm530_vm1, %v1068_v40  ;;  %6834 = vmatprep.mubr.msk.f32.mxu1 %vm530_vm1, %v1106_v41  ;;  %10511 = vst [vmem:[#allocation22_spill] sm:$0xff] %v7892_v38  ;;  %v7923_v23 = vpop.permute.xlu0 %124 }
 0x140   :  { %10516 = vst [vmem:[#allocation27_spill] sm:$0xff] %v7923_v23  ;;  %vm10317_vm12 = vcmp.gt.f32.partialorder %v7923_v23, 0.0 }
 0x142   :  { %6778 = vmatmul.mubr.msk.f32.gmra.mrb[32].mxu0 %vm530_vm1, %v1069_v53  ;;  %6835 = vmatmul.mubr.msk.f32.gmra.mrb[28].mxu1 %vm530_vm1, %v1107_v47  ;;  %v7906_v25 = vpop.permute.xlu1 %139 }
 0x143   :  { %6780 = vmatprep.mubr.msk.f32.mxu0 %vm530_vm1, %v1070_v58  ;;  %6837 = vmatprep.mubr.msk.f32.mxu1 %vm530_vm1, %v1108_v62  ;;  %10513 = vst [vmem:[#allocation24_spill] sm:$0xff] %v7906_v25  ;;  %v7930_v21 = vpop.permute.xlu0 %117 }
 0x144   :  { %10518 = vst [vmem:[#allocation29_spill] sm:$0xff] %v7930_v21  ;;  %vm10319_vm15 = vcmp.gt.f32.partialorder %v7930_v21, 0.0 }
 0x146   :  { %6781 = vmatmul.mubr.msk.f32.gmra.mrb[34].mxu0 %vm530_vm1, %v1071_v0  ;;  %6838 = vmatmul.mubr.msk.f32.gmra.mrb[30].mxu1 %vm530_vm1, %v1109_v7  ;;  %v7916_v30 = vpop.permute.xlu1 %132 }
 0x147   :  { %6783 = vmatprep.mubr.msk.f32.mxu0 %vm530_vm1, %v1072_v33  ;;  %6840 = vmatprep.mubr.msk.f32.mxu1 %vm530_vm1, %v1110_v8  ;;  %10515 = vst [vmem:[#allocation26_spill] sm:$0xff] %v7916_v30  ;;  %v7934_v6 = vpop.permute.xlu0 %143  ;;  %vm10320_vm2 = vcmp.gt.f32.partialorder %v7916_v30, 0.0 }
 0x148   :  { %10520 = vst [vmem:[#allocation31_spill] sm:$0xff] %v7934_v6 }
 0x14a   :  { %6784 = vmatmul.mubr.msk.f32.gmra.mrb[36].mxu0 %vm530_vm1, %v1073_v13  ;;  %6841 = vmatmul.mubr.msk.f32.gmra.mrb[32].mxu1 %vm530_vm1, %v1111_v10  ;;  %v7925_v42 = vpop.permute.xlu1 %158 }
 0x14b   :  { %6786 = vmatprep.mubr.msk.f32.mxu0 %vm530_vm1, %v1074_v14  ;;  %6843 = vmatprep.mubr.msk.f32.mxu1 %vm530_vm1, %v1112_v36  ;;  %10517 = vst [vmem:[#allocation28_spill] sm:$0xff] %v7925_v42  ;;  %v7938_v45 = vpop.permute.xlu0 %154  ;;  %v6285_v14 = vld [vmem:[%s10243_s3 + $0x8] sm:$0xff] }
 0x14c   :  { %10522 = vst [vmem:[#allocation33_spill] sm:$0xff] %v7938_v45  ;;  %6847 = vmatpush3.msra.mxu1 %v6285_v14 }
 0x14d   :  { %6857 = vmatprep.subr.mxu1 %v10254_v1 }
 0x14e   :  { %6787 = vmatmul.mubr.msk.f32.gmra.mrb[38].mxu0 %vm530_vm1, %v1075_v60  ;;  %6844 = vmatmul.mubr.msk.f32.gmra.mrb[34].mxu1 %vm530_vm1, %v1113_v11  ;;  %v7932_v57 = vpop.permute.xlu1 %203 }
 0x14f   :  { %6789 = vmatprep.mubr.msk.f32.mxu0 %vm530_vm1, %v1076_v22  ;;  %6848 = vmatprep.mubr.msk.f32.mxu1 %vm7247_vm0, %v10254_v1  ;;  %10519 = vst [vmem:[#allocation30_spill] sm:$0xff] %v7932_v57  ;;  %v7942_v50 = vpop.permute.xlu0 %199 }
 0x150   :  { %10524 = vst [vmem:[#allocation35_spill] sm:$0xff] %v7942_v50 }
 0x152   :  { %6790 = vmatmul.mubr.msk.f32.gmra.mrb[40].mxu0 %vm530_vm1, %v1077_v16  ;;  %v7936_v18 = vpop.permute.xlu1 %218 }
 0x153   :  { %6792 = vmatprep.mubr.msk.f32.mxu0 %vm530_vm1, %v1078_v52  ;;  %10521 = vst [vmem:[#allocation32_spill] sm:$0xff] %v7936_v18  ;;  %v7946_v27 = vpop.permute.xlu0 %214 }
 0x154   :  { %10526 = vst [vmem:[#allocation37_spill] sm:$0xff] %v7946_v27 }
 0x156   :  { %6793 = vmatmul.mubr.msk.f32.gmra.mrb[42].mxu0 %vm530_vm1, %v1079_v19  ;;  %v7940_v48 = vpop.permute.xlu1 %169 }
 0x157   :  { %6795 = vmatprep.mubr.msk.f32.mxu0 %vm530_vm1, %v1080_v26  ;;  %10523 = vst [vmem:[#allocation34_spill] sm:$0xff] %v7940_v48  ;;  %v7950_v54 = vpop.permute.xlu0 %147 }
 0x158   :  { %10528 = vst [vmem:[#allocation39_spill] sm:$0xff] %v7950_v54 }
 0x15a   :  { %6796 = vmatmul.mubr.msk.f32.gmra.mrb[44].mxu0 %vm530_vm1, %v1081_v20  ;;  %v7944_v24 = vpop.permute.xlu1 %229 }
 0x15b   :  { %6798 = vmatprep.mubr.msk.f32.mxu0 %vm530_vm1, %v1082_v31  ;;  %10525 = vst [vmem:[#allocation36_spill] sm:$0xff] %v7944_v24  ;;  %v7954_v56 = vpop.permute.xlu0 %173 }
 0x15c   :  { %10530 = vst [vmem:[#allocation41_spill] sm:$0xff] %v7954_v56 }
 0x15e   :  { %6799 = vmatmul.mubr.msk.f32.gmra.mrb[46].mxu0 %vm530_vm1, %v1083_v5  ;;  %v7948_v28 = vpop.permute.xlu1 %162  ;;  %v8020_v5 = vrot.slane %v7483_v46, %v7366_v4 }
 0x15f   :  { %6980 = vmatprep.mubr.msk.f32.mxu0 %vm7247_vm0, %v10254_v1  ;;  %10527 = vst [vmem:[#allocation38_spill] sm:$0xff] %v7948_v28  ;;  %v7958_v59 = vpop.permute.xlu0 %233 }
 0x160   :  { %10532 = vst [vmem:[#allocation43_spill] sm:$0xff] %v7958_v59 }
 0x162   :  { %v7952_v55 = vpop.permute.xlu1 %188 }
 0x163   :  { %10529 = vst [vmem:[#allocation40_spill] sm:$0xff] %v7952_v55  ;;  %v7962_v34 = vpop.permute.xlu0 %184 }
 0x164   :  { %10534 = vst [vmem:[#allocation45_spill] sm:$0xff] %v7962_v34 }
 0x166   :  { %v7956_v51 = vpop.permute.xlu1 %222 }
 0x167   :  { %10531 = vst [vmem:[#allocation42_spill] sm:$0xff] %v7956_v51  ;;  %v7966_v39 = vpop.permute.xlu0 %207 }
 0x168   :  { %10536 = vst [vmem:[#allocation47_spill] sm:$0xff] %v7966_v39 }
 0x16a   :  { %v7960_v9 = vpop.permute.xlu1 %248 }
 0x16b   :  { %10533 = vst [vmem:[#allocation44_spill] sm:$0xff] %v7960_v9  ;;  %v7970_v40 = vpop.permute.xlu0 %244 }
 0x16c   :  { %10538 = vst [vmem:[#allocation49_spill] sm:$0xff] %v7970_v40 }
 0x16e   :  { %v7964_v35 = vpop.permute.xlu1 %237 }
 0x16f   :  { %10535 = vst [vmem:[#allocation46_spill] sm:$0xff] %v7964_v35  ;;  %v7974_v53 = vpop.permute.xlu0 %177 }
 0x170   :  { %10540 = vst [vmem:[#allocation51_spill] sm:$0xff] %v7974_v53 }
 0x172   :  { %v7968_v43 = vpop.permute.xlu1 %263 }
 0x173   :  { %10537 = vst [vmem:[#allocation48_spill] sm:$0xff] %v7968_v43  ;;  %v7978_v58 = vpop.permute.xlu0 %259 }
 0x174   :  { %10542 = vst [vmem:[#allocation53_spill] sm:$0xff] %v7978_v58 }
 0x176   :  { %v7972_v41 = vpop.permute.xlu1 %252 }
 0x177   :  { %10539 = vst [vmem:[#allocation50_spill] sm:$0xff] %v7972_v41  ;;  %v7982_v0 = vpop.permute.xlu0 %192 }
 0x178   :  { %10544 = vst [vmem:[#allocation55_spill] sm:$0xff] %v7982_v0 }
 0x17a   :  { %v7976_v47 = vpop.permute.xlu1 %278 }
 0x17b   :  { %10541 = vst [vmem:[#allocation52_spill] sm:$0xff] %v7976_v47  ;;  %v7986_v33 = vpop.permute.xlu0 %274 }
 0x17c   :  { %10546 = vst [vmem:[#allocation57_spill] sm:$0xff] %v7986_v33 }
 0x17e   :  { %v7980_v62 = vpop.permute.xlu1 %323 }
 0x17f   :  { %10543 = vst [vmem:[#allocation54_spill] sm:$0xff] %v7980_v62  ;;  %v7990_v13 = vpop.permute.xlu0 %319 }
 0x180   :  { %10548 = vst [vmem:[#allocation59_spill] sm:$0xff] %v7990_v13 }
 0x182   :  { %v7984_v7 = vpop.permute.xlu1 %338 }
 0x183   :  { %10545 = vst [vmem:[#allocation56_spill] sm:$0xff] %v7984_v7  ;;  %v7998_v36 = vpop.permute.xlu0 %334 }
 0x184   :  { %10550 = vst [vmem:[#allocation61_spill] sm:$0xff] %v7998_v36 }
 0x186   :  { %v7988_v8 = vpop.permute.xlu1 %289 }
 0x187   :  { %10547 = vst [vmem:[#allocation58_spill] sm:$0xff] %v7988_v8  ;;  %v8002_v11 = vpop.permute.xlu0 %267  ;;  %vm10296_vm13 = vcmp.gt.f32.partialorder %v7988_v8, 0.0 }
 0x188   :  { %10552 = vst [vmem:[#allocation63_spill] sm:$0xff] %v8002_v11 }
 0x18a   :  { %v7992_v10 = vpop.permute.xlu1 %349 }
 0x18b   :  { %10549 = vst [vmem:[#allocation60_spill] sm:$0xff] %v7992_v10  ;;  %v8006_v16 = vpop.permute.xlu0 %293 }
 0x18c   :  { %10554 = vst [vmem:[#allocation65_spill] sm:$0xff] %v8006_v16  ;;  %vm10297_vm11 = vcmp.gt.f32.partialorder %v8006_v16, 0.0 }
 0x18e   :  { %v8000_v60 = vpop.permute.xlu1 %282 }
 0x18f   :  { %10551 = vst [vmem:[#allocation62_spill] sm:$0xff] %v8000_v60  ;;  %v8010_v19 = vpop.permute.xlu0 %353 }
 0x190   :  { %10556 = vst [vmem:[#allocation67_spill] sm:$0xff] %v8010_v19 }
 0x192   :  { %v8004_v22 = vpop.permute.xlu1 %308 }
 0x193   :  { %10553 = vst [vmem:[#allocation64_spill] sm:$0xff] %v8004_v22  ;;  %v8014_v20 = vpop.permute.xlu0 %304 }
 0x194   :  { %10558 = vst [vmem:[#allocation69_spill] sm:$0xff] %v8014_v20  ;;  %vm10304_vm14 = vcmp.gt.f32.partialorder %v8014_v20, 0.0 }
 0x196   :  { %v8008_v52 = vpop.permute.xlu1 %342 }
 0x197   :  { %10555 = vst [vmem:[#allocation66_spill] sm:$0xff] %v8008_v52  ;;  %v8022_v14 = vpop.permute.xlu0 %327 }
 0x198   :  { %10560 = vst [vmem:[#allocation71_spill] sm:$0xff] %v8022_v14 }
 0x19a   :  { %v8012_v26 = vpop.permute.xlu1 %368 }
 0x19b   :  { %10557 = vst [vmem:[#allocation68_spill] sm:$0xff] %v8012_v26  ;;  %v8035_v43 = vpop.permute.xlu0 %364 }
 0x19c   :  { %10562 = vst [vmem:[#allocation73_spill] sm:$0xff] %v8035_v43 }
 0x19e   :  { %v8016_v31 = vpop.permute.xlu1 %357 }
 0x19f   :  { %10559 = vst [vmem:[#allocation70_spill] sm:$0xff] %v8016_v31 }
 0x1a2   :  { %v8024_v49 = vpop.permute.xlu1 %383 }
 0x1a3   :  { %10561 = vst [vmem:[#allocation72_spill] sm:$0xff] %v8024_v49 }
 0x1e0   :  { %v6740_v1 = vpop.f32.mrb[6].mxu0 }
 0x1e1   :  { %v1760_v3 = vadd.f32 %v6740_v1, %v8020_v5  ;;  %v1396_v60 = vpop.f32.mrb[7].mxu0 }
 0x1e2   :  { %v1759_v47 = vadd.f32 %v8020_v5, %v1396_v60  ;;  %v8039_v60 = vpop.permute.xlu1 %312 }
 0x1e3   :  { %v1976_v11 = vsel %vm10368_vm3, %v1760_v3, -1e+30  ;;  %10563 = vst [vmem:[#allocation74_spill] sm:$0xff] %v8039_v60  ;;  %v8044_v3 = vrot.slane %v7483_v46, %v7396_v12  ;;  %vm10388_vm3 = vcmp.gt.f32.partialorder %v8024_v49, 0.0 }
 0x1e4   :  { %v2048_v4 = vsel %vm530_vm1, %v1976_v11, -inf  ;;  %v1975_v33 = vsel %vm10335_vm4, %v1759_v47, -1e+30  ;;  %v8051_v47 = vrot.slane %v7483_v46, %v7412_v15  ;;  %vm10398_vm4 = vcmask 1043459  }
 0x1e5   :  { %v6743_v58 = vpop.f32.mrb[8].mxu0  ;;  %v2047_v1 = vsel %vm530_vm1, %v1975_v33, -inf  ;;  %10564 = vst [vmem:[#allocation75_spill] sm:$0xff] %v8044_v3 }
 0x1e6   :  { %v1762_v9 = vadd.f32 %v6743_v58, %v8020_v5  ;;  %v1406_v41 = vpop.f32.mrb[9].mxu0  ;;  %v2049_v35 = vmax.f32 %v2047_v1, %v2048_v4  ;;  %10565 = vst [vmem:[#allocation76_spill] sm:$0xff] %v8051_v47 }
 0x1e7   :  { %v1761_v40 = vadd.f32 %v8020_v5, %v1406_v41 }
 0x1e8   :  { %v1978_v33 = vsel %vm10327_vm5, %v1762_v9, -1e+30  ;;  %v8069_v9 = vpop.permute.xlu0 %297  ;;  %vm10348_vm5 = vcmp.gt.f32.partialorder %v7950_v54, 0.0 }
 0x1e9   :  { %v1977_v4 = vsel %vm10328_vm7, %v1761_v40, -1e+30  ;;  %v6746_v41 = vpop.f32.mrb[10].mxu0  ;;  %v6803_v58 = vpop.f32.mrb[6].mxu1  ;;  %10566 = vst [vmem:[#allocation77_spill] sm:$0xff] %v8069_v9  ;;  %vm2343_vm7 = vcmask 1042434  }
 0x1ea   :  { %v2050_v11 = vsel %vm530_vm1, %v1977_v4, -inf  ;;  %v1764_v1 = vadd.f32 %v6746_v41, %v8020_v5  ;;  %v1802_v46 = vadd.f32 %v6803_v58, %v8020_v5  ;;  %v1416_v15 = vpop.f32.mrb[11].mxu0  ;;  %v1606_v12 = vpop.f32.mrb[7].mxu1 }
 0x1eb   :  { %v2051_v61 = vmax.f32 %v2049_v35, %v2050_v11  ;;  %v1763_v17 = vadd.f32 %v8020_v5, %v1416_v15  ;;  %v1801_v40 = vadd.f32 %v8020_v5, %v1606_v12  ;;  %v2058_v35 = vsel %vm530_vm1, %v1978_v33, -inf  ;;  %v8077_v12 = vpop.permute.xlu1 %372 }
 0x1ec   :  { %v1980_v4 = vsel %vm10305_vm10, %v1764_v1, -1e+30  ;;  %v2018_v41 = vsel %vm10297_vm11, %v1802_v46, -1e+30  ;;  %10567 = vst [vmem:[#allocation78_spill] sm:$0xff] %v8077_v12  ;;  %vm10318_vm11 = vcmp.gt.f32.partialorder %v8004_v22, 0.0 }
 0x1ed   :  { %v2052_v58 = vrot.slane %v2051_v61, 4  ;;  %v2202_v15 = vsel %vm530_vm1, %v2018_v41, -inf  ;;  %v1979_v11 = vsel %vm10299_vm6, %v1763_v17, -1e+30  ;;  %v6749_v32 = vpop.f32.mrb[12].mxu0  ;;  %v2061_v29 = vsel %vm530_vm1, %v1980_v4, -inf }
 0x1ee   :  { %v2059_v1 = vsel %vm530_vm1, %v1979_v11, -inf  ;;  %v2017_v46 = vsel %vm10296_vm13, %v1801_v40, -1e+30  ;;  %v1766_v33 = vadd.f32 %v6749_v32, %v8020_v5  ;;  %v6806_v16 = vpop.f32.mrb[8].mxu1  ;;  %v1426_v2 = vpop.f32.mrb[13].mxu0  ;;  %vm10300_vm13 = vcmp.gt.f32.partialorder %v8069_v9, 0.0 }
 0x1ef   :  { %v2053_v41 = vmax.f32 %v2051_v61, %v2052_v58  ;;  %v2060_v47 = vmax.f32 %v2058_v35, %v2059_v1  ;;  %v2201_v3 = vsel %vm530_vm1, %v2017_v46, -inf  ;;  %v1804_v17 = vadd.f32 %v6806_v16, %v8020_v5  ;;  %v1616_v37 = vpop.f32.mrb[9].mxu1 }
 0x1f0   :  { %v2203_v24 = vmax.f32 %v2201_v3, %v2202_v15  ;;  %v1982_v4 = vsel %vm10298_vm9, %v1766_v33, -1e+30  ;;  %v1765_v11 = vadd.f32 %v8020_v5, %v1426_v2  ;;  %v1803_v8 = vadd.f32 %v8020_v5, %v1616_v37 }
 0x1f1   :  { %v2054_v32 = vrot.slane %v2053_v41, 2  ;;  %v2062_v61 = vmax.f32 %v2060_v47, %v2061_v29  ;;  %v2070_v40 = vsel %vm530_vm1, %v1982_v4, -inf  ;;  %v6752_v35 = vpop.f32.mrb[14].mxu0  ;;  %v6809_v58 = vpop.f32.mrb[10].mxu1  ;;  %vm10334_vm9 = vcmp.gt.f32.partialorder %v7892_v38, 0.0 }
 0x1f2   :  { %v1981_v16 = vsel %vm10301_vm8, %v1765_v11, -1e+30  ;;  %v2019_v2 = vsel %vm10300_vm13, %v1803_v8, -1e+30  ;;  %v1768_v37 = vadd.f32 %v6752_v35, %v8020_v5  ;;  %v1436_v3 = vpop.f32.mrb[15].mxu0  ;;  %vm10329_vm6 = vcmp.gt.f32.partialorder %v7980_v62, 0.0  ;;  %v8108_v4 = vpop.permute.xlu1 %394 }
 0x1f3   :  { %v2055_v29 = vmax.f32 %v2053_v41, %v2054_v32  ;;  %v2063_v47 = vrot.slane %v2062_v61, 4  ;;  %v2069_v15 = vsel %vm530_vm1, %v1981_v16, -inf  ;;  %v2204_v1 = vsel %vm530_vm1, %v2019_v2, -inf  ;;  %v1626_v46 = vpop.f32.mrb[11].mxu1  ;;  %10568 = vst [vmem:[#allocation79_spill] sm:$0xff] %v8108_v4 }
 0x1f4   :  { %v2020_v33 = vsel %vm10304_vm14, %v1804_v17, -1e+30  ;;  %v2071_v8 = vmax.f32 %v2069_v15, %v2070_v40  ;;  %v8110_v11 = vmax.f32 %v2203_v24, %v2204_v1  ;;  %v1806_v35 = vadd.f32 %v6809_v58, %v8020_v5 }
 0x1f5   :  { %vm10330_vm13 = vcmp.gt.f32.partialorder %v7990_v13, 0.0  ;;  %vm10316_vm8 = vcmp.gt.f32.partialorder %v8039_v60, 0.0  ;;  %v2064_v41 = vmax.f32 %v2062_v61, %v2063_v47  ;;  %v1984_v32 = vsel %vm10317_vm12, %v1768_v37, -1e+30  ;;  %v6755_v2 = vpop.f32.mrb[16].mxu0  ;;  %v6812_v20 = vpop.f32.mrb[12].mxu1 }
 0x1f6   :  { %v1767_v16 = vadd.f32 %v8020_v5, %v1436_v3  ;;  %vm10331_vm14 = vcmp.gt.f32.partialorder %v7934_v6, 0.0  ;;  %vm2341_vm10 = vcmask 1041409   ;;  %v2022_v24 = vsel %vm10316_vm8, %v1806_v35, -1e+30  ;;  %v1446_v58 = vpop.f32.mrb[17].mxu0  ;;  %v1636_v15 = vpop.f32.mrb[13].mxu1 }
 0x1f7   :  { %v1805_v17 = vadd.f32 %v8020_v5, %v1626_v46  ;;  %v1770_v40 = vadd.f32 %v6755_v2, %v8020_v5  ;;  %v2056_v61 = vrot.slane %v2055_v29, 1  ;;  %v2065_v47 = vrot.slane %v2064_v41, 2 }
 0x1f8   :  { %v2212_v37 = vsel %vm530_vm1, %v2020_v33, -inf  ;;  %v1983_v3 = vsel %vm10319_vm15, %v1767_v16, -1e+30  ;;  %v2206_v1 = vrot.slane %v8110_v11, 4  ;;  %v2080_v9 = vsel %vm530_vm1, %v1984_v32, -inf }
 0x1f9   :  { %v2072_v60 = vsel %vm530_vm1, %v1983_v3, -inf  ;;  %v2021_v46 = vsel %vm10318_vm11, %v1805_v17, -1e+30  ;;  %v2066_v35 = vmax.f32 %v2064_v41, %v2065_v47  ;;  %v2215_v2 = vsel %vm530_vm1, %v2022_v24, -inf  ;;  %v6758_v44 = vpop.f32.mrb[18].mxu0  ;;  %v6815_v33 = vpop.f32.mrb[14].mxu1 }
 0x1fa   :  { %v2073_v23 = vmax.f32 %v2071_v8, %v2072_v60  ;;  %v2213_v63 = vsel %vm530_vm1, %v2021_v46, -inf  ;;  %vm10361_vm8 = vcmp.gt.f32.partialorder %v7906_v25, 0.0  ;;  %vm10342_vm12 = vcmp.gt.f32.partialorder %v7998_v36, 0.0  ;;  %v1456_v41 = vpop.f32.mrb[19].mxu0  ;;  %v1646_v47 = vpop.f32.mrb[15].mxu1 }
 0x1fb   :  { %v2214_v16 = vmax.f32 %v2212_v37, %v2213_v63  ;;  %v1986_v32 = vsel %vm10320_vm2, %v1770_v40, -1e+30  ;;  %v1808_v3 = vadd.f32 %v6812_v20, %v8020_v5  ;;  %v1769_v17 = vadd.f32 %v8020_v5, %v1446_v58  ;;  %v8143_v37 = vpop.permute.xlu1 %398 }
 0x1fc   :  { %vm10343_vm11 = vcmp.gt.f32.partialorder %v8022_v14, 0.0  ;;  %v2067_v60 = vrot.slane %v2066_v35, 1  ;;  %v2074_v8 = vrot.slane %v2073_v23, 4  ;;  %v1807_v24 = vadd.f32 %v8020_v5, %v1636_v15  ;;  %10569 = vst [vmem:[#allocation80_spill] sm:$0xff] %v8143_v37 }
 0x1fd   :  { %v1772_v46 = vadd.f32 %v6758_v44, %v8020_v5  ;;  %vm10350_vm15 = vcmp.gt.f32.partialorder %v7938_v45, 0.0  ;;  %v2057_v63 = vmax.f32 %v2055_v29, %v2056_v61  ;;  %v8145_v40 = vmax.f32 %v2214_v16, %v2215_v2  ;;  %v6761_v21 = vpop.f32.mrb[20].mxu0  ;;  %v6818_v29 = vpop.f32.mrb[16].mxu1 }
 0x1fe   :  { %v2024_v20 = vsel %vm10329_vm6, %v1808_v3, -1e+30  ;;  %v1985_v58 = vsel %vm10334_vm9, %v1769_v17, -1e+30  ;;  %vm10346_vm2 = vcmp.gt.f32.partialorder %v8008_v52, 0.0  ;;  %v2068_v22 = vmax.f32 %v2066_v35, %v2067_v60  ;;  %v1466_v3 = vpop.f32.mrb[21].mxu0 }
 0x1ff   :  { %v2075_v30 = vmax.f32 %v2073_v23, %v2074_v8  ;;  %v2224_v15 = vsel %vm530_vm1, %v2024_v20, -inf  ;;  %v2081_v44 = vsel %vm530_vm1, %v1985_v58, -inf  ;;  %v2083_v61 = vsel %vm530_vm1, %v1986_v32, -inf  ;;  %v1656_v17 = vpop.f32.mrb[17].mxu1 }
 0x200   :  { %v2082_v2 = vmax.f32 %v2080_v9, %v2081_v44  ;;  %v2023_v16 = vsel %vm10330_vm13, %v1807_v24, -1e+30  ;;  %v2342_v35 = vsel %vm2341_vm10, %v2068_v22, %v2057_v63  ;;  %v1988_v8 = vsel %vm10331_vm14, %v1772_v46, -1e+30 }
 0x201   :  { %v2076_v23 = vrot.slane %v2075_v30, 2  ;;  %v2223_v60 = vsel %vm530_vm1, %v2023_v16, -inf  ;;  %vm10347_vm6 = vcmp.gt.f32.partialorder %v7984_v7, 0.0  ;;  %v8164_v20 = vmax.f32 %v8110_v11, %v2206_v1  ;;  %v6764_v16 = vpop.f32.mrb[22].mxu0  ;;  %v6821_v46 = vpop.f32.mrb[18].mxu1 }
 0x202   :  { %v2084_v32 = vmax.f32 %v2082_v2, %v2083_v61  ;;  %v2225_v58 = vmax.f32 %v2223_v60, %v2224_v15  ;;  %vm10349_vm13 = vcmp.gt.f32.partialorder %v7948_v28, 0.0  ;;  %v1810_v22 = vadd.f32 %v6815_v33, %v8020_v5  ;;  %v1476_v61 = vpop.f32.mrb[23].mxu0  ;;  %v8175_v2 = vpop.f32.mrb[19].mxu1 }
 0x203   :  { %v2077_v24 = vmax.f32 %v2075_v30, %v2076_v23  ;;  %v1771_v63 = vadd.f32 %v8020_v5, %v1456_v41  ;;  %v1809_v44 = vadd.f32 %v8020_v5, %v1646_v47  ;;  %vm10359_vm14 = vcmp.gt.f32.partialorder %v8010_v19, 0.0  ;;  %v8183_v23 = vpop.permute.xlu1 %387 }
 0x204   :  { %v2085_v13 = vrot.slane %v2084_v32, 4  ;;  %v2092_v11 = vsel %vm530_vm1, %v1988_v8, -inf  ;;  %v1774_v1 = vadd.f32 %v6761_v21, %v8020_v5  ;;  %v1812_v15 = vadd.f32 %v6818_v29, %v8020_v5  ;;  %10570 = vst [vmem:[#allocation81_spill] sm:$0xff] %v8183_v23 }
 0x205   :  { %vm10360_vm9 = vcmp.gt.f32.partialorder %v7925_v42, 0.0  ;;  %v2078_v30 = vrot.slane %v2077_v24, 1  ;;  %v2026_v33 = vsel %vm10342_vm12, %v1810_v22, -1e+30  ;;  %v1987_v41 = vsel %vm10361_vm8, %v1771_v63, -1e+30 }
 0x206   :  { %v1773_v47 = vadd.f32 %v8020_v5, %v1466_v3  ;;  %v2086_v21 = vmax.f32 %v2084_v32, %v2085_v13  ;;  %v2234_v29 = vsel %vm530_vm1, %v2026_v33, -inf  ;;  %v2091_v60 = vsel %vm530_vm1, %v1987_v41, -inf  ;;  %v6767_v63 = vpop.f32.mrb[24].mxu0  ;;  %v6824_v25 = vpop.f32.mrb[20].mxu1 }
 0x207   :  { %v2025_v8 = vsel %vm10343_vm11, %v1809_v44, -1e+30  ;;  %v2079_v9 = vmax.f32 %v2077_v24, %v2078_v30  ;;  %v2093_v62 = vmax.f32 %v2091_v60, %v2092_v11  ;;  %v1990_v22 = vsel %vm10350_vm15, %v1774_v1, -1e+30  ;;  %v8196_v41 = vpop.f32.mrb[25].mxu0  ;;  %v8198_v24 = vpop.f32.mrb[21].mxu1 }
 0x208   :  { %v2226_v36 = vsel %vm530_vm1, %v2025_v8, -inf  ;;  %vm10366_vm12 = vcmp.gt.f32.partialorder %v7992_v10, 0.0  ;;  %v2087_v3 = vrot.slane %v2086_v21, 2  ;;  %v2102_v32 = vsel %vm530_vm1, %v1990_v22, -inf }
 0x209   :  { %v2227_v13 = vmax.f32 %v2225_v58, %v2226_v36  ;;  %v2028_v33 = vsel %vm10346_vm2, %v1812_v15, -1e+30  ;;  %vm10367_vm11 = vcmp.gt.f32.partialorder %v7954_v56, 0.0  ;;  %v2344_v44 = vsel %vm2343_vm7, %v2079_v9, %v2342_v35  ;;  %v8212_v9 = vpop.f32.mrb[26].mxu0 }
 0x20a   :  { %v2237_v11 = vsel %vm530_vm1, %v2028_v33, -inf  ;;  %v1989_v1 = vsel %vm10348_vm5, %v1773_v47, -1e+30  ;;  %v1811_v36 = vadd.f32 %v8020_v5, %v1656_v17  ;;  %v2088_v58 = vmax.f32 %v2086_v21, %v2087_v3  ;;  %v8214_v33 = vpop.f32.mrb[22].mxu1 }
 0x20b   :  { %v2228_v30 = vrot.slane %v2227_v13, 4  ;;  %v2094_v60 = vsel %vm530_vm1, %v1989_v1, -inf  ;;  %v1776_v15 = vadd.f32 %v6764_v16, %v8020_v5  ;;  %v1814_v52 = vadd.f32 %v6821_v46, %v8020_v5  ;;  %v8220_v16 = vpop.f32.mrb[27].mxu0  ;;  %v8222_v3 = vpop.f32.mrb[23].mxu1 }
 0x20c   :  { %v2095_v8 = vmax.f32 %v2093_v62, %v2094_v60  ;;  %v2027_v22 = vsel %vm10347_vm6, %v1811_v36, -1e+30  ;;  %v1775_v35 = vadd.f32 %v8020_v5, %v1476_v61  ;;  %vm10373_vm2 = vcmp.gt.f32.partialorder %v8035_v43, 0.0 }
 0x20d   :  { %v2089_v17 = vrot.slane %v2088_v58, 1  ;;  %v2229_v47 = vmax.f32 %v2227_v13, %v2228_v30  ;;  %v2235_v21 = vsel %vm530_vm1, %v2027_v22, -inf  ;;  %v1992_v62 = vsel %vm10349_vm13, %v1776_v15, -1e+30  ;;  %v8229_v30 = vpop.permute.xlu1 %409 }
 0x20e   :  { %vm10375_vm6 = vcmp.gt.f32.partialorder %v7940_v48, 0.0  ;;  %v2096_v46 = vrot.slane %v2095_v8, 4  ;;  %v2236_v61 = vmax.f32 %v2234_v29, %v2235_v21  ;;  %v2105_v1 = vsel %vm530_vm1, %v1992_v62, -inf  ;;  %10571 = vst [vmem:[#allocation82_spill] sm:$0xff] %v8229_v30 }
 0x20f   :  { %v2030_v36 = vsel %vm10359_vm14, %v1814_v52, -1e+30  ;;  %vm10374_vm5 = vcmp.gt.f32.partialorder %v8016_v31, 0.0  ;;  %v2090_v13 = vmax.f32 %v2088_v58, %v2089_v17  ;;  %v2230_v60 = vrot.slane %v2229_v47, 2  ;;  %v8240_v58 = vpop.f32.mrb[28].mxu0  ;;  %v8242_v17 = vpop.f32.mrb[24].mxu1 }
 0x210   :  { %vm10397_vm13 = vcmask 1044484   ;;  %v8232_v15 = vsel %vm530_vm1, %v2030_v36, -inf  ;;  %v1991_v22 = vsel %vm10360_vm9, %v1775_v35, -1e+30  ;;  %vm10386_vm15 = vcmp.gt.f32.partialorder %v7962_v34, 0.0  ;;  %v8246_v35 = vpop.f32.mrb[29].mxu0 }
 0x211   :  { %v2097_v29 = vmax.f32 %v2095_v8, %v2096_v46  ;;  %v2238_v21 = vmax.f32 %v2236_v61, %v2237_v11  ;;  %v2103_v62 = vsel %vm530_vm1, %v1991_v22, -inf  ;;  %v1813_v52 = vadd.f32 %v8020_v5, %v8175_v2  ;;  %v8248_v42 = vpop.f32.mrb[25].mxu1 }
 0x212   :  { %v2346_v19 = vsel %vm10398_vm4, %v2090_v13, %v2344_v44  ;;  %v2231_v36 = vmax.f32 %v2229_v47, %v2230_v60  ;;  %v2104_v7 = vmax.f32 %v2102_v32, %v2103_v62  ;;  %v1778_v14 = vadd.f32 %v6767_v63, %v8020_v5  ;;  %v8265_v62 = vpop.f32.mrb[30].mxu0 }
 0x213   :  { %v2098_v11 = vrot.slane %v2097_v29, 2  ;;  %v2239_v8 = vrot.slane %v2238_v21, 4  ;;  %v2029_v46 = vsel %vm10366_vm12, %v1813_v52, -1e+30  ;;  %v1816_v2 = vadd.f32 %v6824_v25, %v8020_v5  ;;  %v8272_v10 = vpop.f32.mrb[31].mxu0 }
 0x214   :  { %vm10376_vm14 = vcmp.gt.f32.partialorder %v8077_v12, 0.0  ;;  %v2232_v61 = vrot.slane %v2231_v36, 1  ;;  %v2106_v22 = vmax.f32 %v2104_v7, %v2105_v1  ;;  %v2245_v44 = vsel %vm530_vm1, %v2029_v46, -inf  ;;  %v8267_v7 = vpop.f32.mrb[26].mxu1 }
 0x215   :  { %v1994_v63 = vsel %vm10367_vm11, %v1778_v14, -1e+30  ;;  %vm10387_vm9 = vcmp.gt.f32.partialorder %v7974_v53, 0.0  ;;  %vm10383_vm8 = vcmp.gt.f32.partialorder %v8012_v26, 0.0  ;;  %v10572_v32 = vrot.slane %v8145_v40, 4  ;;  %v8274_v56 = vpop.f32.mrb[27].mxu1 }
 0x216   :  { %v2099_v13 = vmax.f32 %v2097_v29, %v2098_v11  ;;  %v2240_v25 = vmax.f32 %v2238_v21, %v2239_v8  ;;  %v2247_v60 = vmax.f32 %v2245_v44, %v8232_v15  ;;  %v2233_v1 = vmax.f32 %v2231_v36, %v2232_v61  ;;  %v8281_v36 = vpop.permute.xlu0 %379  ;;  %v8295_v43 = vpop.f32.mrb[32].mxu0 }
 0x217   :  { %v8262_v47 = vmax.f32 %v8145_v40, %v10572_v32  ;;  %v2107_v52 = vrot.slane %v2106_v22, 4  ;;  %v2114_v14 = vsel %vm530_vm1, %v1994_v63, -inf  ;;  %v1777_v46 = vadd.f32 %v8020_v5, %v8196_v41  ;;  %10573 = vst [vmem:[#allocation83_spill] sm:$0xff] %v8281_v36  ;;  %v8284_v41 = vpop.permute.xlu1 %413  ;;  %v8297_v28 = vpop.f32.mrb[28].mxu1 }
 0x218   :  { %vm10389_vm12 = vcmp.gt.f32.partialorder %v7982_v0, 0.0  ;;  %v2100_v40 = vrot.slane %v2099_v13, 1  ;;  %v2241_v29 = vrot.slane %v2240_v25, 2  ;;  %vm10390_vm11 = vcmask 1045509   ;;  %10574 = vst [vmem:[#allocation84_spill] sm:$0xff] %v8284_v41 }
 0x219   :  { %v2032_v15 = vsel %vm10373_vm2, %v1816_v2, -1e+30  ;;  %v1815_v21 = vadd.f32 %v8020_v5, %v8198_v24  ;;  %v2108_v11 = vmax.f32 %v2106_v22, %v2107_v52  ;;  %v1993_v8 = vsel %vm10375_vm6, %v1777_v46, -1e+30 }
 0x21a   :  { %v1780_v61 = vadd.f32 %v8212_v9, %v8020_v5  ;;  %v1818_v44 = vadd.f32 %v8214_v33, %v8020_v5  ;;  %v2101_v2 = vmax.f32 %v2099_v13, %v2100_v40  ;;  %v2242_v63 = vmax.f32 %v2240_v25, %v2241_v29  ;;  %v8303_v13 = vpop.f32.mrb[33].mxu0  ;;  %v8305_v25 = vpop.f32.mrb[29].mxu1 }
 0x21b   :  { %v2113_v24 = vsel %vm530_vm1, %v1993_v8, -inf  ;;  %v2031_v32 = vsel %vm10374_vm5, %v1815_v21, -1e+30  ;;  %vm10395_vm2 = vcmp.gt.f32.partialorder %v7952_v55, 0.0  ;;  %v2109_v22 = vrot.slane %v2108_v11, 2 }
 0x21c   :  { %v2115_v52 = vmax.f32 %v2113_v24, %v2114_v14  ;;  %v2248_v9 = vsel %vm530_vm1, %v2031_v32, -inf  ;;  %v1996_v33 = vsel %vm10386_vm15, %v1780_v61, -1e+30  ;;  %v2348_v46 = vsel %vm10397_vm13, %v2101_v2, %v2346_v19  ;;  %v8322_v2 = vpop.f32.mrb[34].mxu0 }
 0x21d   :  { %v2243_v40 = vrot.slane %v2242_v63, 1  ;;  %v2256_v29 = vsel %vm530_vm1, %v2032_v15, -inf  ;;  %v2249_v21 = vmax.f32 %v2247_v60, %v2248_v9  ;;  %vm10394_vm5 = vcmp.gt.f32.partialorder %v7932_v57, 0.0 }
 0x21e   :  { %vm10393_vm6 = vcmp.gt.f32.partialorder %v8281_v36, 0.0  ;;  %v2110_v14 = vmax.f32 %v2108_v11, %v2109_v22  ;;  %v8312_v8 = vsel %vm530_vm1, %v1996_v33, -inf  ;;  %v1779_v61 = vadd.f32 %v8020_v5, %v8220_v16  ;;  %v8324_v11 = vpop.f32.mrb[30].mxu1 }
 0x21f   :  { %v1817_v24 = vadd.f32 %v8020_v5, %v8222_v3  ;;  %v2244_v32 = vmax.f32 %v2242_v63, %v2243_v40  ;;  %v2250_v19 = vrot.slane %v2249_v21, 4  ;;  %v2034_v15 = vsel %vm10376_vm14, %v1818_v44, -1e+30  ;;  %v8332_v63 = vpop.f32.mrb[35].mxu0  ;;  %v8340_v12 = vpop.f32.mrb[31].mxu1 }
 0x220   :  { %v1782_v60 = vadd.f32 %v8240_v58, %v8020_v5  ;;  %v2111_v22 = vrot.slane %v2110_v14, 1  ;;  %v1995_v9 = vsel %vm10387_vm9, %v1779_v61, -1e+30  ;;  %v1820_v3 = vadd.f32 %v8242_v17, %v8020_v5  ;;  %v8342_v61 = vpop.permute.xlu1 %402 }
 0x221   :  { %v2033_v16 = vsel %vm10383_vm8, %v1817_v24, -1e+30  ;;  %vm10396_vm14 = vcmp.gt.f32.partialorder %v8108_v4, 0.0  ;;  %v8336_v58 = vsel %vm2341_vm10, %v2244_v32, %v2233_v1  ;;  %v2251_v44 = vmax.f32 %v2249_v21, %v2250_v19  ;;  %10575 = vst [vmem:[#allocation85_spill] sm:$0xff] %v8342_v61  ;;  %v8352_v19 = vpop.f32.mrb[36].mxu0 }
 0x222   :  { %v2116_v33 = vsel %vm530_vm1, %v1995_v9, -inf  ;;  %v2257_v40 = vsel %vm530_vm1, %v2033_v16, -inf  ;;  %v2112_v24 = vmax.f32 %v2110_v14, %v2111_v22  ;;  %v1998_v17 = vsel %vm10389_vm12, %v1782_v60, -1e+30  ;;  %v8354_v9 = vpop.f32.mrb[32].mxu1  ;;  %v8364_v60 = vpop.f32.mrb[37].mxu0 }
 0x223   :  { %v2117_v26 = vmax.f32 %v2115_v52, %v2116_v33  ;;  %v2258_v31 = vmax.f32 %v2256_v29, %v2257_v40  ;;  %vm10403_vm8 = vcmp.gt.f32.partialorder %v7942_v50, 0.0  ;;  %v2252_v34 = vrot.slane %v2251_v44, 2  ;;  %v8366_v22 = vpop.f32.mrb[33].mxu1 }
 0x224   :  { %v2259_v1 = vsel %vm530_vm1, %v2034_v15, -inf  ;;  %v2036_v21 = vsel %vm10388_vm3, %v1820_v3, -1e+30  ;;  %v1781_v32 = vadd.f32 %v8020_v5, %v8246_v35  ;;  %vm10412_vm15 = vcmp.gt.f32.partialorder %v7946_v27, 0.0 }
 0x225   :  { %vm10411_vm9 = vcmp.gt.f32.partialorder %v8183_v23, 0.0  ;;  %v8359_v52 = vsel %vm10390_vm11, %v2112_v24, %v2348_v46  ;;  %v2118_v29 = vrot.slane %v2117_v26, 4  ;;  %v2260_v14 = vmax.f32 %v2258_v31, %v2259_v1 }
 0x226   :  { %v8362_v15 = vsel %vm530_vm1, %v2036_v21, -inf  ;;  %v2253_v35 = vmax.f32 %v2251_v44, %v2252_v34  ;;  %vm2351_vm3 = vcmask 1046534   ;;  %v1997_v16 = vsel %vm10395_vm2, %v1781_v32, -1e+30 }
 0x227   :  { %v1819_v3 = vadd.f32 %v8020_v5, %v8248_v42  ;;  %v1784_v46 = vadd.f32 %v8265_v62, %v8020_v5  ;;  %v2119_v33 = vmax.f32 %v2117_v26, %v2118_v29  ;;  %v2261_v31 = vrot.slane %v2260_v14, 4  ;;  %v8384_v26 = vpop.f32.mrb[38].mxu0  ;;  %v8388_v29 = vpop.f32.mrb[34].mxu1 }
 0x228   :  { %v2125_v40 = vsel %vm530_vm1, %v1997_v16, -inf  ;;  %v1822_v24 = vadd.f32 %v8267_v7, %v8020_v5  ;;  %vm10413_vm12 = vcmp.gt.f32.partialorder %v7966_v39, 0.0  ;;  %vm10410_vm11 = vcmp.gt.f32.partialorder %v8342_v61, 0.0  ;;  %v8390_v16 = vpop.f32.mrb[39].mxu0 }
 0x229   :  { %v2254_v34 = vrot.slane %v2253_v35, 1  ;;  %v2126_v44 = vmax.f32 %v8312_v8, %v2125_v40  ;;  %v2035_v42 = vsel %vm10393_vm6, %v1819_v3, -1e+30  ;;  %v2000_v62 = vsel %vm10394_vm5, %v1784_v46, -1e+30  ;;  %v8396_v46 = vpop.f32.mrb[35].mxu1 }
 0x22a   :  { %v2120_v1 = vrot.slane %v2119_v33, 2  ;;  %v2262_v21 = vmax.f32 %v2260_v14, %v2261_v31  ;;  %v2127_v32 = vsel %vm530_vm1, %v1998_v17, -inf  ;;  %v2267_v7 = vsel %vm530_vm1, %v2035_v42, -inf  ;;  %v8399_v17 = vpop.xlane.xlu0 %508 }
 0x22b   :  { %v8392_v49 = vmax.f32 %v2253_v35, %v2254_v34  ;;  %v2128_v8 = vmax.f32 %v2126_v44, %v2127_v32  ;;  %v2269_v3 = vmax.f32 %v2267_v7, %v8362_v15  ;;  %v2136_v40 = vsel %vm530_vm1, %v2000_v62, -inf  ;;  %10576 = vst [vmem:[#allocation86_spill] sm:$0xff] %v8399_v17  ;;  %v8412_v62 = vpop.f32.mrb[40].mxu0 }
 0x22c   :  { %vm10422_vm6 = vcmp.gt.f32.partialorder %v8143_v37, 0.0  ;;  %v2121_v14 = vmax.f32 %v2119_v33, %v2120_v1  ;;  %v2263_v31 = vrot.slane %v2262_v21, 2  ;;  %v2038_v42 = vsel %vm10396_vm14, %v1822_v24, -1e+30  ;;  %v8415_v24 = vpop.permute.xlu1 %428  ;;  %v8421_v7 = vpop.f32.mrb[41].mxu0 }
 0x22d   :  { %v1783_v35 = vadd.f32 %v8020_v5, %v8272_v10  ;;  %vm10418_vm5 = vcmp.gt.f32.partialorder %v8284_v41, 0.0  ;;  %v2129_v34 = vrot.slane %v2128_v8, 4  ;;  %v1821_v15 = vadd.f32 %v8020_v5, %v8274_v56  ;;  %10577 = vst [vmem:[#allocation87_spill] sm:$0xff] %v8415_v24  ;;  %v10582_v41 = vld [vmem:[#allocation49_spill] sm:$0xff] }
 0x22e   :  { %v1786_v44 = vadd.f32 %v8295_v43, %v8020_v5  ;;  %v1824_v33 = vadd.f32 %v8297_v28, %v8020_v5  ;;  %vm10425_vm2 = vcmp.gt.f32.partialorder %v7956_v51, 0.0  ;;  %v2122_v1 = vrot.slane %v2121_v14, 1 }
 0x22f   :  { %v2264_v10 = vmax.f32 %v2262_v21, %v2263_v31  ;;  %vm2353_vm14 = vcmask 1047559   ;;  %v1999_v32 = vsel %vm10403_vm8, %v1783_v35, -1e+30  ;;  %v1785_v56 = vadd.f32 %v8020_v5, %v8303_v13 }
 0x230   :  { %vm10423_vm13 = vcmp.gt.f32.partialorder %v7936_v18, 0.0  ;;  %vm10421_vm4 = vcmp.gt.f32.partialorder %v8229_v30, 0.0  ;;  %v2130_v28 = vmax.f32 %v2128_v8, %v2129_v34  ;;  %v2135_v43 = vsel %vm530_vm1, %v1999_v32, -inf  ;;  %v8434_v34 = vpop.f32.mrb[42].mxu0 }
 0x231   :  { %v2037_v4 = vsel %vm10411_vm9, %v1821_v15, -1e+30  ;;  %v2002_v21 = vsel %vm10412_vm15, %v1786_v44, -1e+30  ;;  %v2123_v31 = vmax.f32 %v2121_v14, %v2122_v1  ;;  %v2265_v35 = vrot.slane %v2264_v10, 1  ;;  %v8440_v14 = vpop.permute.xlu0 %424  ;;  %v8446_v44 = vpop.f32.mrb[43].mxu0 }
 0x232   :  { %v2137_v36 = vmax.f32 %v2135_v43, %v2136_v40  ;;  %v2270_v13 = vsel %vm530_vm1, %v2037_v4, -inf  ;;  %vm10424_vm8 = vcmp.gt.f32.partialorder %v8399_v17, 0.0  ;;  %v2131_v50 = vrot.slane %v2130_v28, 2  ;;  %10578 = vst [vmem:[#allocation88_spill] sm:$0xff] %v8440_v14 }
 0x233   :  { %v2278_v57 = vsel %vm530_vm1, %v2038_v42, -inf  ;;  %v2271_v55 = vmax.f32 %v2269_v3, %v2270_v13  ;;  %v2146_v8 = vsel %vm530_vm1, %v2002_v21, -inf  ;;  %v2352_v15 = vsel %vm2351_vm3, %v2123_v31, %v8359_v52  ;;  %v8451_v52 = vpop.permute.xlu1 %417  ;;  %v8465_v31 = vpop.f32.mrb[44].mxu0 }
 0x234   :  { %v8438_v32 = vmax.f32 %v2264_v10, %v2265_v35  ;;  %v2040_v4 = vsel %vm10410_vm11, %v1824_v33, -1e+30  ;;  %v2001_v40 = vsel %vm10413_vm12, %v1785_v56, -1e+30  ;;  %v2132_v3 = vmax.f32 %v2130_v28, %v2131_v50  ;;  %10579 = vst [vmem:[#allocation89_spill] sm:$0xff] %v8451_v52 }
 0x235   :  { %v2272_v42 = vrot.slane %v2271_v55, 4  ;;  %v2138_v1 = vsel %vm530_vm1, %v2001_v40, -inf  ;;  %v1823_v43 = vadd.f32 %v8020_v5, %v8305_v25  ;;  %v1788_v21 = vadd.f32 %v8322_v2, %v8020_v5  ;;  %v10580_v2 = vld [vmem:[#allocation36_spill] sm:$0xff] }
 0x236   :  { %v2139_v10 = vmax.f32 %v2137_v36, %v2138_v1  ;;  %v1826_v33 = vadd.f32 %v8324_v11, %v8020_v5  ;;  %v1787_v56 = vadd.f32 %v8020_v5, %v8332_v63  ;;  %vm465_vm11 = vcmp.gt.f32.partialorder %v7958_v59, 0.0  ;;  %v8475_v1 = vpop.f32.mrb[45].mxu0 }
 0x237   :  { %v2133_v50 = vrot.slane %v2132_v3, 1  ;;  %vm10426_vm9 = vcmp.gt.f32.partialorder %v8440_v14, 0.0  ;;  %v2273_v28 = vmax.f32 %v2271_v55, %v2272_v42  ;;  %v2039_v25 = vsel %vm10422_vm6, %v1823_v43, -1e+30  ;;  %v8477_v43 = vpop.permute.xlu0 %432 }
 0x238   :  { %v1825_v36 = vadd.f32 %v8020_v5, %v8340_v12  ;;  %vm10433_vm15 = vcmp.gt.f32.partialorder %v10580_v2, 0.0  ;;  %v2281_v11 = vsel %vm530_vm1, %v2040_v4, -inf  ;;  %v2140_v35 = vrot.slane %v2139_v10, 4  ;;  %10581 = vst [vmem:[#allocation90_spill] sm:$0xff] %v8477_v43 }
 0x239   :  { %v2279_v63 = vsel %vm530_vm1, %v2039_v25, -inf  ;;  %v2042_v13 = vsel %vm10418_vm5, %v1826_v33, -1e+30  ;;  %vm10434_vm12 = vcmp.gt.f32.partialorder %v8451_v52, 0.0  ;;  %v2134_v55 = vmax.f32 %v2132_v3, %v2133_v50 }
 0x23a   :  { %v2274_v40 = vrot.slane %v2273_v28, 2  ;;  %v2280_v42 = vmax.f32 %v2278_v57, %v2279_v63  ;;  %v2004_v12 = vsel %vm10425_vm2, %v1788_v21, -1e+30  ;;  %v2141_v37 = vmax.f32 %v2139_v10, %v2140_v35  ;;  %v8486_v21 = vpop.f32.mrb[46].mxu0 }
 0x23b   :  { %v2290_v4 = vsel %vm530_vm1, %v2042_v13, -inf  ;;  %v2003_v25 = vsel %vm10423_vm13, %v1787_v56, -1e+30  ;;  %v2041_v33 = vsel %vm10421_vm4, %v1825_v36, -1e+30  ;;  %v2354_v3 = vsel %vm2353_vm14, %v2134_v55, %v2352_v15  ;;  %v8492_v61 = vpop.f32.mrb[47].mxu0 }
 0x23c   :  { %v2275_v50 = vmax.f32 %v2273_v28, %v2274_v40  ;;  %v2282_v57 = vmax.f32 %v2280_v42, %v2281_v11  ;;  %v2147_v63 = vsel %vm530_vm1, %v2003_v25, -inf  ;;  %vm10437_vm5 = vcmp.gt.f32.partialorder %v10582_v41, 0.0  ;;  %v10583_v55 = vld [vmem:[#allocation46_spill] sm:$0xff] }
 0x23d   :  { %v2372_v10 = vsel %vm10424_vm8, %v2354_v3, 0.0  ;;  %v2142_v35 = vrot.slane %v2141_v37, 2  ;;  %v2148_v13 = vmax.f32 %v2146_v8, %v2147_v63  ;;  %v2289_v56 = vsel %vm530_vm1, %v2041_v33, -inf  ;;  %v10584_v33 = vld [vmem:[#allocation75_spill] sm:$0xff] }
 0x23e   :  { %v2276_v36 = vrot.slane %v2275_v50, 1  ;;  %vm10435_vm4 = vcmp.gt.f32.partialorder %v8477_v43, 0.0  ;;  %v2283_v15 = vrot.slane %v2282_v57, 4  ;;  %v2149_v28 = vsel %vm530_vm1, %v2004_v12, -inf }
 0x23f   :  { %v2291_v11 = vmax.f32 %v2289_v56, %v2290_v4  ;;  %vm466_vm6 = vcmp.gt.f32.partialorder %v10583_v55, 0.0  ;;  %vm10436_vm13 = vcmp.gt.f32.partialorder %v8415_v24, 0.0  ;;  %v2143_v40 = vmax.f32 %v2141_v37, %v2142_v35 }
 0x240   :  { %v2150_v42 = vmax.f32 %v2148_v13, %v2149_v28  ;;  %v1790_v8 = vadd.f32 %v8352_v19, %v8020_v5  ;;  %v1828_v25 = vadd.f32 %v8354_v9, %v8020_v5  ;;  %v8503_v3 = vmul.f32 %v10584_v33, %v2372_v10  ;;  %v10585_v9 = vld [vmem:[#allocation50_spill] sm:$0xff] }
 0x241   :  { %v2284_v63 = vmax.f32 %v2282_v57, %v2283_v15  ;;  %v1789_v12 = vadd.f32 %v8020_v5, %v8364_v60  ;;  %v1827_v4 = vadd.f32 %v8020_v5, %v8366_v22  ;;  %v8509_v56 = vmax.f32 %v2275_v50, %v2276_v36  ;;  %v10586_v15 = vld [vmem:[#allocation44_spill] sm:$0xff] }
 0x242   :  { %v2151_v37 = vrot.slane %v2150_v42, 4  ;;  %v2006_v35 = vsel %vm465_vm11, %v1790_v8, -1e+30  ;;  %v2044_v19 = vsel %vm10426_vm9, %v1828_v25, -1e+30  ;;  %vm469_vm8 = vcmp.gt.f32.partialorder %v10585_v9, 0.0 }
 0x243   :  { %v2144_v10 = vrot.slane %v2143_v40, 1  ;;  %v2285_v13 = vrot.slane %v2284_v63, 2  ;;  %v2158_v57 = vsel %vm530_vm1, %v2006_v35, -inf  ;;  %v2005_v60 = vsel %vm10433_vm15, %v1789_v12, -1e+30  ;;  %v10587_v8 = vld [vmem:[#allocation48_spill] sm:$0xff] }
 0x244   :  { %vm468_vm2 = vcmp.gt.f32.partialorder %v10586_v15, 0.0  ;;  %v2152_v22 = vmax.f32 %v2150_v42, %v2151_v37  ;;  %v2300_v50 = vsel %vm530_vm1, %v2044_v19, -inf  ;;  %v2157_v36 = vsel %vm530_vm1, %v2005_v60, -inf  ;;  %v10588_v19 = vld [vmem:[#allocation53_spill] sm:$0xff] }
 0x245   :  { %v2043_v28 = vsel %vm10434_vm12, %v1827_v4, -1e+30  ;;  %vm471_vm9 = vcmp.gt.f32.partialorder %v10587_v8, 0.0  ;;  %v2286_v25 = vmax.f32 %v2284_v63, %v2285_v13  ;;  %v2159_v14 = vmax.f32 %v2157_v36, %v2158_v57 }
 0x246   :  { %v2292_v30 = vsel %vm530_vm1, %v2043_v28, -inf  ;;  %v1792_v35 = vadd.f32 %v8384_v26, %v8020_v5  ;;  %v2153_v12 = vrot.slane %v2152_v22, 2  ;;  %v1830_v42 = vadd.f32 %v8388_v29, %v8020_v5 }
 0x247   :  { %v2293_v23 = vmax.f32 %v2291_v11, %v2292_v30  ;;  %v1791_v37 = vadd.f32 %v8020_v5, %v8390_v16  ;;  %vm470_vm15 = vcmp.gt.f32.partialorder %v10588_v19, 0.0  ;;  %v2145_v4 = vmax.f32 %v2143_v40, %v2144_v10  ;;  %v10589_v11 = vld [vmem:[#allocation57_spill] sm:$0xff] }
 0x248   :  { %v2287_v60 = vrot.slane %v2286_v25, 1  ;;  %v2008_v63 = vsel %vm10437_vm5, %v1792_v35, -1e+30  ;;  %v1829_v13 = vadd.f32 %v8020_v5, %v8396_v46  ;;  %v2154_v57 = vmax.f32 %v2152_v22, %v2153_v12  ;;  %v10590_v12 = vld [vmem:[#allocation63_spill] sm:$0xff] }
 0x249   :  { %v2294_v26 = vrot.slane %v2293_v23, 4  ;;  %v2046_v30 = vsel %vm10435_vm4, %v1830_v42, -1e+30  ;;  %v1794_v29 = vadd.f32 %v8412_v62, %v8020_v5  ;;  %vm10443_vm12 = vcmp.gt.f32.partialorder %v10589_v11, 0.0 }
 0x24a   :  { %v8542_v16 = vmax.f32 %v2286_v25, %v2287_v60  ;;  %v2168_v40 = vsel %vm530_vm1, %v2008_v63, -inf  ;;  %v2007_v10 = vsel %vm466_vm6, %v1791_v37, -1e+30  ;;  %v2045_v46 = vsel %vm10436_vm13, %v1829_v13, -1e+30 }
 0x24b   :  { %v2155_v22 = vrot.slane %v2154_v57, 1  ;;  %v2295_v36 = vmax.f32 %v2293_v23, %v2294_v26  ;;  %v2160_v28 = vsel %vm530_vm1, %v2007_v10, -inf  ;;  %v2301_v35 = vsel %vm530_vm1, %v2045_v46, -inf  ;;  %v10591_v26 = vld [vmem:[#allocation52_spill] sm:$0xff]  ;;  %v10592_v10 = vld [vmem:[#allocation62_spill] sm:$0xff] }
 0x24c   :  { %vm10440_vm4 = vcmp.gt.f32.partialorder %v10590_v12, 0.0  ;;  %v2303_v62 = vsel %vm530_vm1, %v2046_v30, -inf  ;;  %v2161_v25 = vmax.f32 %v2159_v14, %v2160_v28  ;;  %v2302_v42 = vmax.f32 %v2300_v50, %v2301_v35 }
 0x24d   :  { %v1793_v60 = vadd.f32 %v8020_v5, %v8421_v7  ;;  %v2156_v63 = vmax.f32 %v2154_v57, %v2155_v22  ;;  %v2296_v37 = vrot.slane %v2295_v36, 2  ;;  %v2010_v13 = vsel %vm469_vm8, %v1794_v29, -1e+30 }
 0x24e   :  { %v1796_v23 = vadd.f32 %v8434_v34, %v8020_v5  ;;  %vm10441_vm13 = vcmp.gt.f32.partialorder %v10591_v26, 0.0  ;;  %vm10442_vm5 = vcmp.gt.f32.partialorder %v10592_v10, 0.0  ;;  %v2162_v46 = vrot.slane %v2161_v25, 4 }
 0x24f   :  { %v2304_v24 = vmax.f32 %v2302_v42, %v2303_v62  ;;  %v2009_v14 = vsel %vm468_vm2, %v1793_v60, -1e+30  ;;  %v1795_v7 = vadd.f32 %v8020_v5, %v8446_v44  ;;  %v2355_v50 = vsel %vm2341_vm10, %v2156_v63, %v2145_v4  ;;  %v10593_v44 = vld [vmem:[#allocation76_spill] sm:$0xff] }
 0x250   :  { %v2297_v57 = vmax.f32 %v2295_v36, %v2296_v37  ;;  %v2169_v30 = vsel %vm530_vm1, %v2009_v14, -inf  ;;  %v2012_v34 = vsel %vm471_vm9, %v1796_v23, -1e+30  ;;  %v2163_v29 = vmax.f32 %v2161_v25, %v2162_v46 }
 0x251   :  { %v2305_v22 = vrot.slane %v2304_v24, 4  ;;  %v2170_v28 = vmax.f32 %v2168_v40, %v2169_v30  ;;  %v2180_v35 = vsel %vm530_vm1, %v2012_v34, -inf  ;;  %v2171_v62 = vsel %vm530_vm1, %v2010_v13, -inf }
 0x252   :  { %v2011_v42 = vsel %vm470_vm15, %v1795_v7, -1e+30  ;;  %v2386_v60 = vadd.f32 %v10593_v44, %v8503_v3  ;;  %v1798_v4 = vadd.f32 %v8465_v31, %v8020_v5  ;;  %v2164_v36 = vrot.slane %v2163_v29, 2  ;;  %v6286_v3 = vld [vmem:[%s10244_s4 + $0x8] sm:$0xff] }
 0x253   :  { %v2306_v63 = vmax.f32 %v2304_v24, %v2305_v22  ;;  %v2172_v37 = vmax.f32 %v2170_v28, %v2171_v62  ;;  %v2179_v25 = vsel %vm530_vm1, %v2011_v42, -inf  ;;  %v1797_v46 = vadd.f32 %v8020_v5, %v8475_v1 }
 0x254   :  { %v2181_v23 = vmax.f32 %v2179_v25, %v2180_v35  ;;  %v8578_v40 = vmax.f32 %v2386_v60, 0.0  ;;  %v2014_v13 = vsel %vm10443_vm12, %v1798_v4, -1e+30  ;;  %v2298_v14 = vrot.slane %v2297_v57, 1 }
 0x255   :  { %v2165_v31 = vmax.f32 %v2163_v29, %v2164_v36  ;;  %v2307_v7 = vrot.slane %v2306_v63, 2  ;;  %v2173_v24 = vrot.slane %v2172_v37, 4  ;;  %v2190_v30 = vsel %vm530_vm1, %v2014_v13, -inf }
 0x256   :  { %10594 = vst [vmem:[#allocation75_spill] sm:$0xff] %v8578_v40  ;;  %6849 = vmatmul.mubr.msk.f32.vlgmr.msra.gmra.mrb[36].mxu1 %vm530_vm1, %v8578_v40  ;;  %v2013_v34 = vsel %vm10440_vm4, %v1797_v46, -1e+30  ;;  %v1800_v22 = vadd.f32 %v8486_v21, %v8020_v5  ;;  %v1799_v1 = vadd.f32 %v8020_v5, %v8492_v61  ;;  %v10595_v42 = vmov 0.0  }
 0x257   :  { %v2166_v28 = vrot.slane %v2165_v31, 1  ;;  %v2174_v35 = vmax.f32 %v2172_v37, %v2173_v24  ;;  %v2182_v29 = vsel %vm530_vm1, %v2013_v34, -inf  ;;  %v2308_v62 = vmax.f32 %v2306_v63, %v2307_v7  ;;  %6851 = vmatprep.mubr.msk.f32.mxu1 %vm7247_vm0, %v10595_v42  ;;  %6858 = vmatpush3.msra.mxu1 %v6286_v3 }
 0x258   :  { %v2183_v60 = vmax.f32 %v2181_v23, %v2182_v29  ;;  %v2016_v4 = vsel %vm10442_vm5, %v1800_v22, -1e+30  ;;  %v2015_v36 = vsel %vm10441_vm13, %v1799_v1, -1e+30  ;;  %v2363_v5 = vsel %vm2343_vm7, %v8392_v49, %v8336_v58 }
 0x259   :  { %v2167_v61 = vmax.f32 %v2165_v31, %v2166_v28  ;;  %v2175_v21 = vrot.slane %v2174_v35, 2  ;;  %v2191_v37 = vsel %vm530_vm1, %v2015_v36, -inf  ;;  %v2299_v63 = vmax.f32 %v2297_v57, %v2298_v14 }
 0x25a   :  { %v2184_v25 = vrot.slane %v2183_v60, 4  ;;  %v2192_v13 = vmax.f32 %v2190_v30, %v2191_v37  ;;  %v2309_v46 = vrot.slane %v2308_v62, 1  ;;  %vm10596_vm4 = vcmask 1043459  }
 0x25b   :  { %v2364_v23 = vsel %vm10596_vm4, %v8438_v32, %v2363_v5  ;;  %v2176_v3 = vmax.f32 %v2174_v35, %v2175_v21  ;;  %v2193_v7 = vsel %vm530_vm1, %v2016_v4, -inf  ;;  %vm10597_vm13 = vcmask 1044484  }
 0x25c   :  { %v2365_v24 = vsel %vm10597_vm13, %v8509_v56, %v2364_v23  ;;  %v2185_v34 = vmax.f32 %v2183_v60, %v2184_v25  ;;  %v2194_v22 = vmax.f32 %v2192_v13, %v2193_v7  ;;  %v2310_v49 = vmax.f32 %v2308_v62, %v2309_v46  ;;  %v8625_v46 = vpop.xlane.xlu1 %511 }
 0x25d   :  { %vm10598_vm5 = vcmask 1045509   ;;  %v2208_v57 = vrot.slane %v8164_v20, 2  ;;  %v2177_v14 = vrot.slane %v2176_v3, 1  ;;  %v2356_v30 = vsel %vm2343_vm7, %v2167_v61, %v2355_v50  ;;  %v8622_v61 = vpop.xlane.xlu0 %514  ;;  %10601 = vst [vmem:[#allocation91_spill] sm:$0xff] %v8625_v46 }
 0x25e   :  { %v2366_v58 = vsel %vm10598_vm5, %v8542_v16, %v2365_v24  ;;  %v2219_v32 = vrot.slane %v8262_v47, 2  ;;  %v2186_v1 = vrot.slane %v2185_v34, 2  ;;  %v2195_v28 = vrot.slane %v2194_v22, 4  ;;  %10599 = vst [vmem:[#allocation76_spill] sm:$0xff] %v8622_v61  ;;  %vm10600_vm5 = vmmov %vm10597_vm13 }
 0x25f   :  { %v2367_v31 = vsel %vm2351_vm3, %v2299_v63, %v2366_v58  ;;  %v2178_v56 = vmax.f32 %v2176_v3, %v2177_v14  ;;  %v2209_v62 = vmax.f32 %v8164_v20, %v2208_v57  ;;  %vm10495_vm13 = vcmp.gt.f32.partialorder %v8622_v61, 0.0 }
 0x260   :  { %v2368_v35 = vsel %vm2353_vm14, %v2310_v49, %v2367_v31  ;;  %v2187_v29 = vmax.f32 %v2185_v34, %v2186_v1  ;;  %v2196_v60 = vmax.f32 %v2194_v22, %v2195_v28  ;;  %v2220_v5 = vmax.f32 %v8262_v47, %v2219_v32  ;;  %v8665_v1 = vld [vmem:[#allocation5 + $0x4] sm:$0xf]  ;;  %v10606_v28 = vld [vmem:[#allocation11_spill] sm:$0xff] }
 0x261   :  { %v2357_v16 = vsel %vm10596_vm4, %v2178_v56, %v2356_v30  ;;  %v2210_v50 = vrot.slane %v2209_v62, 1  ;;  %vm10496_vm4 = vcmp.gt.f32.partialorder %v8625_v46, 0.0  ;;  %vm10602_vm12 = vcmask 1045509   ;;  %10605 = vst [vmem:[#allocation94_spill] sm:$0xff] %v8665_v1 }
 0x262   :  { %v2188_v4 = vrot.slane %v2187_v29, 1  ;;  %v2197_v36 = vrot.slane %v2196_v60, 2  ;;  %v2221_v25 = vrot.slane %v2220_v5, 1  ;;  %v2374_v7 = vsel %vm10495_vm13, %v2368_v35, 0.0 }
 0x263   :  { %v2211_v20 = vmax.f32 %v2209_v62, %v2210_v50  ;;  %v2381_v49 = vmul.f32 %v10584_v33, %v2374_v7  ;;  %v2403_v35 = vrot.slane %v8665_v1, %v10606_v28 }
 0x264   :  { %v2189_v21 = vmax.f32 %v2187_v29, %v2188_v4  ;;  %v2198_v37 = vmax.f32 %v2196_v60, %v2197_v36  ;;  %v2222_v3 = vmax.f32 %v2220_v5, %v2221_v25  ;;  %v10607_v60 = vld [vmem:[#allocation15_spill] sm:$0xff] }
 0x265   :  { %v2388_v14 = vadd.f32 %v10593_v44, %v2381_v49 }
 0x266   :  { %v2199_v63 = vrot.slane %v2198_v37, 1  ;;  %v2358_v13 = vsel %vm10600_vm5, %v2189_v21, %v2357_v16 }
 0x267   :  { %v8646_v30 = vmax.f32 %v2388_v14, 0.0 }
 0x268   :  { %v2200_v23 = vmax.f32 %v2198_v37, %v2199_v63 }
 0x269   :  { %10604 = vst [vmem:[#allocation93_spill] sm:$0xff] %v8646_v30 }
 0x26a   :  { %v2359_v47 = vsel %vm10602_vm12, %v2200_v23, %v2358_v13 }
 0x26b   :  { %v2360_v24 = vsel %vm2351_vm3, %v2211_v20, %v2359_v47 }
 0x26c   :  { %v2361_v34 = vsel %vm2353_vm14, %v2222_v3, %v2360_v24 }
 0x26d   :  { %v2373_v22 = vsel %vm10496_vm4, %v2361_v34, 0.0 }
 0x26e   :  { %v2380_v58 = vmul.f32 %v10584_v33, %v2373_v22  ;;  %v6287_v33 = vld [vmem:[%s10245_s5 + $0x8] sm:$0xff] }
 0x26f   :  { %6868 = vmatprep.subr.mxu1 %v6287_v33 }
 0x270   :  { %v2387_v57 = vadd.f32 %v10593_v44, %v2380_v58 }
 0x272   :  { %v8640_v31 = vmax.f32 %v2387_v57, 0.0 }
 0x274   :  { %10603 = vst [vmem:[#allocation92_spill] sm:$0xff] %v8640_v31  ;;  %6852 = vmatmul.mubr.msk.f32.gmra.mrb[38].mxu1 %vm530_vm1, %v8640_v31 }
 0x275   :  { %6854 = vmatprep.mubr.msk.f32.mxu1 %vm7247_vm0, %v10595_v42 }
 0x278   :  { %6855 = vmatmul.mubr.msk.f32.gmra.mrb[40].mxu1 %vm530_vm1, %v8646_v30 }
 0x279   :  { %6859 = vmatprep.mubr.msk.f32.mxu1 %vm7247_vm0, %v10595_v42 }
 0x27c   :  { %6860 = vmatmul.mubr.msk.f32.vlgmr.msra.gmra.mrb[42].mxu1 %vm530_vm1, %v8578_v40 }
 0x27d   :  { %6862 = vmatprep.mubr.msk.f32.mxu1 %vm7247_vm0, %v10595_v42  ;;  %6869 = vmatpush3.msra.mxu1 %v6287_v33 }
 0x280   :  { %6863 = vmatmul.mubr.msk.f32.gmra.mrb[44].mxu1 %vm530_vm1, %v8640_v31 }
 0x281   :  { %6865 = vmatprep.mubr.msk.f32.mxu1 %vm7247_vm0, %v10595_v42 }
 0x284   :  { %6866 = vmatmul.mubr.msk.f32.gmra.mrb[46].mxu1 %vm530_vm1, %v8646_v30 }
 0x329   :  { %v2479_v44 = vpop.f32.mrb[36].mxu1 }
 0x32a   :  { %v6850_v32 = vpop.f32.mrb[37].mxu1  ;;  %v2480_v56 = vadd.f32 %v2479_v44, %v2403_v35 }
 0x32c   :  { %v2576_v29 = vcombine.high %v2480_v56, %v2480_v56  ;;  %v2583_v62 = vrot.slane %v2480_v56, %v10607_v60 }
 0x32e   :  { %v2590_v16 = vrot.slane %v2576_v29, %v10607_v60  ;;  %v2591_v5 = vcombine.high %v2583_v62, %v2583_v62  ;;  %v2599_v13 = vrot.slane %v2583_v62, %v10607_v60 }
 0x330   :  { %v2592_v21 = vcombine.high %v2590_v16, %v2590_v16  ;;  %v2613_v23 = vrot.slane %v2591_v5, %v10607_v60  ;;  %v2606_v20 = vrot.slane %v2590_v16, %v10607_v60  ;;  %v2621_v22 = vcombine.high %v2599_v13, %v2599_v13 }
 0x331   :  { %v2726_v58 = vrot.slane %v2599_v13, %v10606_v28 }
 0x332   :  { %v2620_v3 = vrot.slane %v2592_v21, %v10607_v60  ;;  %v2623_v49 = vcombine.high %v2613_v23, %v2613_v23  ;;  %v2730_v57 = vrot.slane %v2613_v23, %v10606_v28  ;;  %v2622_v14 = vcombine.high %v2606_v20, %v2606_v20 }
 0x333   :  { %v2742_v21 = vrot.slane %v2606_v20, %v10606_v28 }
 0x334   :  { %v2624_v33 = vcombine.high %v2620_v3, %v2620_v3  ;;  %v2738_v5 = vrot.slane %v2623_v49, %v10606_v28 }
 0x347   :  { %v2484_v4 = vpop.f32.mrb[38].mxu1 }
 0x348   :  { %v6853_v36 = vpop.f32.mrb[39].mxu1  ;;  %v2485_v37 = vadd.f32 %v2484_v4, %v2403_v35 }
 0x349   :  { %v2734_v36 = vrot.slane %v2621_v22, %v10606_v28 }
 0x34a   :  { %v2625_v47 = vcombine.high %v2485_v37, %v2485_v37  ;;  %v2632_v34 = vrot.slane %v2485_v37, %v10607_v60 }
 0x34b   :  { %v2489_v50 = vpop.f32.mrb[40].mxu1 }
 0x34c   :  { %v8671_v63 = vadd.f32 %v2489_v50, %v2403_v35  ;;  %v6856_v25 = vpop.f32.mrb[41].mxu1  ;;  %v2639_v44 = vrot.slane %v2625_v47, %v10607_v60  ;;  %v2640_v4 = vcombine.high %v2632_v34, %v2632_v34  ;;  %v2746_v50 = vrot.slane %v2620_v3, %v10606_v28 }
 0x34d   :  { %v2750_v25 = vrot.slane %v2622_v14, %v10606_v28  ;;  %v2648_v13 = vrot.slane %v2632_v34, %v10607_v60  ;;  %v2754_v47 = vrot.slane %v2624_v33, %v10606_v28 }
 0x34e   :  { %v2662_v3 = vrot.slane %v2640_v4, %v10607_v60 }
 0x34f   :  { %v8677_v7 = vpop.f32.mrb[42].mxu1  ;;  %v2758_v4 = vrot.slane %v2648_v13, %v10606_v28 }
 0x350   :  { %v6861_v24 = vpop.f32.mrb[43].mxu1  ;;  %v2843_v56 = vadd.f32 %v2726_v58, %v8677_v7  ;;  %v2846_v62 = vadd.f32 %v2730_v57, %v8677_v7  ;;  %v2849_v34 = vadd.f32 %v2734_v36, %v8677_v7  ;;  %v8710_v30 = vadd.f32 %v2738_v5, %v8677_v7 }
 0x351   :  { %v2641_v24 = vcombine.high %v2639_v44, %v2639_v44  ;;  %v8763_v10 = vadd.f32 %v2754_v47, %v8677_v7 }
 0x352   :  { %v2915_v37 = vmax.f32 %v2843_v56, 0.0  ;;  %v2921_v26 = vmax.f32 %v2849_v34, 0.0 }
 0x353   :  { %v8683_v32 = vpop.f32.mrb[44].mxu1 }
 0x354   :  { %v6864_v35 = vpop.f32.mrb[45].mxu1  ;;  %v2844_v29 = vadd.f32 %v2726_v58, %v8683_v32  ;;  %v2847_v16 = vadd.f32 %v2730_v57, %v8683_v32  ;;  %6870 = vmatprep.mubr.msk.f32.mxu1 %vm530_vm1, %v2915_v37  ;;  %v2850_v56 = vadd.f32 %v2734_v36, %v8683_v32 }
 0x355   :  { %v8699_v35 = vrot.slane %v2639_v44, %v10607_v60 }
 0x356   :  { %v2916_v49 = vmax.f32 %v2844_v29, 0.0  ;;  %v8713_v29 = vadd.f32 %v2738_v5, %v8683_v32  ;;  %v2919_v31 = vmax.f32 %v2847_v16, 0.0  ;;  %v8747_v16 = vadd.f32 %v2750_v25, %v8677_v7 }
 0x357   :  { %v8695_v23 = vpop.f32.mrb[46].mxu1  ;;  %v2774_v43 = vrot.slane %v8699_v35, %v10606_v28  ;;  %v2922_v19 = vmax.f32 %v2850_v56, 0.0 }
 0x358   :  { %v6867_v22 = vpop.f32.mrb[47].mxu1  ;;  %v2845_v20 = vadd.f32 %v2726_v58, %v8695_v23  ;;  %v2848_v14 = vadd.f32 %v2730_v57, %v8695_v23  ;;  %6871 = vmatmul.mubr.msk.f32.vlgmr.msra.gmra.mrb[48].mxu1 %vm530_vm1, %v2916_v49  ;;  %v2851_v44 = vadd.f32 %v2734_v36, %v8695_v23  ;;  %v2670_v58 = vcombine.high %v2648_v13, %v2648_v13 }
 0x359   :  { %v2674_v57 = vcombine.high %v8671_v63, %v8671_v63  ;;  %v8719_v37 = vadd.f32 %v2738_v5, %v8695_v23  ;;  %v8722_v22 = vrot.slane %v2641_v24, %v10607_v60  ;;  %v2681_v36 = vrot.slane %v8671_v63, %v10607_v60 }
 0x35a   :  { %v2917_v33 = vmax.f32 %v2845_v20, 0.0  ;;  %v2918_v49 = vmax.f32 %v2846_v62, 0.0  ;;  %v8728_v20 = vadd.f32 %v2742_v21, %v8677_v7  ;;  %v8731_v13 = vadd.f32 %v2742_v21, %v8683_v32 }
 0x35b   :  { %v8734_v40 = vadd.f32 %v2742_v21, %v8695_v23  ;;  %v8737_v5 = vadd.f32 %v2746_v50, %v8677_v7  ;;  %v2672_v24 = vcombine.high %v2662_v3, %v2662_v3  ;;  %v8741_v63 = vadd.f32 %v2746_v50, %v8683_v32 }
 0x35c   :  { %6873 = vmatprep.mubr.msk.f32.mxu1 %vm530_vm1, %v2917_v33  ;;  %v8744_v62 = vadd.f32 %v2746_v50, %v8695_v23  ;;  %v2671_v33 = vcombine.high %v8699_v35, %v8699_v35  ;;  %v2762_v21 = vrot.slane %v2662_v3, %v10606_v28  ;;  %v2766_v61 = vrot.slane %v2670_v58, %v10606_v28 }
 0x35d   :  { %6874 = vmatmul.mubr.msk.f32.gmra.mrb[50].mxu1 %vm530_vm1, %v2918_v49  ;;  %v8755_v49 = vadd.f32 %v2750_v25, %v8683_v32  ;;  %v2689_v50 = vcombine.high %v2681_v36, %v2681_v36  ;;  %v2920_v52 = vmax.f32 %v2848_v14, 0.0  ;;  %v8760_v46 = vadd.f32 %v2750_v25, %v8695_v23 }
 0x35e   :  { %6876 = vmatprep.mubr.msk.f32.mxu1 %vm530_vm1, %v2919_v31  ;;  %v8766_v3 = vadd.f32 %v2754_v47, %v8683_v32  ;;  %v8769_v31 = vadd.f32 %v2754_v47, %v8695_v23  ;;  %v2770_v58 = vrot.slane %v2672_v24, %v10606_v28  ;;  %v8774_v35 = vadd.f32 %v2758_v4, %v8677_v7 }
 0x35f   :  { %v8777_v25 = vadd.f32 %v2758_v4, %v8683_v32  ;;  %v8780_v14 = vadd.f32 %v2758_v4, %v8695_v23  ;;  %v2673_v34 = vcombine.high %v8722_v22, %v8722_v22  ;;  %v2688_v12 = vrot.slane %v2674_v57, %v10607_v60 }
 0x360   :  { %v2697_v47 = vrot.slane %v2681_v36, %v10607_v60  ;;  %v2778_v24 = vrot.slane %v8722_v22, %v10606_v28  ;;  %v2711_v11 = vrot.slane %v2689_v50, %v10607_v60  ;;  %v8794_v4 = vadd.f32 %v2762_v21, %v8683_v32 }
 0x361   :  { %6877 = vmatmul.mubr.msk.f32.gmra.mrb[52].mxu1 %vm530_vm1, %v2920_v52  ;;  %v8788_v52 = vadd.f32 %v2762_v21, %v8677_v7  ;;  %v2923_v8 = vmax.f32 %v2851_v44, 0.0  ;;  %v8797_v15 = vadd.f32 %v2762_v21, %v8695_v23  ;;  %v8800_v57 = vadd.f32 %v2766_v61, %v8677_v7 }
 0x362   :  { %6879 = vmatprep.mubr.msk.f32.mxu1 %vm530_vm1, %v2921_v26  ;;  %v8803_v26 = vadd.f32 %v2766_v61, %v8683_v32  ;;  %v2782_v36 = vrot.slane %v2671_v33, %v10606_v28  ;;  %v8808_v22 = vadd.f32 %v2766_v61, %v8695_v23  ;;  %v8811_v56 = vadd.f32 %v2770_v58, %v8677_v7 }
 0x363   :  { %v8814_v44 = vadd.f32 %v2770_v58, %v8683_v32  ;;  %v2690_v21 = vcombine.high %v2688_v12, %v2688_v12  ;;  %v2704_v50 = vrot.slane %v2688_v12, %v10607_v60  ;;  %v2719_v9 = vcombine.high %v2697_v47, %v2697_v47 }
 0x364   :  { %v8819_v41 = vadd.f32 %v2770_v58, %v8695_v23  ;;  %v2721_v33 = vcombine.high %v2711_v11, %v2711_v11  ;;  %v2924_v61 = vmax.f32 %v8710_v30, 0.0  ;;  %v8824_v17 = vadd.f32 %v2774_v43, %v8677_v7 }
 0x365   :  { %6880 = vmatmul.mubr.msk.f32.gmra.mrb[54].mxu1 %vm530_vm1, %v2922_v19  ;;  %v2790_v19 = vrot.slane %v2697_v47, %v10606_v28  ;;  %v2925_v55 = vmax.f32 %v8713_v29, 0.0  ;;  %v8828_v2 = vadd.f32 %v2774_v43, %v8683_v32  ;;  %v8831_v12 = vadd.f32 %v2774_v43, %v8695_v23 }
 0x366   :  { %6882 = vmatprep.mubr.msk.f32.mxu1 %vm530_vm1, %v2923_v8  ;;  %v8834_v8 = vadd.f32 %v2778_v24, %v8677_v7  ;;  %v2794_v58 = vrot.slane %v2711_v11, %v10606_v28  ;;  %v8839_v30 = vadd.f32 %v2778_v24, %v8683_v32  ;;  %v8842_v47 = vadd.f32 %v2778_v24, %v8695_v23 }
 0x367   :  { %v8845_v29 = vadd.f32 %v2782_v36, %v8677_v7  ;;  %v2718_v59 = vrot.slane %v2690_v21, %v10607_v60  ;;  %v8850_v43 = vadd.f32 %v2782_v36, %v8683_v32  ;;  %v2720_v18 = vcombine.high %v2704_v50, %v2704_v50 }
 0x368   :  { %v2798_v11 = vrot.slane %v2719_v9, %v10606_v28  ;;  %v8855_v51 = vadd.f32 %v2782_v36, %v8695_v23  ;;  %v2927_v24 = vmax.f32 %v8728_v20, 0.0  ;;  %v2786_v27 = vrot.slane %v2673_v34, %v10606_v28 }
 0x369   :  { %6883 = vmatmul.mubr.msk.f32.gmra.mrb[56].mxu1 %vm530_vm1, %v2924_v61  ;;  %v2926_v61 = vmax.f32 %v8719_v37, 0.0  ;;  %v8860_v39 = vadd.f32 %v2790_v19, %v8677_v7  ;;  %v2802_v21 = vrot.slane %v2721_v33, %v10606_v28  ;;  %v8868_v9 = vadd.f32 %v2790_v19, %v8695_v23 }
 0x36a   :  { %6885 = vmatprep.mubr.msk.f32.mxu1 %vm530_vm1, %v2925_v55  ;;  %v8863_v55 = vadd.f32 %v2790_v19, %v8683_v32  ;;  %v8871_v37 = vadd.f32 %v2794_v58, %v8677_v7  ;;  %v8874_v20 = vadd.f32 %v2794_v58, %v8683_v32  ;;  %v2806_v34 = vrot.slane %v2704_v50, %v10606_v28 }
 0x36b   :  { %v8879_v36 = vadd.f32 %v2786_v27, %v8677_v7  ;;  %v8882_v33 = vadd.f32 %v2786_v27, %v8683_v32  ;;  %v2928_v19 = vmax.f32 %v8731_v13, 0.0  ;;  %v2810_v60 = vrot.slane %v2718_v59, %v10606_v28 }
 0x36c   :  { %v2929_v0 = vmax.f32 %v8734_v40, 0.0  ;;  %v8891_v53 = vadd.f32 %v2794_v58, %v8695_v23  ;;  %v8895_v50 = vadd.f32 %v2798_v11, %v8677_v7  ;;  %v8904_v13 = vadd.f32 %v2802_v21, %v8677_v7 }
 0x36d   :  { %6886 = vmatmul.mubr.msk.f32.gmra.mrb[58].mxu1 %vm530_vm1, %v2926_v61  ;;  %v8885_v61 = vadd.f32 %v2786_v27, %v8695_v23  ;;  %v8901_v27 = vadd.f32 %v2798_v11, %v8695_v23  ;;  %v2814_v48 = vrot.slane %v2720_v18, %v10606_v28  ;;  %v8909_v40 = vadd.f32 %v2802_v21, %v8683_v32 }
 0x36e   :  { %6888 = vmatprep.mubr.msk.f32.mxu1 %vm530_vm1, %v2927_v24  ;;  %v8898_v24 = vadd.f32 %v2798_v11, %v8683_v32  ;;  %v8912_v58 = vadd.f32 %v2802_v21, %v8695_v23  ;;  %v2930_v54 = vmax.f32 %v8737_v5, 0.0  ;;  %v2722_v11 = vcombine.high %v2718_v59, %v2718_v59 }
 0x36f   :  { %v2931_v45 = vmax.f32 %v8741_v63, 0.0  ;;  %v8920_v6 = vadd.f32 %v2806_v34, %v8683_v32  ;;  %v8924_v18 = vadd.f32 %v2806_v34, %v8695_v23  ;;  %v8930_v21 = vadd.f32 %v2810_v60, %v8683_v32 }
 0x370   :  { %v8933_v38 = vadd.f32 %v2810_v60, %v8695_v23  ;;  %v8937_v59 = vadd.f32 %v2814_v48, %v8677_v7  ;;  %v8940_v5 = vadd.f32 %v2814_v48, %v8683_v32  ;;  %v2932_v63 = vmax.f32 %v8744_v62, 0.0 }
 0x371   :  { %6889 = vmatmul.mubr.msk.f32.gmra.mrb[60].mxu1 %vm530_vm1, %v2928_v19  ;;  %v8915_v19 = vadd.f32 %v2806_v34, %v8677_v7  ;;  %v2933_v34 = vmax.f32 %v8747_v16, 0.0  ;;  %v2818_v1 = vrot.slane %v2722_v11, %v10606_v28  ;;  %v2935_v62 = vmax.f32 %v8760_v46, 0.0 }
 0x372   :  { %6891 = vmatprep.mubr.msk.f32.mxu1 %vm530_vm1, %v2929_v0  ;;  %v8927_v0 = vadd.f32 %v2810_v60, %v8677_v7  ;;  %v2936_v16 = vmax.f32 %v8763_v10, 0.0  ;;  %v2937_v11 = vmax.f32 %v8766_v3, 0.0  ;;  %v2940_v46 = vmax.f32 %v8777_v25, 0.0 }
 0x373   :  { %v8954_v60 = vadd.f32 %v2818_v1, %v8683_v32  ;;  %v8957_v42 = vadd.f32 %v2818_v1, %v8695_v23  ;;  %v2941_v32 = vmax.f32 %v8780_v14, 0.0  ;;  %v2942_v10 = vmax.f32 %v8788_v52, 0.0 }
 0x374   :  { %v2945_v3 = vmax.f32 %v8800_v57, 0.0  ;;  %v2948_v25 = vmax.f32 %v8811_v56, 0.0  ;;  %v2949_v14 = vmax.f32 %v8814_v44, 0.0  ;;  %v2951_v52 = vmax.f32 %v8824_v17, 0.0 }
 0x375   :  { %6892 = vmatmul.mubr.msk.f32.gmra.mrb[62].mxu1 %vm530_vm1, %v2930_v54  ;;  %v8943_v54 = vadd.f32 %v2814_v48, %v8695_v23  ;;  %v2934_v48 = vmax.f32 %v8755_v49, 0.0  ;;  %v2943_v23 = vmax.f32 %v8794_v4, 0.0  ;;  %v2944_v49 = vmax.f32 %v8797_v15, 0.0 }
 0x376   :  { %6894 = vmatprep.mubr.msk.f32.mxu1 %vm530_vm1, %v2931_v45  ;;  %v8951_v45 = vadd.f32 %v2818_v1, %v8677_v7  ;;  %v2938_v7 = vmax.f32 %v8769_v31, 0.0  ;;  %v2939_v1 = vmax.f32 %v8774_v35, 0.0  ;;  %v2946_v31 = vmax.f32 %v8803_v26, 0.0 }
 0x377   :  { %v2947_v35 = vmax.f32 %v8808_v22, 0.0  ;;  %v2950_v15 = vmax.f32 %v8819_v41, 0.0  ;;  %v2952_v4 = vmax.f32 %v8828_v2, 0.0  ;;  %v2953_v57 = vmax.f32 %v8831_v12, 0.0 }
 0x378   :  { %v2954_v26 = vmax.f32 %v8834_v8, 0.0  ;;  %v2955_v22 = vmax.f32 %v8839_v30, 0.0  ;;  %v2956_v41 = vmax.f32 %v8842_v47, 0.0  ;;  %v2957_v17 = vmax.f32 %v8845_v29, 0.0 }
 0x379   :  { %6895 = vmatmul.mubr.msk.f32.gmra.mrb[64].mxu1 %vm530_vm1, %v2932_v63  ;;  %v2958_v2 = vmax.f32 %v8850_v43, 0.0  ;;  %v2959_v56 = vmax.f32 %v8855_v51, 0.0  ;;  %v2960_v44 = vmax.f32 %v8879_v36, 0.0  ;;  %v2961_v12 = vmax.f32 %v8882_v33, 0.0 }
 0x37a   :  { %6897 = vmatprep.mubr.msk.f32.mxu1 %vm530_vm1, %v2933_v34  ;;  %v2962_v8 = vmax.f32 %v8885_v61, 0.0  ;;  %v2963_v30 = vmax.f32 %v8860_v39, 0.0  ;;  %v2964_v51 = vmax.f32 %v8863_v55, 0.0  ;;  %v2965_v47 = vmax.f32 %v8868_v9, 0.0 }
 0x37b   :  { %v2966_v29 = vmax.f32 %v8871_v37, 0.0  ;;  %v2967_v43 = vmax.f32 %v8874_v20, 0.0  ;;  %v2968_v39 = vmax.f32 %v8891_v53, 0.0  ;;  %v2969_v36 = vmax.f32 %v8895_v50, 0.0 }
 0x37c   :  { %v2970_v55 = vmax.f32 %v8898_v24, 0.0  ;;  %v2971_v9 = vmax.f32 %v8901_v27, 0.0  ;;  %v2972_v37 = vmax.f32 %v8904_v13, 0.0  ;;  %v2973_v20 = vmax.f32 %v8909_v40, 0.0 }
 0x37d   :  { %6898 = vmatmul.mubr.msk.f32.gmra.mrb[66].mxu1 %vm530_vm1, %v2934_v48  ;;  %v2974_v53 = vmax.f32 %v8912_v58, 0.0  ;;  %v2975_v33 = vmax.f32 %v8915_v19, 0.0  ;;  %v2976_v61 = vmax.f32 %v8920_v6, 0.0  ;;  %v2977_v50 = vmax.f32 %v8924_v18, 0.0 }
 0x37e   :  { %6900 = vmatprep.mubr.msk.f32.mxu1 %vm530_vm1, %v2935_v62  ;;  %v2978_v24 = vmax.f32 %v8927_v0, 0.0  ;;  %v2979_v27 = vmax.f32 %v8930_v21, 0.0  ;;  %v2980_v13 = vmax.f32 %v8933_v38, 0.0  ;;  %v2981_v40 = vmax.f32 %v8937_v59, 0.0  ;;  %v6366_v21 = vld [vmem:[%s10243_s3 + $0x10] sm:$0xff]  ;;  %v10609_v59 = vld [vmem:[#allocation12_spill] sm:$0xff] }
 0x37f   :  { %v2982_v6 = vmax.f32 %v8940_v5, 0.0  ;;  %v2983_v58 = vmax.f32 %v8943_v54, 0.0  ;;  %v2984_v19 = vmax.f32 %v8951_v45, 0.0  ;;  %v2985_v18 = vmax.f32 %v8954_v60, 0.0  ;;  %6979 = vmatpush3.msra.mxu0 %v6366_v21  ;;  %v10610_v5 = vld [vmem:[#allocation94_spill] sm:$0xff]  ;;  %v10611_v60 = vld [vmem:[#allocation21_spill] sm:$0xff] }
 0x380   :  { %v2986_v38 = vmax.f32 %v8957_v42, 0.0  ;;  %v10608_v0 = vmov 0.0   ;;  %v9073_v54 = vrot.slane %v10610_v5, %v10609_v59  ;;  %vm10612_vm12 = vcmp.gt.f32.partialorder %v10611_v60, 0.0 }
 0x381   :  { %6901 = vmatmul.mubr.msk.f32.gmra.mrb[68].mxu1 %vm530_vm1, %v2936_v16  ;;  %6989 = vmatprep.subr.mxu0 %v10608_v0  ;;  %v10613_v16 = vld [vmem:[#allocation19_spill] sm:$0xff] }
 0x382   :  { %6903 = vmatprep.mubr.msk.f32.mxu1 %vm530_vm1, %v2937_v11  ;;  %vm10614_vm5 = vcmp.gt.f32.partialorder %v10613_v16, 0.0 }
 0x385   :  { %6904 = vmatmul.mubr.msk.f32.gmra.mrb[70].mxu1 %vm530_vm1, %v2938_v7 }
 0x386   :  { %6906 = vmatprep.mubr.msk.f32.mxu1 %vm530_vm1, %v2939_v1 }
 0x389   :  { %6907 = vmatmul.mubr.msk.f32.gmra.mrb[72].mxu1 %vm530_vm1, %v2940_v46 }
 0x38a   :  { %6909 = vmatprep.mubr.msk.f32.mxu1 %vm530_vm1, %v2941_v32 }
 0x38d   :  { %6910 = vmatmul.mubr.msk.f32.gmra.mrb[74].mxu1 %vm530_vm1, %v2942_v10 }
 0x38e   :  { %6912 = vmatprep.mubr.msk.f32.mxu1 %vm530_vm1, %v2943_v23 }
 0x391   :  { %6913 = vmatmul.mubr.msk.f32.gmra.mrb[76].mxu1 %vm530_vm1, %v2944_v49  ;;  %v10615_v49 = vld [vmem:[#allocation25_spill] sm:$0xff] }
 0x392   :  { %6915 = vmatprep.mubr.msk.f32.mxu1 %vm530_vm1, %v2945_v3  ;;  %vm10616_vm13 = vcmp.gt.f32.partialorder %v10615_v49, 0.0 }
 0x395   :  { %6916 = vmatmul.mubr.msk.f32.gmra.mrb[78].mxu1 %vm530_vm1, %v2946_v31 }
 0x396   :  { %6918 = vmatprep.mubr.msk.f32.mxu1 %vm530_vm1, %v2947_v35 }
 0x399   :  { %6919 = vmatmul.mubr.msk.f32.gmra.mrb[80].mxu1 %vm530_vm1, %v2948_v25 }
 0x39a   :  { %6921 = vmatprep.mubr.msk.f32.mxu1 %vm530_vm1, %v2949_v14 }
 0x39d   :  { %6922 = vmatmul.mubr.msk.f32.gmra.mrb[82].mxu1 %vm530_vm1, %v2950_v15  ;;  %v10617_v15 = vld [vmem:[#allocation16_spill] sm:$0xff] }
 0x39e   :  { %6924 = vmatprep.mubr.msk.f32.mxu1 %vm530_vm1, %v2951_v52 }
 0x3a1   :  { %6925 = vmatmul.mubr.msk.f32.gmra.mrb[84].mxu1 %vm530_vm1, %v2952_v4 }
 0x3a2   :  { %6927 = vmatprep.mubr.msk.f32.mxu1 %vm530_vm1, %v2953_v57 }
 0x3a5   :  { %6928 = vmatmul.mubr.msk.f32.gmra.mrb[86].mxu1 %vm530_vm1, %v2954_v26 }
 0x3a6   :  { %6930 = vmatprep.mubr.msk.f32.mxu1 %vm530_vm1, %v2955_v22  ;;  %v10619_v22 = vld [vmem:[#allocation20_spill] sm:$0xff] }
 0x3a9   :  { %6931 = vmatmul.mubr.msk.f32.gmra.mrb[88].mxu1 %vm530_vm1, %v2956_v41 }
 0x3aa   :  { %6933 = vmatprep.mubr.msk.f32.mxu1 %vm530_vm1, %v2957_v17  ;;  %v10621_v17 = vld [vmem:[#allocation17_spill] sm:$0xff] }
 0x3ab   :  { %vm10622_vm4 = vcmp.gt.f32.partialorder %v10621_v17, 0.0 }
 0x3ad   :  { %6934 = vmatmul.mubr.msk.f32.gmra.mrb[90].mxu1 %vm530_vm1, %v2958_v2 }
 0x3ae   :  { %6936 = vmatprep.mubr.msk.f32.mxu1 %vm530_vm1, %v2959_v56 }
 0x3b1   :  { %6937 = vmatmul.mubr.msk.f32.gmra.mrb[92].mxu1 %vm530_vm1, %v2960_v44 }
 0x3b2   :  { %6939 = vmatprep.mubr.msk.f32.mxu1 %vm530_vm1, %v2961_v12 }
 0x3b5   :  { %6940 = vmatmul.mubr.msk.f32.gmra.mrb[94].mxu1 %vm530_vm1, %v2962_v8 }
 0x3b6   :  { %6942 = vmatprep.mubr.msk.f32.mxu1 %vm530_vm1, %v2963_v30 }
 0x3b9   :  { %6943 = vmatmul.mubr.msk.f32.gmra.mrb[96].mxu1 %vm530_vm1, %v2964_v51 }
 0x3ba   :  { %6945 = vmatprep.mubr.msk.f32.mxu1 %vm530_vm1, %v2965_v47 }
 0x3bd   :  { %6946 = vmatmul.mubr.msk.f32.gmra.mrb[98].mxu1 %vm530_vm1, %v2966_v29 }
 0x3be   :  { %6948 = vmatprep.mubr.msk.f32.mxu1 %vm530_vm1, %v2967_v43 }
 0x3c1   :  { %6949 = vmatmul.mubr.msk.f32.gmra.mrb[100].mxu1 %vm530_vm1, %v2968_v39  ;;  %v10623_v39 = vld [vmem:[#allocation18_spill] sm:$0xff] }
 0x3c2   :  { %6951 = vmatprep.mubr.msk.f32.mxu1 %vm530_vm1, %v2969_v36 }
 0x3c5   :  { %6952 = vmatmul.mubr.msk.f32.gmra.mrb[102].mxu1 %vm530_vm1, %v2970_v55 }
 0x3c6   :  { %6954 = vmatprep.mubr.msk.f32.mxu1 %vm530_vm1, %v2971_v9 }
 0x3c9   :  { %6955 = vmatmul.mubr.msk.f32.gmra.mrb[104].mxu1 %vm530_vm1, %v2972_v37 }
 0x3ca   :  { %6957 = vmatprep.mubr.msk.f32.mxu1 %vm530_vm1, %v2973_v20  ;;  %v10625_v20 = vld [vmem:[#allocation23_spill] sm:$0xff] }
 0x3cd   :  { %6958 = vmatmul.mubr.msk.f32.gmra.mrb[106].mxu1 %vm530_vm1, %v2974_v53 }
 0x3ce   :  { %6960 = vmatprep.mubr.msk.f32.mxu1 %vm530_vm1, %v2975_v33 }
 0x3d1   :  { %6961 = vmatmul.mubr.msk.f32.gmra.mrb[108].mxu1 %vm530_vm1, %v2976_v61 }
 0x3d2   :  { %6963 = vmatprep.mubr.msk.f32.mxu1 %vm530_vm1, %v2977_v50 }
 0x3d5   :  { %6964 = vmatmul.mubr.msk.f32.gmra.mrb[110].mxu1 %vm530_vm1, %v2978_v24 }
 0x3d6   :  { %6966 = vmatprep.mubr.msk.f32.mxu1 %vm530_vm1, %v2979_v27 }
 0x3d9   :  { %6967 = vmatmul.mubr.msk.f32.gmra.mrb[112].mxu1 %vm530_vm1, %v2980_v13 }
 0x3da   :  { %6969 = vmatprep.mubr.msk.f32.mxu1 %vm530_vm1, %v2981_v40 }
 0x3dd   :  { %6970 = vmatmul.mubr.msk.f32.gmra.mrb[114].mxu1 %vm530_vm1, %v2982_v6 }
 0x3de   :  { %6972 = vmatprep.mubr.msk.f32.mxu1 %vm530_vm1, %v2983_v58 }
 0x3e1   :  { %6973 = vmatmul.mubr.msk.f32.gmra.mrb[116].mxu1 %vm530_vm1, %v2984_v19  ;;  %v10627_v19 = vld [vmem:[#allocation29_spill] sm:$0xff] }
 0x3e2   :  { %6975 = vmatprep.mubr.msk.f32.mxu1 %vm530_vm1, %v2985_v18 }
 0x3e5   :  { %6976 = vmatmul.mubr.msk.f32.gmra.mrb[118].mxu1 %vm530_vm1, %v2986_v38 }
 0x3e6   :  { %7116 = vmatprep.mubr.msk.f32.mxu1 %vm7247_vm0, %v10608_v0 }
 0x42b   :  { %v6872_v63 = vpop.f32.mrb[48].mxu1 }
 0x42c   :  { %v3633_v34 = vadd.f32 %v6872_v63, %v9073_v54  ;;  %v3269_v42 = vpop.f32.mrb[49].mxu1 }
 0x42d   :  { %v3632_v45 = vadd.f32 %v9073_v54, %v3269_v42  ;;  %v10629_v42 = vld [vmem:[#allocation27_spill] sm:$0xff] }
 0x42e   :  { %v3705_v48 = vsel %vm10612_vm12, %v3633_v34, -1e+30  ;;  %vm10618_vm12 = vcmp.gt.f32.partialorder %v10617_v15, 0.0 }
 0x42f   :  { %v3777_v62 = vsel %vm530_vm1, %v3705_v48, -inf  ;;  %v3704_v11 = vsel %vm10614_vm5, %v3632_v45, -1e+30  ;;  %vm10620_vm5 = vcmp.gt.f32.partialorder %v10619_v22, 0.0 }
 0x430   :  { %v6875_v7 = vpop.f32.mrb[50].mxu1  ;;  %v3776_v1 = vsel %vm530_vm1, %v3704_v11, -inf }
 0x431   :  { %v3279_v46 = vpop.f32.mrb[51].mxu1  ;;  %v3778_v32 = vmax.f32 %v3776_v1, %v3777_v62  ;;  %v3635_v10 = vadd.f32 %v6875_v7, %v9073_v54 }
 0x432   :  { %v3634_v23 = vadd.f32 %v9073_v54, %v3279_v46  ;;  %v10631_v46 = vld [vmem:[#allocation26_spill] sm:$0xff] }
 0x433   :  { %v3707_v52 = vsel %vm10618_vm12, %v3635_v10, -1e+30  ;;  %vm10628_vm12 = vcmp.gt.f32.partialorder %v10627_v19, 0.0  ;;  %v10633_v10 = vld [vmem:[#allocation22_spill] sm:$0xff] }
 0x434   :  { %v3706_v3 = vsel %vm10616_vm13, %v3634_v23, -1e+30  ;;  %v6878_v31 = vpop.f32.mrb[52].mxu1  ;;  %v3787_v44 = vsel %vm530_vm1, %v3707_v52, -inf  ;;  %vm10624_vm13 = vcmp.gt.f32.partialorder %v10623_v39, 0.0 }
 0x435   :  { %v3779_v35 = vsel %vm530_vm1, %v3706_v3, -inf  ;;  %v3637_v25 = vadd.f32 %v6878_v31, %v9073_v54  ;;  %v3289_v14 = vpop.f32.mrb[53].mxu1 }
 0x436   :  { %v3780_v4 = vmax.f32 %v3778_v32, %v3779_v35  ;;  %v3636_v57 = vadd.f32 %v9073_v54, %v3289_v14 }
 0x437   :  { %v3709_v41 = vsel %vm10620_vm5, %v3637_v25, -1e+30  ;;  %vm10630_vm5 = vcmp.gt.f32.partialorder %v10629_v42, 0.0 }
 0x438   :  { %v3781_v26 = vrot.slane %v3780_v4, 4  ;;  %v3708_v2 = vsel %vm10622_vm4, %v3636_v57, -1e+30  ;;  %v6881_v56 = vpop.f32.mrb[54].mxu1  ;;  %v3790_v43 = vsel %vm530_vm1, %v3709_v41, -inf  ;;  %vm10626_vm4 = vcmp.gt.f32.partialorder %v10625_v20, 0.0 }
 0x439   :  { %v3788_v12 = vsel %vm530_vm1, %v3708_v2, -inf  ;;  %v3639_v8 = vadd.f32 %v6881_v56, %v9073_v54  ;;  %v3299_v30 = vpop.f32.mrb[55].mxu1  ;;  %v10635_v56 = vld [vmem:[#allocation31_spill] sm:$0xff] }
 0x43a   :  { %v3782_v51 = vmax.f32 %v3780_v4, %v3781_v26  ;;  %v3789_v47 = vmax.f32 %v3787_v44, %v3788_v12  ;;  %v3638_v29 = vadd.f32 %v9073_v54, %v3299_v30 }
 0x43b   :  { %v3711_v36 = vsel %vm10624_vm13, %v3639_v8, -1e+30  ;;  %vm10632_vm13 = vcmp.gt.f32.partialorder %v10631_v46, 0.0 }
 0x43c   :  { %v3783_v55 = vrot.slane %v3782_v51, 2  ;;  %v3791_v9 = vmax.f32 %v3789_v47, %v3790_v43  ;;  %v3799_v37 = vsel %vm530_vm1, %v3711_v36, -inf  ;;  %v3710_v53 = vsel %vm10626_vm4, %v3638_v29, -1e+30  ;;  %v6884_v33 = vpop.f32.mrb[56].mxu1  ;;  %v10637_v29 = vld [vmem:[#allocation24_spill] sm:$0xff] }
 0x43d   :  { %v3798_v61 = vsel %vm530_vm1, %v3710_v53, -inf  ;;  %v3309_v50 = vpop.f32.mrb[57].mxu1  ;;  %v3641_v13 = vadd.f32 %v6884_v33, %v9073_v54  ;;  %vm10634_vm4 = vcmp.gt.f32.partialorder %v10633_v10, 0.0 }
 0x43e   :  { %v3792_v24 = vrot.slane %v3791_v9, 4  ;;  %v3800_v27 = vmax.f32 %v3798_v61, %v3799_v37  ;;  %v3640_v40 = vadd.f32 %v9073_v54, %v3309_v50  ;;  %v3784_v6 = vmax.f32 %v3782_v51, %v3783_v55 }
 0x43f   :  { %v3713_v45 = vsel %vm10630_vm5, %v3641_v13, -1e+30  ;;  %vm10638_vm5 = vcmp.gt.f32.partialorder %v10637_v29, 0.0 }
 0x440   :  { %v3793_v58 = vmax.f32 %v3791_v9, %v3792_v24  ;;  %v3712_v18 = vsel %vm10628_vm12, %v3640_v40, -1e+30  ;;  %v6887_v38 = vpop.f32.mrb[58].mxu1  ;;  %v3785_v11 = vrot.slane %v3784_v6, 1  ;;  %v3809_v31 = vsel %vm530_vm1, %v3713_v45, -inf  ;;  %v10639_v40 = vld [vmem:[#allocation33_spill] sm:$0xff] }
 0x441   :  { %v3801_v21 = vsel %vm530_vm1, %v3712_v18, -inf  ;;  %v3643_v5 = vadd.f32 %v6887_v38, %v9073_v54  ;;  %v3319_v63 = vpop.f32.mrb[59].mxu1  ;;  %vm10636_vm12 = vcmp.gt.f32.partialorder %v10635_v56, 0.0 }
 0x442   :  { %v3794_v34 = vrot.slane %v3793_v58, 2  ;;  %v3802_v48 = vmax.f32 %v3800_v27, %v3801_v21  ;;  %v3642_v62 = vadd.f32 %v9073_v54, %v3319_v63  ;;  %v3786_v41 = vmax.f32 %v3784_v6, %v3785_v11 }
 0x443   :  { %v3715_v32 = vsel %vm10632_vm13, %v3643_v5, -1e+30  ;;  %vm10640_vm13 = vcmp.gt.f32.partialorder %v10639_v40, 0.0 }
 0x444   :  { %v3795_v7 = vmax.f32 %v3793_v58, %v3794_v34  ;;  %v3803_v1 = vrot.slane %v3802_v48, 4  ;;  %v3714_v23 = vsel %vm10634_vm4, %v3642_v62, -1e+30  ;;  %v6890_v3 = vpop.f32.mrb[60].mxu1  ;;  %v3812_v2 = vsel %vm530_vm1, %v3715_v32, -inf  ;;  %v10641_v58 = vld [vmem:[#allocation39_spill] sm:$0xff] }
 0x445   :  { %v3810_v35 = vsel %vm530_vm1, %v3714_v23, -inf  ;;  %v3645_v25 = vadd.f32 %v6890_v3, %v9073_v54  ;;  %v3329_v14 = vpop.f32.mrb[61].mxu1  ;;  %vm10642_vm4 = vcmp.gt.f32.partialorder %v10641_v58, 0.0  ;;  %v10645_v32 = vld [vmem:[#allocation28_spill] sm:$0xff] }
 0x446   :  { %v3796_v52 = vrot.slane %v3795_v7, 1  ;;  %v3804_v4 = vmax.f32 %v3802_v48, %v3803_v1  ;;  %v3811_v57 = vmax.f32 %v3809_v31, %v3810_v35  ;;  %v3644_v26 = vadd.f32 %v9073_v54, %v3329_v14 }
 0x447   :  { %v3717_v44 = vsel %vm10636_vm12, %v3645_v25, -1e+30 }
 0x448   :  { %v3797_v12 = vmax.f32 %v3795_v7, %v3796_v52  ;;  %v3805_v8 = vrot.slane %v3804_v4, 2  ;;  %v3813_v30 = vmax.f32 %v3811_v57, %v3812_v2  ;;  %v3821_v51 = vsel %vm530_vm1, %v3717_v44, -inf  ;;  %v6893_v47 = vpop.f32.mrb[62].mxu1  ;;  %v10643_v7 = vld [vmem:[#allocation38_spill] sm:$0xff]  ;;  %v10647_v44 = vld [vmem:[#allocation41_spill] sm:$0xff] }
 0x449   :  { %v3716_v43 = vsel %vm10638_vm5, %v3644_v26, -1e+30  ;;  %v3647_v36 = vadd.f32 %v6893_v47, %v9073_v54  ;;  %v3339_v55 = vpop.f32.mrb[63].mxu1  ;;  %vm10644_vm12 = vcmp.gt.f32.partialorder %v10643_v7, 0.0  ;;  %vm10646_vm5 = vcmp.gt.f32.partialorder %v10645_v32, 0.0  ;;  %v10649_v47 = vld [vmem:[#allocation34_spill] sm:$0xff] }
 0x44a   :  { %v4064_v9 = vsel %vm2341_vm10, %v3797_v12, %v3786_v41  ;;  %v3806_v37 = vmax.f32 %v3804_v4, %v3805_v8  ;;  %v3814_v53 = vrot.slane %v3813_v30, 4  ;;  %v3820_v33 = vsel %vm530_vm1, %v3716_v43, -inf }
 0x44b   :  { %v3822_v61 = vmax.f32 %v3820_v33, %v3821_v51  ;;  %v3646_v50 = vadd.f32 %v9073_v54, %v3339_v55  ;;  %v3719_v6 = vsel %vm10640_vm13, %v3647_v36, -1e+30  ;;  %vm10648_vm13 = vcmp.gt.f32.partialorder %v10647_v44, 0.0 }
 0x44c   :  { %v3807_v24 = vrot.slane %v3806_v37, 1  ;;  %v3815_v27 = vmax.f32 %v3813_v30, %v3814_v53  ;;  %v6896_v13 = vpop.f32.mrb[64].mxu1  ;;  %v3831_v31 = vsel %vm530_vm1, %v3719_v6, -inf  ;;  %v10652_v6 = vld [vmem:[#allocation51_spill] sm:$0xff] }
 0x44d   :  { %v3718_v18 = vsel %vm10642_vm4, %v3646_v50, -1e+30  ;;  %v3649_v38 = vadd.f32 %v6896_v13, %v9073_v54  ;;  %v3349_v21 = vpop.f32.mrb[65].mxu1  ;;  %vm10650_vm4 = vcmp.gt.f32.partialorder %v10649_v47, 0.0 }
 0x44e   :  { %v3808_v5 = vmax.f32 %v3806_v37, %v3807_v24  ;;  %v3816_v63 = vrot.slane %v3815_v27, 2  ;;  %v3823_v34 = vsel %vm530_vm1, %v3718_v18, -inf  ;;  %v3648_v45 = vadd.f32 %v9073_v54, %v3349_v21 }
 0x44f   :  { %v3824_v48 = vmax.f32 %v3822_v61, %v3823_v34  ;;  %v3721_v1 = vsel %vm10644_vm12, %v3649_v38, -1e+30  ;;  %vm10651_vm12 = vcmask 1043459  }
 0x450   :  { %v4065_v62 = vsel %vm2343_vm7, %v3808_v5, %v4064_v9  ;;  %v3817_v11 = vmax.f32 %v3815_v27, %v3816_v63  ;;  %v3720_v23 = vsel %vm10646_vm5, %v3648_v45, -1e+30  ;;  %v6899_v3 = vpop.f32.mrb[66].mxu1  ;;  %v3834_v2 = vsel %vm530_vm1, %v3721_v1, -inf }
 0x451   :  { %v3825_v35 = vrot.slane %v3824_v48, 4  ;;  %v3832_v25 = vsel %vm530_vm1, %v3720_v23, -inf  ;;  %v3651_v14 = vadd.f32 %v6899_v3, %v9073_v54  ;;  %v3359_v52 = vpop.f32.mrb[67].mxu1  ;;  %vm10653_vm5 = vcmp.gt.f32.partialorder %v10652_v6, 0.0 }
 0x452   :  { %v3818_v4 = vrot.slane %v3817_v11, 1  ;;  %v3833_v57 = vmax.f32 %v3831_v31, %v3832_v25  ;;  %v3650_v26 = vadd.f32 %v9073_v54, %v3359_v52 }
 0x453   :  { %v3826_v41 = vmax.f32 %v3824_v48, %v3825_v35  ;;  %v3723_v12 = vsel %vm10648_vm13, %v3651_v14, -1e+30  ;;  %v10654_v48 = vld [vmem:[#allocation45_spill] sm:$0xff]  ;;  %v10656_v35 = vld [vmem:[#allocation55_spill] sm:$0xff]  ;;  %v10658_v14 = vld [vmem:[#allocation40_spill] sm:$0xff] }
 0x454   :  { %v3819_v8 = vmax.f32 %v3817_v11, %v3818_v4  ;;  %v3835_v30 = vmax.f32 %v3833_v57, %v3834_v2  ;;  %v3843_v51 = vsel %vm530_vm1, %v3723_v12, -inf  ;;  %v3722_v43 = vsel %vm10650_vm4, %v3650_v26, -1e+30  ;;  %v6902_v36 = vpop.f32.mrb[68].mxu1 }
 0x455   :  { %v3827_v55 = vrot.slane %v3826_v41, 2  ;;  %v3842_v9 = vsel %vm530_vm1, %v3722_v43, -inf  ;;  %v3653_v37 = vadd.f32 %v6902_v36, %v9073_v54  ;;  %v3369_v53 = vpop.f32.mrb[69].mxu1  ;;  %vm10655_vm13 = vcmp.gt.f32.partialorder %v10654_v48, 0.0 }
 0x456   :  { %v4066_v33 = vsel %vm10651_vm12, %v3819_v8, %v4065_v62  ;;  %v3836_v61 = vrot.slane %v3835_v30, 4  ;;  %v3844_v50 = vmax.f32 %v3842_v9, %v3843_v51  ;;  %v3652_v24 = vadd.f32 %v9073_v54, %v3369_v53 }
 0x457   :  { %v3828_v27 = vmax.f32 %v3826_v41, %v3827_v55  ;;  %v3725_v62 = vsel %vm10655_vm13, %v3653_v37, -1e+30  ;;  %vm10657_vm4 = vcmp.gt.f32.partialorder %v10656_v35, 0.0  ;;  %vm10659_vm12 = vcmp.gt.f32.partialorder %v10658_v14, 0.0  ;;  %v10661_v55 = vld [vmem:[#allocation30_spill] sm:$0xff] }
 0x458   :  { %v3837_v13 = vmax.f32 %v3835_v30, %v3836_v61  ;;  %v3724_v18 = vsel %vm10653_vm5, %v3652_v24, -1e+30  ;;  %v6905_v38 = vpop.f32.mrb[70].mxu1  ;;  %vm10660_vm5 = vcmask 1044484   ;;  %v3853_v26 = vsel %vm530_vm1, %v3725_v62, -inf  ;;  %v10663_v24 = vld [vmem:[#allocation35_spill] sm:$0xff] }
 0x459   :  { %v3829_v21 = vrot.slane %v3828_v27, 1  ;;  %v3845_v5 = vsel %vm530_vm1, %v3724_v18, -inf  ;;  %v3655_v63 = vadd.f32 %v6905_v38, %v9073_v54  ;;  %v3379_v34 = vpop.f32.mrb[71].mxu1  ;;  %vm10662_vm13 = vcmp.gt.f32.partialorder %v10661_v55, 0.0 }
 0x45a   :  { %v3838_v45 = vrot.slane %v3837_v13, 2  ;;  %v3846_v11 = vmax.f32 %v3844_v50, %v3845_v5  ;;  %v3654_v1 = vadd.f32 %v9073_v54, %v3379_v34 }
 0x45b   :  { %v3830_v23 = vmax.f32 %v3828_v27, %v3829_v21  ;;  %v3727_v25 = vsel %vm10657_vm4, %v3655_v63, -1e+30  ;;  %vm10664_vm4 = vcmp.gt.f32.partialorder %v10663_v24, 0.0 }
 0x45c   :  { %v3839_v3 = vmax.f32 %v3837_v13, %v3838_v45  ;;  %v3847_v31 = vrot.slane %v3846_v11, 4  ;;  %v3726_v52 = vsel %vm10659_vm12, %v3654_v1, -1e+30  ;;  %v6908_v4 = vpop.f32.mrb[72].mxu1  ;;  %v3856_v36 = vsel %vm530_vm1, %v3727_v25, -inf  ;;  %v10666_v1 = vld [vmem:[#allocation47_spill] sm:$0xff] }
 0x45d   :  { %v4067_v57 = vsel %vm10660_vm5, %v3830_v23, %v4066_v33  ;;  %v3854_v41 = vsel %vm530_vm1, %v3726_v52, -inf  ;;  %v3657_v2 = vadd.f32 %v6908_v4, %v9073_v54  ;;  %v3389_v12 = vpop.f32.mrb[73].mxu1  ;;  %vm10665_vm12 = vcmask 1045509  }
 0x45e   :  { %v3840_v8 = vrot.slane %v3839_v3, 1  ;;  %v3848_v30 = vmax.f32 %v3846_v11, %v3847_v31  ;;  %v3855_v51 = vmax.f32 %v3853_v26, %v3854_v41  ;;  %v3656_v43 = vadd.f32 %v9073_v54, %v3389_v12  ;;  %v10668_v31 = vld [vmem:[#allocation37_spill] sm:$0xff] }
 0x45f   :  { %v3729_v9 = vsel %vm10662_vm13, %v3657_v2, -1e+30  ;;  %vm10667_vm5 = vcmp.gt.f32.partialorder %v10666_v1, 0.0  ;;  %vm10669_vm13 = vcmp.gt.f32.partialorder %v10668_v31, 0.0 }
 0x460   :  { %v3841_v37 = vmax.f32 %v3839_v3, %v3840_v8  ;;  %v3849_v53 = vrot.slane %v3848_v30, 2  ;;  %v3857_v33 = vmax.f32 %v3855_v51, %v3856_v36  ;;  %v3865_v61 = vsel %vm530_vm1, %v3729_v9, -inf  ;;  %v6911_v50 = vpop.f32.mrb[74].mxu1  ;;  %v10670_v51 = vld [vmem:[#allocation42_spill] sm:$0xff]  ;;  %v10672_v36 = vld [vmem:[#allocation32_spill] sm:$0xff] }
 0x461   :  { %v3728_v27 = vsel %vm10664_vm4, %v3656_v43, -1e+30  ;;  %v3659_v13 = vadd.f32 %v6911_v50, %v9073_v54  ;;  %v3399_v18 = vpop.f32.mrb[75].mxu1  ;;  %vm10671_vm4 = vcmp.gt.f32.partialorder %v10670_v51, 0.0 }
 0x462   :  { %v3850_v38 = vmax.f32 %v3848_v30, %v3849_v53  ;;  %v3858_v21 = vrot.slane %v3857_v33, 4  ;;  %v3864_v5 = vsel %vm530_vm1, %v3728_v27, -inf  ;;  %v3658_v63 = vadd.f32 %v9073_v54, %v3399_v18 }
 0x463   :  { %v3866_v34 = vmax.f32 %v3864_v5, %v3865_v61  ;;  %v4068_v45 = vsel %vm10665_vm12, %v3841_v37, %v4067_v57  ;;  %v3731_v25 = vsel %vm10669_vm13, %v3659_v13, -1e+30  ;;  %vm10673_vm12 = vcmp.gt.f32.partialorder %v10672_v36, 0.0 }
 0x464   :  { %v3851_v62 = vrot.slane %v3850_v38, 1  ;;  %v3859_v11 = vmax.f32 %v3857_v33, %v3858_v21  ;;  %v3730_v23 = vsel %vm10667_vm5, %v3658_v63, -1e+30  ;;  %v6914_v3 = vpop.f32.mrb[76].mxu1  ;;  %v3875_v53 = vsel %vm530_vm1, %v3731_v25, -inf }
 0x465   :  { %v3867_v52 = vsel %vm530_vm1, %v3730_v23, -inf  ;;  %v3661_v4 = vadd.f32 %v6914_v3, %v9073_v54  ;;  %v3409_v26 = vpop.f32.mrb[77].mxu1 }
 0x466   :  { %v3852_v41 = vmax.f32 %v3850_v38, %v3851_v62  ;;  %v3860_v2 = vrot.slane %v3859_v11, 2  ;;  %v3868_v12 = vmax.f32 %v3866_v34, %v3867_v52  ;;  %v3660_v8 = vadd.f32 %v9073_v54, %v3409_v26  ;;  %v10675_v52 = vld [vmem:[#allocation36_spill] sm:$0xff] }
 0x467   :  { %v3733_v43 = vsel %vm10671_vm4, %v3661_v4, -1e+30  ;;  %vm10676_vm5 = vcmp.gt.f32.partialorder %v10675_v52, 0.0 }
 0x468   :  { %v3861_v57 = vmax.f32 %v3859_v11, %v3860_v2  ;;  %v3869_v30 = vrot.slane %v3868_v12, 4  ;;  %v3732_v9 = vsel %vm10673_vm12, %v3660_v8, -1e+30  ;;  %v6917_v37 = vpop.f32.mrb[78].mxu1  ;;  %v4069_v27 = vsel %vm2351_vm3, %v3852_v41, %v4068_v45 }
 0x469   :  { %v3876_v33 = vsel %vm530_vm1, %v3732_v9, -inf  ;;  %v3663_v61 = vadd.f32 %v6917_v37, %v9073_v54  ;;  %v3419_v50 = vpop.f32.mrb[79].mxu1  ;;  %v3878_v5 = vsel %vm530_vm1, %v3733_v43, -inf  ;;  %v7168_v43 = vld [vmem:[#allocation5 + $0x4] sm:$0xf] }
 0x46a   :  { %v3862_v13 = vrot.slane %v3861_v57, 1  ;;  %v3870_v18 = vmax.f32 %v3868_v12, %v3869_v30  ;;  %v3877_v38 = vmax.f32 %v3875_v53, %v3876_v33  ;;  %v3662_v21 = vadd.f32 %v9073_v54, %v3419_v50  ;;  %v10677_v9 = vld [vmem:[#allocation13_spill] sm:$0xff] }
 0x46b   :  { %v3735_v34 = vsel %vm465_vm11, %v3663_v61, -1e+30  ;;  %v9213_v37 = vrot.slane %v7168_v43, %v10677_v9 }
 0x46c   :  { %v3863_v62 = vmax.f32 %v3861_v57, %v3862_v13  ;;  %v3871_v11 = vrot.slane %v3870_v18, 2  ;;  %v3879_v23 = vmax.f32 %v3877_v38, %v3878_v5  ;;  %v3887_v3 = vsel %vm530_vm1, %v3735_v34, -inf  ;;  %v6920_v25 = vpop.f32.mrb[80].mxu1  ;;  %v10679_v5 = vld [vmem:[#allocation86_spill] sm:$0xff] }
 0x46d   :  { %v3734_v4 = vsel %vm10676_vm5, %v3662_v21, -1e+30  ;;  %v3429_v45 = vpop.f32.mrb[81].mxu1  ;;  %v3665_v2 = vadd.f32 %v6920_v25, %v9073_v54  ;;  %vm10680_vm13 = vcmp.gt.f32.partialorder %v10679_v5, 0.0  ;;  %v10681_v34 = vld [vmem:[#allocation14_spill] sm:$0xff] }
 0x46e   :  { %v3880_v26 = vrot.slane %v3879_v23, 4  ;;  %v3886_v41 = vsel %vm530_vm1, %v3734_v4, -inf  ;;  %v3664_v12 = vadd.f32 %v9073_v54, %v3429_v45  ;;  %v3872_v8 = vmax.f32 %v3870_v18, %v3871_v11 }
 0x46f   :  { %v3888_v30 = vmax.f32 %v3886_v41, %v3887_v3  ;;  %v4070_v57 = vsel %vm2353_vm14, %v3863_v62, %v4069_v27  ;;  %v9222_v11 = vrot.slane %v7168_v43, %v10681_v34  ;;  %v10682_v62 = vld [vmem:[#allocation49_spill] sm:$0xff] }
 0x470   :  { %v3881_v53 = vmax.f32 %v3879_v23, %v3880_v26  ;;  %v3736_v61 = vsel %vm466_vm6, %v3664_v12, -1e+30  ;;  %v6923_v50 = vpop.f32.mrb[82].mxu1  ;;  %v4088_v18 = vsel %vm10680_vm13, %v4070_v57, 0.0  ;;  %vm10683_vm4 = vcmp.gt.f32.partialorder %v10682_v62, 0.0 }
 0x471   :  { %v3889_v13 = vsel %vm530_vm1, %v3736_v61, -inf  ;;  %v3667_v38 = vadd.f32 %v6923_v50, %v9073_v54  ;;  %v3439_v21 = vpop.f32.mrb[83].mxu1  ;;  %v3737_v3 = vsel %vm10683_vm4, %v3665_v2, -1e+30  ;;  %v3873_v4 = vrot.slane %v3872_v8, 1 }
 0x472   :  { %v3882_v27 = vrot.slane %v3881_v53, 2  ;;  %v3890_v23 = vmax.f32 %v3888_v30, %v3889_v13  ;;  %v3666_v25 = vadd.f32 %v9073_v54, %v3439_v21  ;;  %v4095_v45 = vmul.f32 %v9213_v37, %v4088_v18 }
 0x473   :  { %v3739_v61 = vsel %vm469_vm8, %v3667_v38, -1e+30  ;;  %v3897_v34 = vsel %vm530_vm1, %v3737_v3, -inf  ;;  %v3874_v12 = vmax.f32 %v3872_v8, %v3873_v4  ;;  %v6367_v3 = vld [vmem:[%s10244_s4 + $0x10] sm:$0xff] }
 0x474   :  { %v3883_v26 = vmax.f32 %v3881_v53, %v3882_v27  ;;  %v3891_v41 = vrot.slane %v3890_v23, 4  ;;  %v3738_v57 = vsel %vm468_vm2, %v3666_v25, -1e+30  ;;  %v6926_v43 = vpop.f32.mrb[84].mxu1  ;;  %v4102_v13 = vadd.f32 %v9222_v11, %v4095_v45 }
 0x475   :  { %v3898_v62 = vsel %vm530_vm1, %v3738_v57, -inf  ;;  %v3669_v2 = vadd.f32 %v6926_v43, %v9073_v54  ;;  %v3449_v30 = vpop.f32.mrb[85].mxu1  ;;  %v3900_v38 = vsel %vm530_vm1, %v3739_v61, -inf }
 0x476   :  { %v3884_v21 = vrot.slane %v3883_v26, 1  ;;  %v3892_v18 = vmax.f32 %v3890_v23, %v3891_v41  ;;  %v3899_v53 = vmax.f32 %v3897_v34, %v3898_v62  ;;  %v3668_v27 = vadd.f32 %v9073_v54, %v3449_v30  ;;  %v10690_v62 = vld [vmem:[#allocation63_spill] sm:$0xff] }
 0x477   :  { %v3741_v25 = vsel %vm471_vm9, %v3669_v2, -1e+30  ;;  %v9240_v5 = vmax.f32 %v4102_v13, 0.0  ;;  %vm10691_vm5 = vcmp.gt.f32.partialorder %v10690_v62, 0.0 }
 0x478   :  { %v3885_v57 = vmax.f32 %v3883_v26, %v3884_v21  ;;  %v3893_v43 = vrot.slane %v3892_v18, 2  ;;  %v3901_v45 = vmax.f32 %v3899_v53, %v3900_v38  ;;  %v3909_v23 = vsel %vm530_vm1, %v3741_v25, -inf  ;;  %v6929_v34 = vpop.f32.mrb[86].mxu1  ;;  %v10688_v25 = vld [vmem:[#allocation57_spill] sm:$0xff] }
 0x479   :  { %v3740_v8 = vsel %vm470_vm15, %v3668_v27, -1e+30  ;;  %5824 = vrot.lane.b32.xlu1 %v9240_v5, %s7249_s21  ;;  %6981 = vmatmul.mubr.msk.f32.vlgmr.msra.gmra.mrb[48].mxu0 %vm530_vm1, %v9240_v5  ;;  %v3671_v4 = vadd.f32 %v6929_v34, %v9073_v54  ;;  %v3459_v41 = vpop.f32.mrb[87].mxu1  ;;  %vm10689_vm12 = vcmp.gt.f32.partialorder %v10688_v25, 0.0 }
 0x47a   :  { %v4071_v26 = vsel %vm2341_vm10, %v3885_v57, %v3874_v12  ;;  %v3894_v61 = vmax.f32 %v3892_v18, %v3893_v43  ;;  %v3902_v2 = vrot.slane %v3901_v45, 4  ;;  %v3908_v30 = vsel %vm530_vm1, %v3740_v8, -inf  ;;  %6983 = vmatprep.mubr.msk.f32.mxu0 %vm7247_vm0, %v10608_v0  ;;  %6990 = vmatpush3.msra.mxu0 %v6367_v3 }
 0x47b   :  { %v3910_v13 = vmax.f32 %v3908_v30, %v3909_v23  ;;  %v3670_v21 = vadd.f32 %v9073_v54, %v3459_v41  ;;  %v3743_v34 = vsel %vm10689_vm12, %v3671_v4, -1e+30  ;;  %v10694_v4 = vld [vmem:[#allocation52_spill] sm:$0xff] }
 0x47c   :  { %v3895_v53 = vrot.slane %v3894_v61, 1  ;;  %v3903_v27 = vmax.f32 %v3901_v45, %v3902_v2  ;;  %v6932_v38 = vpop.f32.mrb[88].mxu1  ;;  %v10692_v2 = vld [vmem:[#allocation62_spill] sm:$0xff]  ;;  %vm10695_vm4 = vcmp.gt.f32.partialorder %v10694_v4, 0.0 }
 0x47d   :  { %v3742_v12 = vsel %vm10691_vm5, %v3670_v21, -1e+30  ;;  %v3673_v18 = vadd.f32 %v6932_v38, %v9073_v54  ;;  %v3469_v57 = vpop.f32.mrb[89].mxu1  ;;  %vm10693_vm13 = vcmp.gt.f32.partialorder %v10692_v2, 0.0  ;;  %v3919_v38 = vsel %vm530_vm1, %v3743_v34, -inf  ;;  %v10698_v4 = vld [vmem:[#allocation58_spill] sm:$0xff] }
 0x47e   :  { %v3896_v43 = vmax.f32 %v3894_v61, %v3895_v53  ;;  %v3904_v8 = vrot.slane %v3903_v27, 2  ;;  %v3911_v50 = vsel %vm530_vm1, %v3742_v12, -inf  ;;  %v3672_v3 = vadd.f32 %v9073_v54, %v3469_v57 }
 0x47f   :  { %v3912_v23 = vmax.f32 %v3910_v13, %v3911_v50  ;;  %v3745_v30 = vsel %vm10693_vm13, %v3673_v18, -1e+30  ;;  %v10696_v18 = vld [vmem:[#allocation65_spill] sm:$0xff]  ;;  %vm10699_vm5 = vcmp.gt.f32.partialorder %v10698_v4, 0.0  ;;  %vm10700_vm13 = vcmask 1043459  }
 0x480   :  { %v4072_v41 = vsel %vm2343_vm7, %v3896_v43, %v4071_v26  ;;  %v3905_v45 = vmax.f32 %v3903_v27, %v3904_v8  ;;  %v3744_v62 = vsel %vm10695_vm4, %v3672_v3, -1e+30  ;;  %v6935_v21 = vpop.f32.mrb[90].mxu1  ;;  %v3922_v27 = vsel %vm530_vm1, %v3745_v30, -inf }
 0x481   :  { %v3913_v25 = vrot.slane %v3912_v23, 4  ;;  %v3920_v61 = vsel %vm530_vm1, %v3744_v62, -inf  ;;  %v3675_v53 = vadd.f32 %v6935_v21, %v9073_v54  ;;  %v3479_v12 = vpop.f32.mrb[91].mxu1  ;;  %vm10697_vm12 = vcmp.gt.f32.partialorder %v10696_v18, 0.0  ;;  %v10703_v18 = vld [vmem:[#allocation69_spill] sm:$0xff] }
 0x482   :  { %v3906_v57 = vrot.slane %v3905_v45, 1  ;;  %v3921_v50 = vmax.f32 %v3919_v38, %v3920_v61  ;;  %v3674_v26 = vadd.f32 %v9073_v54, %v3479_v12 }
 0x483   :  { %v3914_v13 = vmax.f32 %v3912_v23, %v3913_v25  ;;  %v3747_v43 = vsel %vm10697_vm12, %v3675_v53, -1e+30  ;;  %vm10704_vm12 = vcmp.gt.f32.partialorder %v10703_v18, 0.0 }
 0x484   :  { %v3907_v8 = vmax.f32 %v3905_v45, %v3906_v57  ;;  %v3923_v3 = vmax.f32 %v3921_v50, %v3922_v27  ;;  %v3931_v34 = vsel %vm530_vm1, %v3747_v43, -inf  ;;  %v3746_v62 = vsel %vm10699_vm5, %v3674_v26, -1e+30  ;;  %v6938_v2 = vpop.f32.mrb[92].mxu1  ;;  %v10701_v57 = vld [vmem:[#allocation77_spill] sm:$0xff] }
 0x485   :  { %v3915_v21 = vrot.slane %v3914_v13, 2  ;;  %v3930_v33 = vsel %vm530_vm1, %v3746_v62, -inf  ;;  %v3677_v38 = vadd.f32 %v6938_v2, %v9073_v54  ;;  %v3489_v61 = vpop.f32.mrb[93].mxu1  ;;  %vm10702_vm4 = vcmp.gt.f32.partialorder %v10701_v57, 0.0 }
 0x486   :  { %v4073_v25 = vsel %vm10700_vm13, %v3907_v8, %v4072_v41  ;;  %v3924_v23 = vrot.slane %v3923_v3, 4  ;;  %v3932_v30 = vmax.f32 %v3930_v33, %v3931_v34  ;;  %v3676_v53 = vadd.f32 %v9073_v54, %v3489_v61 }
 0x487   :  { %v3916_v45 = vmax.f32 %v3914_v13, %v3915_v21  ;;  %v3749_v41 = vsel %vm10704_vm12, %v3677_v38, -1e+30  ;;  %v10705_v21 = vld [vmem:[#allocation74_spill] sm:$0xff] }
 0x488   :  { %v3925_v12 = vmax.f32 %v3923_v3, %v3924_v23  ;;  %v3748_v50 = vsel %vm10702_vm4, %v3676_v53, -1e+30  ;;  %v6941_v27 = vpop.f32.mrb[94].mxu1  ;;  %vm10706_vm5 = vcmp.gt.f32.partialorder %v10705_v21, 0.0  ;;  %v10707_v23 = vld [vmem:[#allocation64_spill] sm:$0xff]  ;;  %vm10709_vm4 = vcmask 1044484  }
 0x489   :  { %v3917_v26 = vrot.slane %v3916_v45, 1  ;;  %v3933_v43 = vsel %vm530_vm1, %v3748_v50, -inf  ;;  %v3679_v62 = vadd.f32 %v6941_v27, %v9073_v54  ;;  %v3499_v4 = vpop.f32.mrb[95].mxu1  ;;  %vm10708_vm13 = vcmp.gt.f32.partialorder %v10707_v23, 0.0 }
 0x48a   :  { %v3926_v2 = vrot.slane %v3925_v12, 2  ;;  %v3934_v8 = vmax.f32 %v3932_v30, %v3933_v43  ;;  %v3678_v33 = vadd.f32 %v9073_v54, %v3499_v4  ;;  %v3941_v57 = vsel %vm530_vm1, %v3749_v41, -inf }
 0x48b   :  { %v3918_v34 = vmax.f32 %v3916_v45, %v3917_v26  ;;  %v3751_v61 = vsel %vm10706_vm5, %v3679_v62, -1e+30  ;;  %v10710_v62 = vld [vmem:[#allocation54_spill] sm:$0xff] }
 0x48c   :  { %v3927_v13 = vmax.f32 %v3925_v12, %v3926_v2  ;;  %v3935_v3 = vrot.slane %v3934_v8, 4  ;;  %v3750_v53 = vsel %vm10708_vm13, %v3678_v33, -1e+30  ;;  %v6944_v50 = vpop.f32.mrb[96].mxu1  ;;  %v3944_v43 = vsel %vm530_vm1, %v3751_v61, -inf }
 0x48d   :  { %v4074_v27 = vsel %vm10709_vm4, %v3918_v34, %v4073_v25  ;;  %v3942_v18 = vsel %vm530_vm1, %v3750_v53, -inf  ;;  %v3681_v38 = vadd.f32 %v6944_v50, %v9073_v54  ;;  %v3509_v30 = vpop.f32.mrb[97].mxu1  ;;  %vm10711_vm12 = vcmp.gt.f32.partialorder %v10710_v62, 0.0  ;;  %v10712_v53 = vld [vmem:[#allocation59_spill] sm:$0xff] }
 0x48e   :  { %v3928_v4 = vrot.slane %v3927_v13, 1  ;;  %v3936_v45 = vmax.f32 %v3934_v8, %v3935_v3  ;;  %v3943_v12 = vmax.f32 %v3941_v57, %v3942_v18  ;;  %v3680_v26 = vadd.f32 %v9073_v54, %v3509_v30 }
 0x48f   :  { %v3753_v2 = vsel %vm10711_vm12, %v3681_v38, -1e+30  ;;  %vm10713_vm5 = vcmp.gt.f32.partialorder %v10712_v53, 0.0  ;;  %vm10714_vm13 = vcmask 1045509   ;;  %v10717_v53 = vld [vmem:[#allocation61_spill] sm:$0xff] }
 0x490   :  { %v3929_v33 = vmax.f32 %v3927_v13, %v3928_v4  ;;  %v3937_v23 = vrot.slane %v3936_v45, 2  ;;  %v3945_v25 = vmax.f32 %v3943_v12, %v3944_v43  ;;  %v3953_v41 = vsel %vm530_vm1, %v3753_v2, -inf  ;;  %v6947_v34 = vpop.f32.mrb[98].mxu1  ;;  %v10715_v12 = vld [vmem:[#allocation71_spill] sm:$0xff] }
 0x491   :  { %v3752_v50 = vsel %vm10713_vm5, %v3680_v26, -1e+30  ;;  %v3683_v21 = vadd.f32 %v6947_v34, %v9073_v54  ;;  %v3519_v8 = vpop.f32.mrb[99].mxu1  ;;  %vm10716_vm4 = vcmp.gt.f32.partialorder %v10715_v12, 0.0  ;;  %vm10718_vm12 = vcmp.gt.f32.partialorder %v10717_v53, 0.0 }
 0x492   :  { %v3938_v18 = vmax.f32 %v3936_v45, %v3937_v23  ;;  %v3946_v57 = vrot.slane %v3945_v25, 4  ;;  %v3952_v3 = vsel %vm530_vm1, %v3752_v50, -inf  ;;  %v3682_v61 = vadd.f32 %v9073_v54, %v3519_v8 }
 0x493   :  { %v3954_v30 = vmax.f32 %v3952_v3, %v3953_v41  ;;  %v4075_v13 = vsel %vm10714_vm13, %v3929_v33, %v4074_v27  ;;  %v3755_v26 = vsel %vm10718_vm12, %v3683_v21, -1e+30  ;;  %v10721_v3 = vld [vmem:[#allocation56_spill] sm:$0xff] }
 0x494   :  { %v3939_v38 = vrot.slane %v3938_v18, 1  ;;  %v3947_v4 = vmax.f32 %v3945_v25, %v3946_v57  ;;  %v3754_v43 = vsel %vm10716_vm4, %v3682_v61, -1e+30  ;;  %v6950_v2 = vpop.f32.mrb[100].mxu1  ;;  %v10719_v25 = vld [vmem:[#allocation66_spill] sm:$0xff]  ;;  %vm10722_vm13 = vcmp.gt.f32.partialorder %v10721_v3, 0.0 }
 0x495   :  { %v3955_v34 = vsel %vm530_vm1, %v3754_v43, -inf  ;;  %v3685_v23 = vadd.f32 %v6950_v2, %v9073_v54  ;;  %v3529_v45 = vpop.f32.mrb[101].mxu1  ;;  %vm10720_vm5 = vcmp.gt.f32.partialorder %v10719_v25, 0.0  ;;  %v3963_v21 = vsel %vm530_vm1, %v3755_v26, -inf }
 0x496   :  { %v3940_v50 = vmax.f32 %v3938_v18, %v3939_v38  ;;  %v3948_v62 = vrot.slane %v3947_v4, 2  ;;  %v3956_v8 = vmax.f32 %v3954_v30, %v3955_v34  ;;  %v3684_v41 = vadd.f32 %v9073_v54, %v3529_v45  ;;  %v10723_v45 = vld [vmem:[#allocation67_spill] sm:$0xff] }
 0x497   :  { %v3757_v57 = vsel %vm10720_vm5, %v3685_v23, -1e+30  ;;  %vm10724_vm4 = vcmp.gt.f32.partialorder %v10723_v45, 0.0  ;;  %v10731_v45 = vld [vmem:[#allocation73_spill] sm:$0xff] }
 0x498   :  { %v3949_v27 = vmax.f32 %v3947_v4, %v3948_v62  ;;  %v3957_v33 = vrot.slane %v3956_v8, 4  ;;  %v3756_v61 = vsel %vm10722_vm13, %v3684_v41, -1e+30  ;;  %v6953_v53 = vpop.f32.mrb[102].mxu1  ;;  %v4076_v30 = vsel %vm2351_vm3, %v3940_v50, %v4075_v13 }
 0x499   :  { %v3964_v43 = vsel %vm530_vm1, %v3756_v61, -inf  ;;  %v3687_v2 = vadd.f32 %v6953_v53, %v9073_v54  ;;  %v3539_v18 = vpop.f32.mrb[103].mxu1  ;;  %v3966_v23 = vsel %vm530_vm1, %v3757_v57, -inf  ;;  %v10725_v53 = vld [vmem:[#allocation60_spill] sm:$0xff] }
 0x49a   :  { %v3950_v38 = vrot.slane %v3949_v27, 1  ;;  %v3958_v34 = vmax.f32 %v3956_v8, %v3957_v33  ;;  %v3965_v62 = vmax.f32 %v3963_v21, %v3964_v43  ;;  %v3686_v4 = vadd.f32 %v9073_v54, %v3539_v18  ;;  %v10727_v18 = vld [vmem:[#allocation70_spill] sm:$0xff] }
 0x49b   :  { %v3759_v41 = vsel %vm10724_vm4, %v3687_v2, -1e+30  ;;  %vm10726_vm12 = vcmp.gt.f32.partialorder %v10725_v53, 0.0  ;;  %vm10728_vm5 = vcmp.gt.f32.partialorder %v10727_v18, 0.0  ;;  %v10729_v53 = vld [vmem:[#allocation91_spill] sm:$0xff]  ;;  %vm10732_vm4 = vcmp.gt.f32.partialorder %v10731_v45, 0.0 }
 0x49c   :  { %v3951_v3 = vmax.f32 %v3949_v27, %v3950_v38  ;;  %v3959_v25 = vrot.slane %v3958_v34, 2  ;;  %v3967_v26 = vmax.f32 %v3965_v62, %v3966_v23  ;;  %v3975_v61 = vsel %vm530_vm1, %v3759_v41, -inf  ;;  %v6956_v12 = vpop.f32.mrb[104].mxu1 }
 0x49d   :  { %v3758_v9 = vsel %vm10726_vm12, %v3686_v4, -1e+30  ;;  %v3549_v13 = vpop.f32.mrb[105].mxu1  ;;  %v3689_v33 = vadd.f32 %v6956_v12, %v9073_v54  ;;  %vm10730_vm13 = vcmp.gt.f32.partialorder %v10729_v53, 0.0 }
 0x49e   :  { %v3968_v50 = vrot.slane %v3967_v26, 4  ;;  %v3974_v8 = vsel %vm530_vm1, %v3758_v9, -inf  ;;  %v3688_v57 = vadd.f32 %v9073_v54, %v3549_v13  ;;  %v3960_v21 = vmax.f32 %v3958_v34, %v3959_v25 }
 0x49f   :  { %v3976_v43 = vmax.f32 %v3974_v8, %v3975_v61  ;;  %v4077_v27 = vsel %vm2353_vm14, %v3951_v3, %v4076_v30  ;;  %v3761_v25 = vsel %vm10732_vm4, %v3689_v33, -1e+30 }
 0x4a0   :  { %v3969_v2 = vmax.f32 %v3967_v26, %v3968_v50  ;;  %v3760_v38 = vsel %vm10728_vm5, %v3688_v57, -1e+30  ;;  %v6959_v62 = vpop.f32.mrb[106].mxu1  ;;  %v4089_v9 = vsel %vm10730_vm13, %v4077_v27, 0.0  ;;  %v3961_v30 = vrot.slane %v3960_v21, 1  ;;  %v10733_v50 = vld [vmem:[#allocation78_spill] sm:$0xff] }
 0x4a1   :  { %v3977_v23 = vsel %vm530_vm1, %v3760_v38, -inf  ;;  %v3691_v4 = vadd.f32 %v6959_v62, %v9073_v54  ;;  %v3559_v41 = vpop.f32.mrb[107].mxu1  ;;  %v4096_v26 = vmul.f32 %v9213_v37, %v4089_v9  ;;  %vm10734_vm12 = vcmp.gt.f32.partialorder %v10733_v50, 0.0  ;;  %v10735_v57 = vld [vmem:[#allocation68_spill] sm:$0xff] }
 0x4a2   :  { %v3970_v12 = vrot.slane %v3969_v2, 2  ;;  %v3978_v34 = vmax.f32 %v3976_v43, %v3977_v23  ;;  %v3690_v3 = vadd.f32 %v9073_v54, %v3559_v41  ;;  %vm10736_vm5 = vcmp.gt.f32.partialorder %v10735_v57, 0.0  ;;  %v10737_v57 = vld [vmem:[#allocation72_spill] sm:$0xff] }
 0x4a3   :  { %v3763_v8 = vsel %vm10734_vm12, %v3691_v4, -1e+30  ;;  %v3985_v27 = vsel %vm530_vm1, %v3761_v25, -inf  ;;  %v4103_v23 = vadd.f32 %v9222_v11, %v4096_v26  ;;  %v3962_v50 = vmax.f32 %v3960_v21, %v3961_v30  ;;  %v10739_v26 = vld [vmem:[#allocation83_spill] sm:$0xff] }
 0x4a4   :  { %v3971_v61 = vmax.f32 %v3969_v2, %v3970_v12  ;;  %v3979_v13 = vrot.slane %v3978_v34, 4  ;;  %v3762_v38 = vsel %vm10736_vm5, %v3690_v3, -1e+30  ;;  %v6962_v62 = vpop.f32.mrb[108].mxu1  ;;  %v3988_v4 = vsel %vm530_vm1, %v3763_v8, -inf }
 0x4a5   :  { %v3986_v45 = vsel %vm530_vm1, %v3762_v38, -inf  ;;  %v3693_v33 = vadd.f32 %v6962_v62, %v9073_v54  ;;  %v3569_v43 = vpop.f32.mrb[109].mxu1  ;;  %vm10738_vm13 = vcmp.gt.f32.partialorder %v10737_v57, 0.0  ;;  %v9358_v53 = vmax.f32 %v4103_v23, 0.0 }
 0x4a6   :  { %v3972_v41 = vrot.slane %v3971_v61, 1  ;;  %v3980_v9 = vmax.f32 %v3978_v34, %v3979_v13  ;;  %v3987_v2 = vmax.f32 %v3985_v27, %v3986_v45  ;;  %v3692_v12 = vadd.f32 %v9073_v54, %v3569_v43 }
 0x4a7   :  { %v3765_v3 = vsel %vm10738_vm13, %v3693_v33, -1e+30  ;;  %vm10740_vm4 = vcmp.gt.f32.partialorder %v10739_v26, 0.0  ;;  %5826 = vrot.lane.b32.xlu1 %v9358_v53, %s7249_s21  ;;  %6984 = vmatmul.mubr.msk.f32.gmra.mrb[50].mxu0 %vm530_vm1, %v9358_v53 }
 0x4a8   :  { %v3973_v25 = vmax.f32 %v3971_v61, %v3972_v41  ;;  %v3981_v38 = vrot.slane %v3980_v9, 2  ;;  %v3989_v18 = vmax.f32 %v3987_v2, %v3988_v4  ;;  %v3997_v62 = vsel %vm530_vm1, %v3765_v3, -inf  ;;  %v6965_v52 = vpop.f32.mrb[110].mxu1  ;;  %6986 = vmatprep.mubr.msk.f32.mxu0 %vm7247_vm0, %v10608_v0  ;;  %v10741_v2 = vld [vmem:[#allocation79_spill] sm:$0xff] }
 0x4a9   :  { %v3764_v34 = vsel %vm10740_vm4, %v3692_v12, -1e+30  ;;  %v3695_v45 = vadd.f32 %v6965_v52, %v9073_v54  ;;  %v3579_v21 = vpop.f32.mrb[111].mxu1  ;;  %vm10742_vm12 = vcmp.gt.f32.partialorder %v10741_v2, 0.0  ;;  %v10743_v52 = vld [vmem:[#allocation81_spill] sm:$0xff] }
 0x4aa   :  { %v4078_v30 = vsel %vm2341_vm10, %v3973_v25, %v3962_v50  ;;  %v3982_v61 = vmax.f32 %v3980_v9, %v3981_v38  ;;  %v3990_v13 = vrot.slane %v3989_v18, 4  ;;  %v3996_v8 = vsel %vm530_vm1, %v3764_v34, -inf }
 0x4ab   :  { %v3998_v27 = vmax.f32 %v3996_v8, %v3997_v62  ;;  %v3694_v33 = vadd.f32 %v9073_v54, %v3579_v21  ;;  %v3767_v12 = vsel %vm10742_vm12, %v3695_v45, -1e+30  ;;  %vm10744_vm5 = vcmp.gt.f32.partialorder %v10743_v52, 0.0  ;;  %v10747_v45 = vld [vmem:[#allocation80_spill] sm:$0xff] }
 0x4ac   :  { %v3983_v43 = vrot.slane %v3982_v61, 1  ;;  %v3991_v23 = vmax.f32 %v3989_v18, %v3990_v13  ;;  %v6968_v41 = vpop.f32.mrb[112].mxu1  ;;  %v10745_v13 = vld [vmem:[#allocation85_spill] sm:$0xff]  ;;  %vm10748_vm4 = vcmp.gt.f32.partialorder %v10747_v45, 0.0  ;;  %v10751_v45 = vld [vmem:[#allocation82_spill] sm:$0xff] }
 0x4ad   :  { %v3766_v4 = vsel %vm10744_vm5, %v3694_v33, -1e+30  ;;  %v3697_v50 = vadd.f32 %v6968_v41, %v9073_v54  ;;  %v3589_v9 = vpop.f32.mrb[113].mxu1  ;;  %vm10746_vm13 = vcmp.gt.f32.partialorder %v10745_v13, 0.0  ;;  %v4007_v41 = vsel %vm530_vm1, %v3767_v12, -inf }
 0x4ae   :  { %v3984_v3 = vmax.f32 %v3982_v61, %v3983_v43  ;;  %v3992_v25 = vrot.slane %v3991_v23, 2  ;;  %v3999_v38 = vsel %vm530_vm1, %v3766_v4, -inf  ;;  %v3696_v62 = vadd.f32 %v9073_v54, %v3589_v9 }
 0x4af   :  { %v4000_v34 = vmax.f32 %v3998_v27, %v3999_v38  ;;  %v3769_v8 = vsel %vm10746_vm13, %v3697_v50, -1e+30  ;;  %v10749_v50 = vld [vmem:[#allocation84_spill] sm:$0xff]  ;;  %vm10752_vm5 = vcmp.gt.f32.partialorder %v10751_v45, 0.0  ;;  %vm10753_vm13 = vcmask 1043459  }
 0x4b0   :  { %v4079_v21 = vsel %vm2343_vm7, %v3984_v3, %v4078_v30  ;;  %v3993_v18 = vmax.f32 %v3991_v23, %v3992_v25  ;;  %v3768_v52 = vsel %vm10748_vm4, %v3696_v62, -1e+30  ;;  %v6971_v33 = vpop.f32.mrb[114].mxu1  ;;  %v4010_v3 = vsel %vm530_vm1, %v3769_v8, -inf }
 0x4b1   :  { %v4001_v2 = vrot.slane %v4000_v34, 4  ;;  %v4008_v61 = vsel %vm530_vm1, %v3768_v52, -inf  ;;  %v3699_v43 = vadd.f32 %v6971_v33, %v9073_v54  ;;  %v3599_v4 = vpop.f32.mrb[115].mxu1  ;;  %vm10750_vm12 = vcmp.gt.f32.partialorder %v10749_v50, 0.0  ;;  %v10756_v50 = vld [vmem:[#allocation88_spill] sm:$0xff] }
 0x4b2   :  { %v3994_v9 = vrot.slane %v3993_v18, 1  ;;  %v4009_v27 = vmax.f32 %v4007_v41, %v4008_v61  ;;  %v3698_v30 = vadd.f32 %v9073_v54, %v3599_v4 }
 0x4b3   :  { %v4002_v23 = vmax.f32 %v4000_v34, %v4001_v2  ;;  %v3771_v25 = vsel %vm10750_vm12, %v3699_v43, -1e+30  ;;  %vm10757_vm12 = vcmp.gt.f32.partialorder %v10756_v50, 0.0 }
 0x4b4   :  { %v3995_v38 = vmax.f32 %v3993_v18, %v3994_v9  ;;  %v4011_v62 = vmax.f32 %v4009_v27, %v4010_v3  ;;  %v4019_v12 = vsel %vm530_vm1, %v3771_v25, -inf  ;;  %v3770_v52 = vsel %vm10752_vm5, %v3698_v30, -1e+30  ;;  %v6974_v13 = vpop.f32.mrb[116].mxu1  ;;  %v10754_v9 = vld [vmem:[#allocation89_spill] sm:$0xff] }
 0x4b5   :  { %v4003_v33 = vrot.slane %v4002_v23, 2  ;;  %v4018_v26 = vsel %vm530_vm1, %v3770_v52, -inf  ;;  %v3701_v41 = vadd.f32 %v6974_v13, %v9073_v54  ;;  %v3609_v61 = vpop.f32.mrb[117].mxu1  ;;  %vm10755_vm4 = vcmp.gt.f32.partialorder %v10754_v9, 0.0 }
 0x4b6   :  { %v4080_v2 = vsel %vm10753_vm13, %v3995_v38, %v4079_v21  ;;  %v4012_v34 = vrot.slane %v4011_v62, 4  ;;  %v4020_v8 = vmax.f32 %v4018_v26, %v4019_v12  ;;  %v3700_v43 = vadd.f32 %v9073_v54, %v3609_v61 }
 0x4b7   :  { %v4004_v18 = vmax.f32 %v4002_v23, %v4003_v33  ;;  %v3773_v21 = vsel %vm10757_vm12, %v3701_v41, -1e+30  ;;  %v10758_v33 = vld [vmem:[#allocation90_spill] sm:$0xff]  ;;  %vm10763_vm12 = vcmask 1045509  }
 0x4b8   :  { %v4013_v4 = vmax.f32 %v4011_v62, %v4012_v34  ;;  %v3772_v27 = vsel %vm10755_vm4, %v3700_v43, -1e+30  ;;  %v6977_v3 = vpop.f32.mrb[118].mxu1  ;;  %vm10759_vm5 = vcmp.gt.f32.partialorder %v10758_v33, 0.0  ;;  %v10760_v34 = vld [vmem:[#allocation87_spill] sm:$0xff]  ;;  %vm10762_vm4 = vcmask 1044484  }
 0x4b9   :  { %v4005_v30 = vrot.slane %v4004_v18, 1  ;;  %v4021_v25 = vsel %vm530_vm1, %v3772_v27, -inf  ;;  %v3703_v52 = vadd.f32 %v6977_v3, %v9073_v54  ;;  %v3619_v45 = vpop.f32.mrb[119].mxu1  ;;  %vm10761_vm13 = vcmp.gt.f32.partialorder %v10760_v34, 0.0 }
 0x4ba   :  { %v4014_v13 = vrot.slane %v4013_v4, 2  ;;  %v4022_v38 = vmax.f32 %v4020_v8, %v4021_v25  ;;  %v3702_v26 = vadd.f32 %v9073_v54, %v3619_v45  ;;  %v4029_v3 = vsel %vm530_vm1, %v3773_v21, -inf }
 0x4bb   :  { %v4006_v12 = vmax.f32 %v4004_v18, %v4005_v30  ;;  %v3775_v61 = vsel %vm10759_vm5, %v3703_v52, -1e+30 }
 0x4bc   :  { %v4015_v23 = vmax.f32 %v4013_v4, %v4014_v13  ;;  %v4023_v62 = vrot.slane %v4022_v38, 4  ;;  %v3774_v43 = vsel %vm10761_vm13, %v3702_v26, -1e+30  ;;  %v4032_v54 = vsel %vm530_vm1, %v3775_v61, -inf }
 0x4bd   :  { %v4081_v27 = vsel %vm10762_vm4, %v4006_v12, %v4080_v2  ;;  %v4030_v9 = vsel %vm530_vm1, %v3774_v43, -inf }
 0x4be   :  { %v4016_v50 = vrot.slane %v4015_v23, 1  ;;  %v4024_v41 = vmax.f32 %v4022_v38, %v4023_v62  ;;  %v4031_v8 = vmax.f32 %v4029_v3, %v4030_v9  ;;  %v10764_v38 = vld [vmem:[#allocation76_spill] sm:$0xff] }
 0x4bf   :  { %vm10765_vm5 = vcmp.gt.f32.partialorder %v10764_v38, 0.0 }
 0x4c0   :  { %v4017_v45 = vmax.f32 %v4015_v23, %v4016_v50  ;;  %v4025_v18 = vrot.slane %v4024_v41, 2  ;;  %v4033_v4 = vmax.f32 %v4031_v8, %v4032_v54 }
 0x4c2   :  { %v4026_v30 = vmax.f32 %v4024_v41, %v4025_v18  ;;  %v4034_v25 = vrot.slane %v4033_v4, 4  ;;  %v4082_v52 = vsel %vm10763_vm12, %v4017_v45, %v4081_v27  ;;  %v9440_v27 = vld [vmem:[#allocation5 + $0x8] sm:$0xf]  ;;  %v10768_v41 = vld [vmem:[#allocation15_spill] sm:$0xff] }
 0x4c3   :  { %10767 = vst [vmem:[#allocation94_spill] sm:$0xff] %v9440_v27 }
 0x4c4   :  { %v4027_v13 = vrot.slane %v4026_v30, 1  ;;  %v4035_v26 = vmax.f32 %v4033_v4, %v4034_v25 }
 0x4c6   :  { %v4028_v34 = vmax.f32 %v4026_v30, %v4027_v13  ;;  %v4036_v2 = vrot.slane %v4035_v26, 2 }
 0x4c8   :  { %v4037_v12 = vmax.f32 %v4035_v26, %v4036_v2  ;;  %v4083_v21 = vsel %vm2351_vm3, %v4028_v34, %v4082_v52 }
 0x4ca   :  { %v4038_v43 = vrot.slane %v4037_v12, 1 }
 0x4cc   :  { %v4039_v33 = vmax.f32 %v4037_v12, %v4038_v43 }
 0x4ce   :  { %v4084_v9 = vsel %vm2353_vm14, %v4039_v33, %v4083_v21 }
 0x4cf   :  { %v4090_v50 = vsel %vm10765_vm5, %v4084_v9, 0.0 }
 0x4d0   :  { %v4097_v23 = vmul.f32 %v9213_v37, %v4090_v50  ;;  %v6368_v37 = vld [vmem:[%s10245_s5 + $0x10] sm:$0xff] }
 0x4d1   :  { %7000 = vmatprep.subr.mxu0 %v6368_v37 }
 0x4d2   :  { %v4104_v62 = vadd.f32 %v9222_v11, %v4097_v23 }
 0x4d4   :  { %v9421_v61 = vmax.f32 %v4104_v62, 0.0 }
 0x4d6   :  { %10766 = vst [vmem:[#allocation11_spill] sm:$0xff] %v9421_v61  ;;  %6987 = vmatmul.mubr.msk.f32.gmra.mrb[52].mxu0 %vm530_vm1, %v9421_v61 }
 0x4d7   :  { %6991 = vmatprep.mubr.msk.f32.mxu0 %vm7247_vm0, %v10608_v0 }
 0x4da   :  { %6992 = vmatmul.mubr.msk.f32.vlgmr.msra.gmra.mrb[54].mxu0 %vm530_vm1, %v9240_v5 }
 0x4db   :  { %6994 = vmatprep.mubr.msk.f32.mxu0 %vm7247_vm0, %v10608_v0  ;;  %7001 = vmatpush3.msra.mxu0 %v6368_v37 }
 0x4de   :  { %6995 = vmatmul.mubr.msk.f32.gmra.mrb[56].mxu0 %vm530_vm1, %v9358_v53  ;;  %v4119_v53 = vrot.slane %v9440_v27, %v10606_v28 }
 0x4df   :  { %6997 = vmatprep.mubr.msk.f32.mxu0 %vm7247_vm0, %v10608_v0 }
 0x4e2   :  { %6998 = vmatmul.mubr.msk.f32.gmra.mrb[58].mxu0 %vm530_vm1, %v9421_v61 }
 0x54c   :  { %v4195_v11 = vpop.f32.mrb[48].mxu0 }
 0x54d   :  { %v6982_v5 = vpop.f32.mrb[49].mxu0  ;;  %v4196_v3 = vadd.f32 %v4195_v11, %v4119_v53 }
 0x54f   :  { %v4299_v8 = vrot.slane %v4196_v3, %v10768_v41  ;;  %v4292_v54 = vcombine.high %v4196_v3, %v4196_v3 }
 0x551   :  { %v4307_v45 = vcombine.high %v4299_v8, %v4299_v8  ;;  %v4306_v18 = vrot.slane %v4292_v54, %v10768_v41  ;;  %v4315_v4 = vrot.slane %v4299_v8, %v10768_v41 }
 0x553   :  { %v4329_v30 = vrot.slane %v4307_v45, %v10768_v41  ;;  %v4308_v52 = vcombine.high %v4306_v18, %v4306_v18  ;;  %v4322_v13 = vrot.slane %v4306_v18, %v10768_v41  ;;  %v4337_v26 = vcombine.high %v4315_v4, %v4315_v4 }
 0x554   :  { %v4442_v50 = vrot.slane %v4315_v4, %v10606_v28 }
 0x555   :  { %v4339_v2 = vcombine.high %v4329_v30, %v4329_v30  ;;  %v4336_v9 = vrot.slane %v4308_v52, %v10768_v41  ;;  %v4446_v62 = vrot.slane %v4329_v30, %v10606_v28  ;;  %v4450_v37 = vrot.slane %v4337_v26, %v10606_v28 }
 0x556   :  { %v4458_v5 = vrot.slane %v4322_v13, %v10606_v28  ;;  %v4338_v30 = vcombine.high %v4322_v13, %v4322_v13 }
 0x557   :  { %v4454_v11 = vrot.slane %v4339_v2, %v10606_v28 }
 0x558   :  { %v4466_v13 = vrot.slane %v4338_v30, %v10606_v28 }
 0x57a   :  { %v4200_v33 = vpop.f32.mrb[50].mxu0 }
 0x57b   :  { %v6985_v34 = vpop.f32.mrb[51].mxu0  ;;  %v4201_v25 = vadd.f32 %v4200_v33, %v4119_v53 }
 0x57d   :  { %v4341_v21 = vcombine.high %v4201_v25, %v4201_v25  ;;  %v4348_v23 = vrot.slane %v4201_v25, %v10768_v41  ;;  %v4340_v25 = vcombine.high %v4336_v9, %v4336_v9 }
 0x57f   :  { %v4355_v34 = vrot.slane %v4341_v21, %v10768_v41  ;;  %v4356_v52 = vcombine.high %v4348_v23, %v4348_v23  ;;  %v4364_v26 = vrot.slane %v4348_v23, %v10768_v41  ;;  %v4470_v51 = vrot.slane %v4340_v25, %v10606_v28 }
 0x581   :  { %v4357_v38 = vcombine.high %v4355_v34, %v4355_v34  ;;  %v4371_v61 = vrot.slane %v4355_v34, %v10768_v41  ;;  %v4378_v36 = vrot.slane %v4356_v52, %v10768_v41 }
 0x583   :  { %v4387_v25 = vcombine.high %v4371_v61, %v4371_v61  ;;  %v4490_v48 = vrot.slane %v4371_v61, %v10606_v28 }
 0x585   :  { %v4498_v32 = vrot.slane %v4387_v25, %v10606_v28 }
 0x5a9   :  { %v4205_v12 = vpop.f32.mrb[52].mxu0 }
 0x5aa   :  { %v6988_v43 = vpop.f32.mrb[53].mxu0  ;;  %v4206_v23 = vadd.f32 %v4205_v12, %v4119_v53  ;;  %v4385_v12 = vrot.slane %v4357_v38, %v10768_v41 }
 0x5ab   :  { %v4462_v43 = vrot.slane %v4336_v9, %v10606_v28  ;;  %v4474_v9 = vrot.slane %v4364_v26, %v10606_v28 }
 0x5ac   :  { %v4389_v35 = vcombine.high %v4385_v12, %v4385_v12 }
 0x5ad   :  { %v9456_v33 = vpop.f32.mrb[54].mxu0 }
 0x5ae   :  { %v6993_v3 = vpop.f32.mrb[55].mxu0  ;;  %v4559_v8 = vadd.f32 %v4442_v50, %v9456_v33  ;;  %v4562_v54 = vadd.f32 %v4446_v62, %v9456_v33  ;;  %v9462_v45 = vadd.f32 %v4450_v37, %v9456_v33  ;;  %v9465_v18 = vadd.f32 %v4454_v11, %v9456_v33 }
 0x5af   :  { %v9468_v4 = vadd.f32 %v4458_v5, %v9456_v33  ;;  %v9509_v38 = vadd.f32 %v4462_v43, %v9456_v33 }
 0x5b0   :  { %v4631_v21 = vmax.f32 %v4559_v8, 0.0  ;;  %v4386_v8 = vcombine.high %v4364_v26, %v4364_v26 }
 0x5b1   :  { %v9471_v2 = vpop.f32.mrb[56].mxu0  ;;  %v4643_v39 = vmax.f32 %v9468_v4, 0.0 }
 0x5b2   :  { %v6996_v3 = vpop.f32.mrb[57].mxu0  ;;  %7002 = vmatprep.mubr.msk.f32.mxu0 %vm530_vm1, %v4631_v21  ;;  %v4560_v57 = vadd.f32 %v4442_v50, %v9471_v2  ;;  %v4563_v63 = vadd.f32 %v4446_v62, %v9471_v2  ;;  %v9485_v34 = vadd.f32 %v4450_v37, %v9471_v2  ;;  %v9493_v53 = vadd.f32 %v4454_v11, %v9471_v2 }
 0x5b3   :  { %v9501_v52 = vadd.f32 %v4458_v5, %v9471_v2  ;;  %v9546_v44 = vadd.f32 %v4474_v9, %v9471_v2 }
 0x5b4   :  { %v4632_v31 = vmax.f32 %v4560_v57, 0.0  ;;  %v4635_v55 = vmax.f32 %v4563_v63, 0.0  ;;  %v4482_v63 = vrot.slane %v4386_v8, %v10606_v28  ;;  %v4637_v8 = vmax.f32 %v9462_v45, 0.0 }
 0x5b5   :  { %v9482_v3 = vpop.f32.mrb[58].mxu0 }
 0x5b6   :  { %v6999_v21 = vpop.f32.mrb[59].mxu0  ;;  %v4561_v1 = vadd.f32 %v4442_v50, %v9482_v3  ;;  %v4564_v24 = vadd.f32 %v4446_v62, %v9482_v3  ;;  %v9490_v30 = vadd.f32 %v4450_v37, %v9482_v3  ;;  %7003 = vmatmul.mubr.msk.f32.vlgmr.msra.gmra.mrb[60].mxu0 %vm530_vm1, %v4632_v31  ;;  %v9498_v57 = vadd.f32 %v4454_v11, %v9482_v3 }
 0x5b7   :  { %v4388_v50 = vcombine.high %v4378_v36, %v4378_v36  ;;  %v4478_v62 = vrot.slane %v4378_v36, %v10606_v28  ;;  %v4397_v37 = vrot.slane %v4206_v23, %v10768_v41  ;;  %v4634_v21 = vmax.f32 %v4562_v54, 0.0 }
 0x5b8   :  { %v4633_v26 = vmax.f32 %v4561_v1, 0.0  ;;  %v9506_v14 = vadd.f32 %v4458_v5, %v9482_v3  ;;  %v9513_v31 = vadd.f32 %v4462_v43, %v9471_v2  ;;  %v9516_v11 = vadd.f32 %v4462_v43, %v9482_v3 }
 0x5b9   :  { %v9519_v36 = vadd.f32 %v4466_v13, %v9456_v33  ;;  %v9522_v1 = vadd.f32 %v4466_v13, %v9471_v2  ;;  %v4390_v5 = vcombine.high %v4206_v23, %v4206_v23  ;;  %v9527_v54 = vadd.f32 %v4466_v13, %v9482_v3 }
 0x5ba   :  { %7005 = vmatprep.mubr.msk.f32.mxu0 %vm530_vm1, %v4633_v26  ;;  %v9530_v26 = vadd.f32 %v4470_v51, %v9456_v33  ;;  %v4486_v43 = vrot.slane %v4388_v50, %v10606_v28  ;;  %v4405_v6 = vcombine.high %v4397_v37, %v4397_v37  ;;  %v4636_v47 = vmax.f32 %v4564_v24, 0.0 }
 0x5bb   :  { %7006 = vmatmul.mubr.msk.f32.gmra.mrb[62].mxu0 %vm530_vm1, %v4634_v21  ;;  %v9537_v23 = vadd.f32 %v4470_v51, %v9471_v2  ;;  %v9540_v13 = vadd.f32 %v4470_v51, %v9482_v3  ;;  %v9543_v21 = vadd.f32 %v4474_v9, %v9456_v33  ;;  %v9549_v61 = vadd.f32 %v4474_v9, %v9482_v3 }
 0x5bc   :  { %7008 = vmatprep.mubr.msk.f32.mxu0 %vm530_vm1, %v4635_v55  ;;  %v9552_v55 = vadd.f32 %v4478_v62, %v9456_v33  ;;  %v4494_v24 = vrot.slane %v4385_v12, %v10606_v28  ;;  %v4404_v45 = vrot.slane %v4390_v5, %v10768_v41  ;;  %v9558_v51 = vadd.f32 %v4478_v62, %v9471_v2 }
 0x5bd   :  { %v9561_v50 = vadd.f32 %v4478_v62, %v9482_v3  ;;  %v4413_v9 = vrot.slane %v4397_v37, %v10768_v41  ;;  %v4427_v7 = vrot.slane %v4405_v6, %v10768_v41  ;;  %v4502_v12 = vrot.slane %v4389_v35, %v10606_v28 }
 0x5be   :  { %v4638_v5 = vmax.f32 %v9485_v34, 0.0  ;;  %v9571_v58 = vadd.f32 %v4482_v63, %v9456_v33  ;;  %v9574_v62 = vadd.f32 %v4482_v63, %v9471_v2  ;;  %v9577_v25 = vadd.f32 %v4482_v63, %v9482_v3 }
 0x5bf   :  { %7009 = vmatmul.mubr.msk.f32.gmra.mrb[64].mxu0 %vm530_vm1, %v4636_v47  ;;  %v4639_v47 = vmax.f32 %v9490_v30, 0.0  ;;  %v9580_v37 = vadd.f32 %v4486_v43, %v9456_v33  ;;  %v9583_v6 = vadd.f32 %v4486_v43, %v9471_v2  ;;  %v9586_v35 = vadd.f32 %v4486_v43, %v9482_v3 }
 0x5c0   :  { %7011 = vmatprep.mubr.msk.f32.mxu0 %vm530_vm1, %v4637_v8  ;;  %v4406_v34 = vcombine.high %v4404_v45, %v4404_v45  ;;  %v4420_v30 = vrot.slane %v4404_v45, %v10768_v41  ;;  %v9591_v8 = vadd.f32 %v4490_v48, %v9456_v33  ;;  %v9594_v63 = vadd.f32 %v4490_v48, %v9471_v2 }
 0x5c1   :  { %v4435_v40 = vcombine.high %v4413_v9, %v4413_v9  ;;  %v4437_v0 = vcombine.high %v4427_v7, %v4427_v7  ;;  %v4506_v29 = vrot.slane %v4413_v9, %v10606_v28  ;;  %v4510_v56 = vrot.slane %v4427_v7, %v10606_v28 }
 0x5c2   :  { %v4640_v43 = vmax.f32 %v9465_v18, 0.0  ;;  %v4641_v45 = vmax.f32 %v9493_v53, 0.0  ;;  %v9605_v10 = vadd.f32 %v4494_v24, %v9456_v33  ;;  %v9608_v46 = vadd.f32 %v4494_v24, %v9471_v2 }
 0x5c3   :  { %7012 = vmatmul.mubr.msk.f32.gmra.mrb[66].mxu0 %vm530_vm1, %v4638_v5  ;;  %v9602_v5 = vadd.f32 %v4490_v48, %v9482_v3  ;;  %v9611_v42 = vadd.f32 %v4494_v24, %v9482_v3  ;;  %v9614_v7 = vadd.f32 %v4498_v32, %v9456_v33  ;;  %v9617_v9 = vadd.f32 %v4498_v32, %v9471_v2 }
 0x5c4   :  { %7014 = vmatprep.mubr.msk.f32.mxu0 %vm530_vm1, %v4639_v47  ;;  %v9621_v48 = vadd.f32 %v4498_v32, %v9482_v3  ;;  %v9624_v18 = vadd.f32 %v4502_v12, %v9456_v33  ;;  %v4434_v53 = vrot.slane %v4406_v34, %v10768_v41  ;;  %v4436_v47 = vcombine.high %v4420_v30, %v4420_v30 }
 0x5c5   :  { %v4514_v24 = vrot.slane %v4435_v40, %v10606_v28  ;;  %v4518_v19 = vrot.slane %v4437_v0, %v10606_v28  ;;  %v4642_v20 = vmax.f32 %v9498_v57, 0.0  ;;  %v9636_v32 = vadd.f32 %v4502_v12, %v9482_v3 }
 0x5c6   :  { %v9639_v17 = vadd.f32 %v4506_v29, %v9456_v33  ;;  %v9642_v41 = vadd.f32 %v4506_v29, %v9471_v2  ;;  %v9645_v0 = vadd.f32 %v4506_v29, %v9482_v3  ;;  %v9648_v40 = vadd.f32 %v4510_v56, %v9456_v33 }
 0x5c7   :  { %7015 = vmatmul.mubr.msk.f32.gmra.mrb[68].mxu0 %vm530_vm1, %v4640_v43  ;;  %v9633_v43 = vadd.f32 %v4502_v12, %v9471_v2  ;;  %v4522_v4 = vrot.slane %v4420_v30, %v10606_v28  ;;  %v9653_v57 = vadd.f32 %v4510_v56, %v9471_v2  ;;  %v9656_v12 = vadd.f32 %v4510_v56, %v9482_v3 }
 0x5c8   :  { %7017 = vmatprep.mubr.msk.f32.mxu0 %vm530_vm1, %v4641_v45  ;;  %v4526_v34 = vrot.slane %v4434_v53, %v10606_v28  ;;  %v4530_v45 = vrot.slane %v4436_v47, %v10606_v28  ;;  %v4644_v29 = vmax.f32 %v9501_v52, 0.0  ;;  %v4645_v22 = vmax.f32 %v9506_v14, 0.0 }
 0x5c9   :  { %v9664_v30 = vadd.f32 %v4514_v24, %v9456_v33  ;;  %v9670_v15 = vadd.f32 %v4514_v24, %v9482_v3  ;;  %v9673_v56 = vadd.f32 %v4518_v19, %v9456_v33  ;;  %v9676_v47 = vadd.f32 %v4518_v19, %v9471_v2 }
 0x5ca   :  { %v4438_v52 = vcombine.high %v4434_v53, %v4434_v53  ;;  %v9683_v14 = vadd.f32 %v4522_v4, %v9456_v33  ;;  %v9686_v49 = vadd.f32 %v4522_v4, %v9471_v2  ;;  %v4647_v16 = vmax.f32 %v9513_v31, 0.0 }
 0x5cb   :  { %7018 = vmatmul.mubr.msk.f32.gmra.mrb[70].mxu0 %vm530_vm1, %v4642_v20  ;;  %v9667_v20 = vadd.f32 %v4514_v24, %v9471_v2  ;;  %v4646_v24 = vmax.f32 %v9509_v38, 0.0  ;;  %v9692_v60 = vadd.f32 %v4522_v4, %v9482_v3  ;;  %v9698_v53 = vadd.f32 %v4526_v34, %v9471_v2 }
 0x5cc   :  { %7020 = vmatprep.mubr.msk.f32.mxu0 %vm530_vm1, %v4643_v39  ;;  %v9679_v39 = vadd.f32 %v4518_v19, %v9482_v3  ;;  %v9695_v19 = vadd.f32 %v4526_v34, %v9456_v33  ;;  %v9704_v27 = vadd.f32 %v4530_v45, %v9456_v33  ;;  %v9711_v38 = vadd.f32 %v4530_v45, %v9482_v3 }
 0x5cd   :  { %v4534_v31 = vrot.slane %v4438_v52, %v10606_v28  ;;  %v4648_v4 = vmax.f32 %v9516_v11, 0.0  ;;  %v4650_v28 = vmax.f32 %v9522_v1, 0.0  ;;  %v4655_v11 = vmax.f32 %v9543_v21, 0.0 }
 0x5ce   :  { %10769 = vst [vmem:[#allocation15_spill] sm:$0xff] %v9704_v27  ;;  %v4657_v1 = vmax.f32 %v9549_v61, 0.0  ;;  %v4663_v21 = vmax.f32 %v9577_v25, 0.0  ;;  %v4664_v61 = vmax.f32 %v9580_v37, 0.0  ;;  %v4670_v25 = vmax.f32 %v9605_v10, 0.0 }
 0x5cf   :  { %7021 = vmatmul.mubr.msk.f32.gmra.mrb[72].mxu0 %vm530_vm1, %v4644_v29  ;;  %v9701_v29 = vadd.f32 %v4526_v34, %v9482_v3  ;;  %v9717_v34 = vadd.f32 %v4534_v31, %v9456_v33  ;;  %v9720_v59 = vadd.f32 %v4534_v31, %v9471_v2  ;;  %v9723_v27 = vadd.f32 %v4534_v31, %v9482_v3 }
 0x5d0   :  { %7023 = vmatprep.mubr.msk.f32.mxu0 %vm530_vm1, %v4645_v22  ;;  %v9707_v22 = vadd.f32 %v4530_v45, %v9471_v2  ;;  %v4652_v33 = vmax.f32 %v9530_v26, 0.0  ;;  %v4653_v2 = vmax.f32 %v9537_v23, 0.0  ;;  %v4654_v3 = vmax.f32 %v9540_v13, 0.0 }
 0x5d1   :  { %v4659_v26 = vmax.f32 %v9558_v51, 0.0  ;;  %v4660_v23 = vmax.f32 %v9561_v50, 0.0  ;;  %v4661_v13 = vmax.f32 %v9571_v58, 0.0  ;;  %v4666_v58 = vmax.f32 %v9586_v35, 0.0 }
 0x5d2   :  { %v4667_v51 = vmax.f32 %v9591_v8, 0.0  ;;  %v4668_v50 = vmax.f32 %v9594_v63, 0.0  ;;  %v4671_v37 = vmax.f32 %v9608_v46, 0.0  ;;  %v4673_v35 = vmax.f32 %v9614_v7, 0.0 }
 0x5d3   :  { %7024 = vmatmul.mubr.msk.f32.gmra.mrb[74].mxu0 %vm530_vm1, %v4646_v24  ;;  %v4649_v24 = vmax.f32 %v9519_v36, 0.0  ;;  %v4656_v36 = vmax.f32 %v9546_v44, 0.0  ;;  %v4662_v44 = vmax.f32 %v9574_v62, 0.0  ;;  %v4669_v62 = vmax.f32 %v9602_v5, 0.0 }
 0x5d4   :  { %7026 = vmatprep.mubr.msk.f32.mxu0 %vm530_vm1, %v4647_v16  ;;  %v4651_v16 = vmax.f32 %v9527_v54, 0.0  ;;  %v4658_v54 = vmax.f32 %v9552_v55, 0.0  ;;  %v4665_v55 = vmax.f32 %v9583_v6, 0.0  ;;  %v4672_v6 = vmax.f32 %v9611_v42, 0.0 }
 0x5d5   :  { %v4674_v8 = vmax.f32 %v9617_v9, 0.0  ;;  %v4675_v63 = vmax.f32 %v9621_v48, 0.0  ;;  %v4676_v46 = vmax.f32 %v9624_v18, 0.0  ;;  %v4677_v10 = vmax.f32 %v9633_v43, 0.0 }
 0x5d6   :  { %v4678_v42 = vmax.f32 %v9636_v32, 0.0  ;;  %v4679_v5 = vmax.f32 %v9639_v17, 0.0  ;;  %v4680_v7 = vmax.f32 %v9642_v41, 0.0  ;;  %v4681_v9 = vmax.f32 %v9645_v0, 0.0 }
 0x5d7   :  { %7027 = vmatmul.mubr.msk.f32.gmra.mrb[76].mxu0 %vm530_vm1, %v4648_v4  ;;  %v4682_v48 = vmax.f32 %v9648_v40, 0.0  ;;  %v4683_v18 = vmax.f32 %v9653_v57, 0.0  ;;  %v4684_v17 = vmax.f32 %v9656_v12, 0.0  ;;  %v4685_v43 = vmax.f32 %v9664_v30, 0.0 }
 0x5d8   :  { %7029 = vmatprep.mubr.msk.f32.mxu0 %vm530_vm1, %v4649_v24  ;;  %v4686_v32 = vmax.f32 %v9667_v20, 0.0  ;;  %v4687_v41 = vmax.f32 %v9670_v15, 0.0  ;;  %v4688_v0 = vmax.f32 %v9673_v56, 0.0  ;;  %v4689_v40 = vmax.f32 %v9676_v47, 0.0  ;;  %v10770_v47 = vld [vmem:[#allocation15_spill] sm:$0xff]  ;;  %v10773_v24 = vld [vmem:[#allocation21_spill] sm:$0xff] }
 0x5d9   :  { %v4690_v57 = vmax.f32 %v9679_v39, 0.0  ;;  %v4691_v12 = vmax.f32 %v9683_v14, 0.0  ;;  %v4692_v15 = vmax.f32 %v9686_v49, 0.0  ;;  %v4693_v45 = vmax.f32 %v9692_v60, 0.0 }
 0x5da   :  { %v4694_v30 = vmax.f32 %v9695_v19, 0.0  ;;  %v4695_v20 = vmax.f32 %v9698_v53, 0.0  ;;  %v4696_v56 = vmax.f32 %v9701_v29, 0.0  ;;  %v4697_v39 = vmax.f32 %v10770_v47, 0.0  ;;  %v10771_v53 = vld [vmem:[#allocation12_spill] sm:$0xff]  ;;  %v10772_v29 = vld [vmem:[#allocation94_spill] sm:$0xff] }
 0x5db   :  { %7030 = vmatmul.mubr.msk.f32.gmra.mrb[78].mxu0 %vm530_vm1, %v4650_v28  ;;  %v4698_v60 = vmax.f32 %v9707_v22, 0.0  ;;  %v4699_v49 = vmax.f32 %v9711_v38, 0.0  ;;  %v4700_v52 = vmax.f32 %v9717_v34, 0.0  ;;  %v4701_v14 = vmax.f32 %v9720_v59, 0.0 }
 0x5dc   :  { %7032 = vmatprep.mubr.msk.f32.mxu0 %vm530_vm1, %v4651_v16  ;;  %v4702_v19 = vmax.f32 %v9723_v27, 0.0  ;;  %v9836_v22 = vrot.slane %v10772_v29, %v10771_v53  ;;  %vm10774_vm13 = vcmp.gt.f32.partialorder %v10773_v24, 0.0  ;;  %v10775_v16 = vld [vmem:[#allocation19_spill] sm:$0xff] }
 0x5dd   :  { %vm10776_vm4 = vcmp.gt.f32.partialorder %v10775_v16, 0.0  ;;  %v10791_v29 = vld [vmem:[#allocation27_spill] sm:$0xff]  ;;  %v10793_v16 = vld [vmem:[#allocation26_spill] sm:$0xff] }
 0x5df   :  { %7033 = vmatmul.mubr.msk.f32.gmra.mrb[80].mxu0 %vm530_vm1, %v4652_v33 }
 0x5e0   :  { %7035 = vmatprep.mubr.msk.f32.mxu0 %vm530_vm1, %v4653_v2 }
 0x5e3   :  { %7036 = vmatmul.mubr.msk.f32.gmra.mrb[82].mxu0 %vm530_vm1, %v4654_v3 }
 0x5e4   :  { %7038 = vmatprep.mubr.msk.f32.mxu0 %vm530_vm1, %v4655_v11 }
 0x5e7   :  { %7039 = vmatmul.mubr.msk.f32.gmra.mrb[84].mxu0 %vm530_vm1, %v4656_v36 }
 0x5e8   :  { %7041 = vmatprep.mubr.msk.f32.mxu0 %vm530_vm1, %v4657_v1 }
 0x5eb   :  { %7042 = vmatmul.mubr.msk.f32.gmra.mrb[86].mxu0 %vm530_vm1, %v4658_v54  ;;  %v10777_v54 = vld [vmem:[#allocation25_spill] sm:$0xff] }
 0x5ec   :  { %7044 = vmatprep.mubr.msk.f32.mxu0 %vm530_vm1, %v4659_v26  ;;  %vm10778_vm12 = vcmp.gt.f32.partialorder %v10777_v54, 0.0 }
 0x5ef   :  { %7045 = vmatmul.mubr.msk.f32.gmra.mrb[88].mxu0 %vm530_vm1, %v4660_v23 }
 0x5f0   :  { %7047 = vmatprep.mubr.msk.f32.mxu0 %vm530_vm1, %v4661_v13 }
 0x5f3   :  { %7048 = vmatmul.mubr.msk.f32.gmra.mrb[90].mxu0 %vm530_vm1, %v4662_v44 }
 0x5f4   :  { %7050 = vmatprep.mubr.msk.f32.mxu0 %vm530_vm1, %v4663_v21 }
 0x5f7   :  { %7051 = vmatmul.mubr.msk.f32.gmra.mrb[92].mxu0 %vm530_vm1, %v4664_v61  ;;  %v10779_v61 = vld [vmem:[#allocation16_spill] sm:$0xff] }
 0x5f8   :  { %7053 = vmatprep.mubr.msk.f32.mxu0 %vm530_vm1, %v4665_v55  ;;  %vm10780_vm5 = vcmp.gt.f32.partialorder %v10779_v61, 0.0  ;;  %v5853_v61 = vld [vmem:[%s10247_s7 + $0x8] sm:$0xff] }
 0x5fb   :  { %7054 = vmatmul.mubr.msk.f32.gmra.mrb[94].mxu0 %vm530_vm1, %v4666_v58 }
 0x5fc   :  { %7056 = vmatprep.mubr.msk.f32.mxu0 %vm530_vm1, %v4667_v51 }
 0x5ff   :  { %7057 = vmatmul.mubr.msk.f32.gmra.mrb[96].mxu0 %vm530_vm1, %v4668_v50 }
 0x600   :  { %7059 = vmatprep.mubr.msk.f32.mxu0 %vm530_vm1, %v4669_v62  ;;  %v10781_v62 = vld [vmem:[#allocation20_spill] sm:$0xff] }
 0x603   :  { %7060 = vmatmul.mubr.msk.f32.gmra.mrb[98].mxu0 %vm530_vm1, %v4670_v25 }
 0x604   :  { %7062 = vmatprep.mubr.msk.f32.mxu0 %vm530_vm1, %v4671_v37  ;;  %v10783_v37 = vld [vmem:[#allocation17_spill] sm:$0xff] }
 0x607   :  { %7063 = vmatmul.mubr.msk.f32.gmra.mrb[100].mxu0 %vm530_vm1, %v4672_v6 }
 0x608   :  { %7065 = vmatprep.mubr.msk.f32.mxu0 %vm530_vm1, %v4673_v35 }
 0x60b   :  { %7066 = vmatmul.mubr.msk.f32.gmra.mrb[102].mxu0 %vm530_vm1, %v4674_v8 }
 0x60c   :  { %7068 = vmatprep.mubr.msk.f32.mxu0 %vm530_vm1, %v4675_v63 }
 0x60f   :  { %7069 = vmatmul.mubr.msk.f32.gmra.mrb[104].mxu0 %vm530_vm1, %v4676_v46 }
 0x610   :  { %7071 = vmatprep.mubr.msk.f32.mxu0 %vm530_vm1, %v4677_v10 }
 0x613   :  { %7072 = vmatmul.mubr.msk.f32.gmra.mrb[106].mxu0 %vm530_vm1, %v4678_v42 }
 0x614   :  { %7074 = vmatprep.mubr.msk.f32.mxu0 %vm530_vm1, %v4679_v5 }
 0x617   :  { %7075 = vmatmul.mubr.msk.f32.gmra.mrb[108].mxu0 %vm530_vm1, %v4680_v7 }
 0x618   :  { %7077 = vmatprep.mubr.msk.f32.mxu0 %vm530_vm1, %v4681_v9 }
 0x61b   :  { %7078 = vmatmul.mubr.msk.f32.gmra.mrb[110].mxu0 %vm530_vm1, %v4682_v48  ;;  %v10785_v48 = vld [vmem:[#allocation18_spill] sm:$0xff] }
 0x61c   :  { %7080 = vmatprep.mubr.msk.f32.mxu0 %vm530_vm1, %v4683_v18 }
 0x61f   :  { %7081 = vmatmul.mubr.msk.f32.gmra.mrb[112].mxu0 %vm530_vm1, %v4684_v17 }
 0x620   :  { %7083 = vmatprep.mubr.msk.f32.mxu0 %vm530_vm1, %v4685_v43 }
 0x623   :  { %7084 = vmatmul.mubr.msk.f32.gmra.mrb[114].mxu0 %vm530_vm1, %v4686_v32 }
 0x624   :  { %7086 = vmatprep.mubr.msk.f32.mxu0 %vm530_vm1, %v4687_v41  ;;  %v10787_v41 = vld [vmem:[#allocation23_spill] sm:$0xff] }
 0x627   :  { %7087 = vmatmul.mubr.msk.f32.gmra.mrb[116].mxu0 %vm530_vm1, %v4688_v0 }
 0x628   :  { %7089 = vmatprep.mubr.msk.f32.mxu0 %vm530_vm1, %v4689_v40 }
 0x62b   :  { %7090 = vmatmul.mubr.msk.f32.gmra.mrb[118].mxu0 %vm530_vm1, %v4690_v57 }
 0x62c   :  { %7092 = vmatprep.mubr.msk.f32.mxu0 %vm530_vm1, %v4691_v12 }
 0x62f   :  { %7093 = vmatmul.mubr.msk.f32.gmra.mrb[120].mxu0 %vm530_vm1, %v4692_v15 }
 0x630   :  { %7095 = vmatprep.mubr.msk.f32.mxu0 %vm530_vm1, %v4693_v45 }
 0x633   :  { %7096 = vmatmul.mubr.msk.f32.gmra.mrb[122].mxu0 %vm530_vm1, %v4694_v30 }
 0x634   :  { %7098 = vmatprep.mubr.msk.f32.mxu0 %vm530_vm1, %v4695_v20 }
 0x637   :  { %7099 = vmatmul.mubr.msk.f32.gmra.mrb[124].mxu0 %vm530_vm1, %v4696_v56 }
 0x638   :  { %7101 = vmatprep.mubr.msk.f32.mxu0 %vm530_vm1, %v4697_v39  ;;  %v10789_v39 = vld [vmem:[#allocation29_spill] sm:$0xff] }
 0x63b   :  { %7102 = vmatmul.mubr.msk.f32.gmra.mrb[126].mxu0 %vm530_vm1, %v4698_v60 }
 0x63c   :  { %7104 = vmatprep.mubr.msk.f32.mxu0 %vm530_vm1, %v4699_v49 }
 0x63f   :  { %7105 = vmatmul.mubr.msk.f32.gmra.mrb[128].mxu0 %vm530_vm1, %v4700_v52 }
 0x640   :  { %7107 = vmatprep.mubr.msk.f32.mxu0 %vm530_vm1, %v4701_v14 }
 0x643   :  { %7108 = vmatmul.mubr.msk.f32.gmra.mrb[130].mxu0 %vm530_vm1, %v4702_v19 }
 0x689   :  { %v7004_v38 = vpop.f32.mrb[60].mxu0 }
 0x68a   :  { %v5349_v31 = vadd.f32 %v7004_v38, %v9836_v22  ;;  %v4985_v4 = vpop.f32.mrb[61].mxu0 }
 0x68b   :  { %v5348_v34 = vadd.f32 %v9836_v22, %v4985_v4 }
 0x68c   :  { %v5421_v59 = vsel %vm10774_vm13, %v5349_v31, -1e+30  ;;  %vm10782_vm13 = vcmp.gt.f32.partialorder %v10781_v62, 0.0 }
 0x68d   :  { %v5493_v28 = vsel %vm530_vm1, %v5421_v59, -inf  ;;  %v5420_v27 = vsel %vm10776_vm4, %v5348_v34, -1e+30  ;;  %vm10784_vm4 = vcmp.gt.f32.partialorder %v10783_v37, 0.0  ;;  %v7250_v34 = vmov 0.0|0.0  }
 0x68e   :  { %v7007_v33 = vpop.f32.mrb[62].mxu0  ;;  %v5492_v2 = vsel %vm530_vm1, %v5420_v27, -inf  ;;  %7146 = vmatprep.subr.bf16.mxu1 %v7250_v34 }
 0x68f   :  { %v4995_v3 = vpop.f32.mrb[63].mxu0  ;;  %v5494_v11 = vmax.f32 %v5492_v2, %v5493_v28  ;;  %v5351_v36 = vadd.f32 %v7007_v33, %v9836_v22  ;;  %v10795_v33 = vld [vmem:[#allocation22_spill] sm:$0xff] }
 0x690   :  { %v5350_v1 = vadd.f32 %v9836_v22, %v4995_v3 }
 0x691   :  { %v5423_v55 = vsel %vm10780_vm5, %v5351_v36, -1e+30  ;;  %vm10788_vm5 = vcmp.gt.f32.partialorder %v10787_v41, 0.0 }
 0x692   :  { %v5422_v26 = vsel %vm10778_vm12, %v5350_v1, -1e+30  ;;  %v7010_v23 = vpop.f32.mrb[64].mxu0  ;;  %v5503_v8 = vsel %vm530_vm1, %v5423_v55, -inf  ;;  %vm10786_vm12 = vcmp.gt.f32.partialorder %v10785_v48, 0.0 }
 0x693   :  { %v5495_v13 = vsel %vm530_vm1, %v5422_v26, -inf  ;;  %v5353_v44 = vadd.f32 %v7010_v23, %v9836_v22  ;;  %v5005_v21 = vpop.f32.mrb[65].mxu0 }
 0x694   :  { %v5496_v58 = vmax.f32 %v5494_v11, %v5495_v13  ;;  %v5352_v51 = vadd.f32 %v9836_v22, %v5005_v21  ;;  %v5852_v21 = vld [vmem:[%s10247_s7] sm:$0xff] }
 0x695   :  { %v5425_v25 = vsel %vm10782_vm13, %v5353_v44, -1e+30  ;;  %vm10790_vm13 = vcmp.gt.f32.partialorder %v10789_v39, 0.0  ;;  %v7147_v62 = vpack.c.bf16 %v5853_v61, %v5852_v21 }
 0x696   :  { %v5497_v50 = vrot.slane %v5496_v58, 4  ;;  %v5424_v6 = vsel %vm10784_vm4, %v5352_v51, -1e+30  ;;  %v7013_v35 = vpop.f32.mrb[66].mxu0  ;;  %v5506_v9 = vsel %vm530_vm1, %v5425_v25, -inf  ;;  %vm10792_vm4 = vcmp.gt.f32.partialorder %v10791_v29, 0.0 }
 0x697   :  { %v5504_v63 = vsel %vm530_vm1, %v5424_v6, -inf  ;;  %v5355_v46 = vadd.f32 %v7013_v35, %v9836_v22  ;;  %v5015_v10 = vpop.f32.mrb[67].mxu0  ;;  %v10797_v51 = vld [vmem:[#allocation31_spill] sm:$0xff]  ;;  %7148 = vmatpush3.bf16.msra.mxu1 %v7147_v62 }
 0x698   :  { %v5498_v42 = vmax.f32 %v5496_v58, %v5497_v50  ;;  %v5505_v5 = vmax.f32 %v5503_v8, %v5504_v63  ;;  %v5354_v7 = vadd.f32 %v9836_v22, %v5015_v10  ;;  %v10799_v63 = vld [vmem:[#allocation24_spill] sm:$0xff] }
 0x699   :  { %v5427_v18 = vsel %vm10786_vm12, %v5355_v46, -1e+30  ;;  %vm10794_vm12 = vcmp.gt.f32.partialorder %v10793_v16, 0.0 }
 0x69a   :  { %v5499_v17 = vrot.slane %v5498_v42, 2  ;;  %v5507_v43 = vmax.f32 %v5505_v5, %v5506_v9  ;;  %v5515_v32 = vsel %vm530_vm1, %v5427_v18, -inf  ;;  %v5426_v0 = vsel %vm10788_vm5, %v5354_v7, -1e+30  ;;  %v7016_v40 = vpop.f32.mrb[68].mxu0 }
 0x69b   :  { %v5514_v57 = vsel %vm530_vm1, %v5426_v0, -inf  ;;  %v5025_v12 = vpop.f32.mrb[69].mxu0  ;;  %v5357_v30 = vadd.f32 %v7016_v40, %v9836_v22  ;;  %vm10796_vm5 = vcmp.gt.f32.partialorder %v10795_v33, 0.0  ;;  %v10801_v18 = vmov 0.0   ;;  %v10802_v40 = vld [vmem:[#allocation33_spill] sm:$0xff] }
 0x69c   :  { %v5508_v15 = vrot.slane %v5507_v43, 4  ;;  %v5516_v45 = vmax.f32 %v5514_v57, %v5515_v32  ;;  %v5356_v20 = vadd.f32 %v9836_v22, %v5025_v12  ;;  %v5500_v56 = vmax.f32 %v5498_v42, %v5499_v17  ;;  %7114 = vmatprep.subr.mxu1 %v10801_v18  ;;  %v10804_v12 = vld [vmem:[#allocation39_spill] sm:$0xff] }
 0x69d   :  { %v5429_v38 = vsel %vm10792_vm4, %v5357_v30, -1e+30  ;;  %vm10800_vm4 = vcmp.gt.f32.partialorder %v10799_v63, 0.0 }
 0x69e   :  { %v5509_v47 = vmax.f32 %v5507_v43, %v5508_v15  ;;  %v5428_v60 = vsel %vm10790_vm13, %v5356_v20, -1e+30  ;;  %v7019_v49 = vpop.f32.mrb[70].mxu0  ;;  %v5501_v24 = vrot.slane %v5500_v56, 1  ;;  %v5525_v11 = vsel %vm530_vm1, %v5429_v38, -inf }
 0x69f   :  { %v5517_v52 = vsel %vm530_vm1, %v5428_v60, -inf  ;;  %v5359_v14 = vadd.f32 %v7019_v49, %v9836_v22  ;;  %v5035_v19 = vpop.f32.mrb[71].mxu0  ;;  %vm10798_vm13 = vcmp.gt.f32.partialorder %v10797_v51, 0.0 }
 0x6a0   :  { %v5510_v53 = vrot.slane %v5509_v47, 2  ;;  %v5518_v31 = vmax.f32 %v5516_v45, %v5517_v52  ;;  %v5358_v4 = vadd.f32 %v9836_v22, %v5035_v19  ;;  %v5502_v55 = vmax.f32 %v5500_v56, %v5501_v24 }
 0x6a1   :  { %v5431_v27 = vsel %vm10794_vm12, %v5359_v14, -1e+30  ;;  %vm10803_vm12 = vcmp.gt.f32.partialorder %v10802_v40, 0.0  ;;  %v10806_v14 = vld [vmem:[#allocation38_spill] sm:$0xff]  ;;  %v10819_v40 = vld [vmem:[#allocation55_spill] sm:$0xff] }
 0x6a2   :  { %v5511_v59 = vmax.f32 %v5509_v47, %v5510_v53  ;;  %v5519_v28 = vrot.slane %v5518_v31, 4  ;;  %v5430_v2 = vsel %vm10796_vm5, %v5358_v4, -1e+30  ;;  %v7022_v3 = vpop.f32.mrb[72].mxu0  ;;  %v5528_v58 = vsel %vm530_vm1, %v5431_v27, -inf  ;;  %v10808_v53 = vld [vmem:[#allocation28_spill] sm:$0xff] }
 0x6a3   :  { %v5526_v36 = vsel %vm530_vm1, %v5430_v2, -inf  ;;  %v5361_v1 = vadd.f32 %v7022_v3, %v9836_v22  ;;  %v5045_v54 = vpop.f32.mrb[73].mxu0  ;;  %vm10805_vm5 = vcmp.gt.f32.partialorder %v10804_v12, 0.0  ;;  %v10821_v12 = vld [vmem:[#allocation40_spill] sm:$0xff] }
 0x6a4   :  { %v5512_v26 = vrot.slane %v5511_v59, 1  ;;  %v5520_v23 = vmax.f32 %v5518_v31, %v5519_v28  ;;  %v5527_v13 = vmax.f32 %v5525_v11, %v5526_v36  ;;  %v5360_v44 = vadd.f32 %v9836_v22, %v5045_v54  ;;  %v10810_v11 = vld [vmem:[#allocation41_spill] sm:$0xff] }
 0x6a5   :  { %v5433_v50 = vsel %vm10798_vm13, %v5361_v1, -1e+30  ;;  %vm10807_vm13 = vcmp.gt.f32.partialorder %v10806_v14, 0.0 }
 0x6a6   :  { %v5513_v25 = vmax.f32 %v5511_v59, %v5512_v26  ;;  %v5521_v37 = vrot.slane %v5520_v23, 2  ;;  %v5529_v6 = vmax.f32 %v5527_v13, %v5528_v58  ;;  %v5537_v35 = vsel %vm530_vm1, %v5433_v50, -inf  ;;  %v7025_v8 = vpop.f32.mrb[74].mxu0 }
 0x6a7   :  { %v5432_v46 = vsel %vm10800_vm4, %v5360_v44, -1e+30  ;;  %v5363_v10 = vadd.f32 %v7025_v8, %v9836_v22  ;;  %v5055_v42 = vpop.f32.mrb[75].mxu0  ;;  %vm10809_vm4 = vcmp.gt.f32.partialorder %v10808_v53, 0.0  ;;  %v10824_v53 = vld [vmem:[#allocation30_spill] sm:$0xff] }
 0x6a8   :  { %v5780_v5 = vsel %vm2341_vm10, %v5513_v25, %v5502_v55  ;;  %v5522_v7 = vmax.f32 %v5520_v23, %v5521_v37  ;;  %v5530_v9 = vrot.slane %v5529_v6, 4  ;;  %v5536_v48 = vsel %vm530_vm1, %v5432_v46, -inf  ;;  %v10812_v23 = vld [vmem:[#allocation34_spill] sm:$0xff] }
 0x6a9   :  { %v5538_v17 = vmax.f32 %v5536_v48, %v5537_v35  ;;  %v5362_v43 = vadd.f32 %v9836_v22, %v5055_v42  ;;  %v5435_v57 = vsel %vm10803_vm12, %v5363_v10, -1e+30  ;;  %vm10811_vm12 = vcmp.gt.f32.partialorder %v10810_v11, 0.0  ;;  %v10815_v35 = vld [vmem:[#allocation51_spill] sm:$0xff] }
 0x6aa   :  { %v5523_v32 = vrot.slane %v5522_v7, 1  ;;  %v5531_v41 = vmax.f32 %v5529_v6, %v5530_v9  ;;  %v7028_v0 = vpop.f32.mrb[76].mxu0  ;;  %v5547_v31 = vsel %vm530_vm1, %v5435_v57, -inf  ;;  %v10817_v9 = vld [vmem:[#allocation45_spill] sm:$0xff] }
 0x6ab   :  { %v5434_v15 = vsel %vm10805_vm5, %v5362_v43, -1e+30  ;;  %v5365_v45 = vadd.f32 %v7028_v0, %v9836_v22  ;;  %v5065_v30 = vpop.f32.mrb[77].mxu0  ;;  %vm10813_vm5 = vcmp.gt.f32.partialorder %v10812_v23, 0.0 }
 0x6ac   :  { %v5524_v20 = vmax.f32 %v5522_v7, %v5523_v32  ;;  %v5532_v56 = vrot.slane %v5531_v41, 2  ;;  %v5539_v47 = vsel %vm530_vm1, %v5434_v15, -inf  ;;  %v5364_v39 = vadd.f32 %v9836_v22, %v5065_v30 }
 0x6ad   :  { %v5540_v60 = vmax.f32 %v5538_v17, %v5539_v47  ;;  %v5437_v19 = vsel %vm10807_vm13, %v5365_v45, -1e+30  ;;  %vm10814_vm13 = vcmask 1043459  }
 0x6ae   :  { %v5781_v49 = vsel %vm2343_vm7, %v5524_v20, %v5780_v5  ;;  %v5533_v52 = vmax.f32 %v5531_v41, %v5532_v56  ;;  %v5436_v29 = vsel %vm10809_vm4, %v5364_v39, -1e+30  ;;  %v7031_v38 = vpop.f32.mrb[78].mxu0  ;;  %v5550_v3 = vsel %vm530_vm1, %v5437_v19, -inf }
 0x6af   :  { %v5541_v4 = vrot.slane %v5540_v60, 4  ;;  %v5548_v24 = vsel %vm530_vm1, %v5436_v29, -inf  ;;  %v5367_v59 = vadd.f32 %v7031_v38, %v9836_v22  ;;  %v5075_v28 = vpop.f32.mrb[79].mxu0  ;;  %vm10816_vm4 = vcmp.gt.f32.partialorder %v10815_v35, 0.0 }
 0x6b0   :  { %v5534_v16 = vrot.slane %v5533_v52, 1  ;;  %v5549_v27 = vmax.f32 %v5547_v31, %v5548_v24  ;;  %v5366_v33 = vadd.f32 %v9836_v22, %v5075_v28  ;;  %v10826_v28 = vld [vmem:[#allocation35_spill] sm:$0xff] }
 0x6b1   :  { %v5542_v2 = vmax.f32 %v5540_v60, %v5541_v4  ;;  %v5439_v36 = vsel %vm10811_vm12, %v5367_v59, -1e+30  ;;  %vm10818_vm12 = vcmp.gt.f32.partialorder %v10817_v9, 0.0 }
 0x6b2   :  { %v5535_v1 = vmax.f32 %v5533_v52, %v5534_v16  ;;  %v5551_v54 = vmax.f32 %v5549_v27, %v5550_v3  ;;  %v5559_v26 = vsel %vm530_vm1, %v5439_v36, -inf  ;;  %v5438_v13 = vsel %vm10813_vm5, %v5366_v33, -1e+30  ;;  %v7034_v44 = vpop.f32.mrb[80].mxu0 }
 0x6b3   :  { %v5543_v21 = vrot.slane %v5542_v2, 2  ;;  %v5558_v61 = vsel %vm530_vm1, %v5438_v13, -inf  ;;  %v5369_v55 = vadd.f32 %v7034_v44, %v9836_v22  ;;  %v5085_v58 = vpop.f32.mrb[81].mxu0  ;;  %vm10820_vm5 = vcmp.gt.f32.partialorder %v10819_v40, 0.0  ;;  %v10829_v13 = vld [vmem:[#allocation47_spill] sm:$0xff] }
 0x6b4   :  { %v5782_v51 = vsel %vm10814_vm13, %v5535_v1, %v5781_v49  ;;  %v5552_v50 = vrot.slane %v5551_v54, 4  ;;  %v5560_v62 = vmax.f32 %v5558_v61, %v5559_v26  ;;  %v5368_v25 = vadd.f32 %v9836_v22, %v5085_v58  ;;  %v10831_v61 = vld [vmem:[#allocation37_spill] sm:$0xff] }
 0x6b5   :  { %v5544_v37 = vmax.f32 %v5542_v2, %v5543_v21  ;;  %v5441_v48 = vsel %vm10818_vm12, %v5369_v55, -1e+30  ;;  %vm10822_vm13 = vcmp.gt.f32.partialorder %v10821_v12, 0.0  ;;  %vm10825_vm12 = vcmp.gt.f32.partialorder %v10824_v53, 0.0 }
 0x6b6   :  { %v5553_v6 = vmax.f32 %v5551_v54, %v5552_v50  ;;  %v5440_v8 = vsel %vm10816_vm4, %v5368_v25, -1e+30  ;;  %v7037_v63 = vpop.f32.mrb[82].mxu0  ;;  %vm10823_vm4 = vcmask 1044484   ;;  %v5569_v20 = vsel %vm530_vm1, %v5441_v48, -inf }
 0x6b7   :  { %v5545_v46 = vrot.slane %v5544_v37, 1  ;;  %v5561_v10 = vsel %vm530_vm1, %v5440_v8, -inf  ;;  %v5371_v42 = vadd.f32 %v7037_v63, %v9836_v22  ;;  %v5095_v5 = vpop.f32.mrb[83].mxu0  ;;  %v10833_v63 = vld [vmem:[#allocation42_spill] sm:$0xff] }
 0x6b8   :  { %v5554_v7 = vrot.slane %v5553_v6, 2  ;;  %v5562_v17 = vmax.f32 %v5560_v62, %v5561_v10  ;;  %v5370_v43 = vadd.f32 %v9836_v22, %v5095_v5  ;;  %v10835_v10 = vld [vmem:[#allocation32_spill] sm:$0xff] }
 0x6b9   :  { %v5546_v32 = vmax.f32 %v5544_v37, %v5545_v46  ;;  %v5443_v57 = vsel %vm10820_vm5, %v5371_v42, -1e+30  ;;  %vm10827_vm5 = vcmp.gt.f32.partialorder %v10826_v28, 0.0 }
 0x6ba   :  { %v5555_v41 = vmax.f32 %v5553_v6, %v5554_v7  ;;  %v5563_v0 = vrot.slane %v5562_v17, 4  ;;  %v5442_v15 = vsel %vm10822_vm13, %v5370_v43, -1e+30  ;;  %v7040_v45 = vpop.f32.mrb[84].mxu0  ;;  %v5572_v19 = vsel %vm530_vm1, %v5443_v57, -inf }
 0x6bb   :  { %v5783_v30 = vsel %vm10823_vm4, %v5546_v32, %v5782_v51  ;;  %v5570_v56 = vsel %vm530_vm1, %v5442_v15, -inf  ;;  %v5373_v47 = vadd.f32 %v7040_v45, %v9836_v22  ;;  %v5105_v39 = vpop.f32.mrb[85].mxu0  ;;  %vm10828_vm13 = vcmask 1045509  }
 0x6bc   :  { %v5556_v60 = vrot.slane %v5555_v41, 1  ;;  %v5564_v49 = vmax.f32 %v5562_v17, %v5563_v0  ;;  %v5571_v52 = vmax.f32 %v5569_v20, %v5570_v56  ;;  %v5372_v14 = vadd.f32 %v9836_v22, %v5105_v39  ;;  %v5854_v39 = vld [vmem:[%s10247_s7 + $0x10] sm:$0xff]  ;;  %s7251_s7 = smov 16  }
 0x6bd   :  { %v5445_v29 = vsel %vm10825_vm12, %v5373_v47, -1e+30  ;;  %vm10830_vm4 = vcmp.gt.f32.partialorder %v10829_v13, 0.0  ;;  %vm10832_vm12 = vcmp.gt.f32.partialorder %v10831_v61, 0.0  ;;  %7115 = vmatpush3.msra.mxu1 %v5854_v39 }
 0x6be   :  { %v5557_v38 = vmax.f32 %v5555_v41, %v5556_v60  ;;  %v5565_v31 = vrot.slane %v5564_v49, 2  ;;  %v5573_v4 = vmax.f32 %v5571_v52, %v5572_v19  ;;  %v5581_v24 = vsel %vm530_vm1, %v5445_v29, -inf  ;;  %v7043_v59 = vpop.f32.mrb[86].mxu0  ;;  %v10838_v60 = vld [vmem:[#allocation36_spill] sm:$0xff]  ;;  %7149 = vmatprep.subr.bf16.mxu1 %v7250_v34 }
 0x6bf   :  { %v5444_v16 = vsel %vm10827_vm5, %v5372_v14, -1e+30  ;;  %v5375_v27 = vadd.f32 %v7043_v59, %v9836_v22  ;;  %v5115_v33 = vpop.f32.mrb[87].mxu0  ;;  %vm10834_vm5 = vcmp.gt.f32.partialorder %v10833_v63, 0.0  ;;  %v10840_v59 = vld [vmem:[#allocation13_spill] sm:$0xff] }
 0x6c0   :  { %v5566_v2 = vmax.f32 %v5564_v49, %v5565_v31  ;;  %v5574_v3 = vrot.slane %v5573_v4, 4  ;;  %v5580_v11 = vsel %vm530_vm1, %v5444_v16, -inf  ;;  %v5374_v36 = vadd.f32 %v9836_v22, %v5115_v33 }
 0x6c1   :  { %v5582_v1 = vmax.f32 %v5580_v11, %v5581_v24  ;;  %v5784_v54 = vsel %vm10828_vm13, %v5557_v38, %v5783_v30  ;;  %v5447_v55 = vsel %vm10832_vm12, %v5375_v27, -1e+30  ;;  %vm10836_vm13 = vcmp.gt.f32.partialorder %v10835_v10, 0.0  ;;  %v7169_v24 = vld [vmem:[#allocation5 + $0x8] sm:$0xf] }
 0x6c2   :  { %v5567_v26 = vrot.slane %v5566_v2, 1  ;;  %v5575_v23 = vmax.f32 %v5573_v4, %v5574_v3  ;;  %v5446_v44 = vsel %vm10830_vm4, %v5374_v36, -1e+30  ;;  %v7046_v21 = vpop.f32.mrb[88].mxu0  ;;  %v5591_v7 = vsel %vm530_vm1, %v5447_v55, -inf }
 0x6c3   :  { %v5583_v58 = vsel %vm530_vm1, %v5446_v44, -inf  ;;  %v5377_v51 = vadd.f32 %v7046_v21, %v9836_v22  ;;  %v5125_v50 = vpop.f32.mrb[89].mxu0  ;;  %vm10839_vm4 = vcmp.gt.f32.partialorder %v10838_v60, 0.0  ;;  %v9988_v28 = vrot.slane %v7169_v24, %v10840_v59  ;;  %v10845_v44 = vld [vmem:[#allocation49_spill] sm:$0xff]  ;;  %v10853_v59 = vld [vmem:[#allocation63_spill] sm:$0xff] }
 0x6c4   :  { %v5568_v62 = vmax.f32 %v5566_v2, %v5567_v26  ;;  %v5576_v25 = vrot.slane %v5575_v23, 2  ;;  %v5584_v37 = vmax.f32 %v5582_v1, %v5583_v58  ;;  %v5376_v6 = vadd.f32 %v9836_v22, %v5125_v50  ;;  %v10842_v1 = vld [vmem:[#allocation86_spill] sm:$0xff] }
 0x6c5   :  { %v5449_v46 = vsel %vm10834_vm5, %v5377_v51, -1e+30  ;;  %v10844_v26 = vld [vmem:[#allocation14_spill] sm:$0xff]  ;;  %vm10846_vm12 = vcmp.gt.f32.partialorder %v10845_v44, 0.0 }
 0x6c6   :  { %v5577_v35 = vmax.f32 %v5575_v23, %v5576_v25  ;;  %v5585_v8 = vrot.slane %v5584_v37, 4  ;;  %v5448_v42 = vsel %vm10836_vm13, %v5376_v6, -1e+30  ;;  %v7049_v5 = vpop.f32.mrb[90].mxu0  ;;  %v5785_v43 = vsel %vm2351_vm3, %v5568_v62, %v5784_v54 }
 0x6c7   :  { %v5592_v9 = vsel %vm530_vm1, %v5448_v42, -inf  ;;  %v5379_v48 = vadd.f32 %v7049_v5, %v9836_v22  ;;  %v5135_v17 = vpop.f32.mrb[91].mxu0  ;;  %v5594_v57 = vsel %vm530_vm1, %v5449_v46, -inf  ;;  %v9997_v23 = vrot.slane %v7169_v24, %v10844_v26 }
 0x6c8   :  { %v5578_v32 = vrot.slane %v5577_v35, 1  ;;  %v5586_v41 = vmax.f32 %v5584_v37, %v5585_v8  ;;  %v5593_v0 = vmax.f32 %v5591_v7, %v5592_v9  ;;  %v5378_v40 = vadd.f32 %v9836_v22, %v5135_v17 }
 0x6c9   :  { %v5451_v15 = vsel %vm465_vm11, %v5379_v48, -1e+30  ;;  %vm10843_vm11 = vcmp.gt.f32.partialorder %v10842_v1, 0.0  ;;  %vm10863_vm13 = vcmask 1043459  }
 0x6ca   :  { %v5579_v45 = vmax.f32 %v5577_v35, %v5578_v32  ;;  %v5587_v30 = vrot.slane %v5586_v41, 2  ;;  %v5595_v20 = vmax.f32 %v5593_v0, %v5594_v57  ;;  %v5603_v56 = vsel %vm530_vm1, %v5451_v15, -inf  ;;  %v7052_v47 = vpop.f32.mrb[92].mxu0 }
 0x6cb   :  { %v5450_v49 = vsel %vm10839_vm4, %v5378_v40, -1e+30  ;;  %v5145_v52 = vpop.f32.mrb[93].mxu0  ;;  %v5381_v53 = vadd.f32 %v7052_v47, %v9836_v22 }
 0x6cc   :  { %v5596_v14 = vrot.slane %v5595_v20, 4  ;;  %v5602_v19 = vsel %vm530_vm1, %v5450_v49, -inf  ;;  %v5380_v29 = vadd.f32 %v9836_v22, %v5145_v52  ;;  %v5588_v38 = vmax.f32 %v5586_v41, %v5587_v30 }
 0x6cd   :  { %v5604_v31 = vmax.f32 %v5602_v19, %v5603_v56  ;;  %v5786_v4 = vsel %vm2353_vm14, %v5579_v45, %v5785_v43  ;;  %v5453_v21 = vsel %vm10846_vm12, %v5381_v53, -1e+30 }
 0x6ce   :  { %v5597_v16 = vmax.f32 %v5595_v20, %v5596_v14  ;;  %v5452_v33 = vsel %vm466_vm6, %v5380_v29, -1e+30  ;;  %v7055_v2 = vpop.f32.mrb[94].mxu0  ;;  %v5804_v54 = vsel %vm10843_vm11, %v5786_v4, 0.0  ;;  %v5589_v58 = vrot.slane %v5588_v38, 1  ;;  %v10851_v4 = vld [vmem:[#allocation57_spill] sm:$0xff] }
 0x6cf   :  { %v5605_v3 = vsel %vm530_vm1, %v5452_v33, -inf  ;;  %v5383_v11 = vadd.f32 %v7055_v2, %v9836_v22  ;;  %v5155_v36 = vpop.f32.mrb[95].mxu0  ;;  %v5811_v51 = vmul.f32 %v9988_v28, %v5804_v54  ;;  %v5613_v63 = vsel %vm530_vm1, %v5453_v21, -inf  ;;  %v10857_v21 = vld [vmem:[#allocation52_spill] sm:$0xff]  ;;  %v10864_v20 = vld [vmem:[#allocation77_spill] sm:$0xff] }
 0x6d0   :  { %v5598_v13 = vrot.slane %v5597_v16, 2  ;;  %v5606_v61 = vmax.f32 %v5604_v31, %v5605_v3  ;;  %v5382_v55 = vadd.f32 %v9836_v22, %v5155_v36  ;;  %v5590_v43 = vmax.f32 %v5588_v38, %v5589_v58 }
 0x6d1   :  { %v5455_v37 = vsel %vm469_vm8, %v5383_v11, -1e+30  ;;  %v5818_v5 = vadd.f32 %v9997_v23, %v5811_v51  ;;  %vm10854_vm6 = vcmp.gt.f32.partialorder %v10853_v59, 0.0  ;;  %vm10865_vm4 = vcmp.gt.f32.partialorder %v10864_v20, 0.0  ;;  %v10868_v59 = vld [vmem:[#allocation74_spill] sm:$0xff] }
 0x6d2   :  { %v5599_v50 = vmax.f32 %v5597_v16, %v5598_v13  ;;  %v5607_v62 = vrot.slane %v5606_v61, 4  ;;  %v5454_v35 = vsel %vm468_vm2, %v5382_v55, -1e+30  ;;  %v7058_v8 = vpop.f32.mrb[96].mxu0  ;;  %v5616_v32 = vsel %vm530_vm1, %v5455_v37, -inf  ;;  %v10855_v13 = vld [vmem:[#allocation62_spill] sm:$0xff] }
 0x6d3   :  { %v5614_v46 = vsel %vm530_vm1, %v5454_v35, -inf  ;;  %v5385_v10 = vadd.f32 %v7058_v8, %v9836_v22  ;;  %v5165_v42 = vpop.f32.mrb[97].mxu0  ;;  %v5821_v40 = vmax.f32 %v5818_v5, 0.0  ;;  %vm10852_vm2 = vcmp.gt.f32.partialorder %v10851_v4, 0.0 }
 0x6d4   :  { %v5600_v7 = vrot.slane %v5599_v50, 1  ;;  %v5608_v9 = vmax.f32 %v5606_v61, %v5607_v62  ;;  %v5615_v48 = vmax.f32 %v5613_v63, %v5614_v46  ;;  %v5384_v17 = vadd.f32 %v9836_v22, %v5165_v42  ;;  %v10859_v46 = vld [vmem:[#allocation65_spill] sm:$0xff] }
 0x6d5   :  { %v5457_v0 = vsel %vm471_vm9, %v5385_v10, -1e+30  ;;  %5836 = vrot.lane.b32.xlu0 %v5821_v40, %s7251_s7  ;;  %vm10856_vm8 = vcmp.gt.f32.partialorder %v10855_v13, 0.0  ;;  %vm10858_vm9 = vcmp.gt.f32.partialorder %v10857_v21, 0.0  ;;  %vm10869_vm12 = vcmp.gt.f32.partialorder %v10868_v59, 0.0 }
 0x6d6   :  { %v5601_v57 = vmax.f32 %v5599_v50, %v5600_v7  ;;  %v5609_v12 = vrot.slane %v5608_v9, 2  ;;  %v5617_v15 = vmax.f32 %v5615_v48, %v5616_v32  ;;  %v5625_v45 = vsel %vm530_vm1, %v5457_v0, -inf  ;;  %v7061_v30 = vpop.f32.mrb[98].mxu0 }
 0x6d7   :  { %v5456_v56 = vsel %vm470_vm15, %v5384_v17, -1e+30  ;;  %v5387_v47 = vadd.f32 %v7061_v30, %v9836_v22  ;;  %v5175_v39 = vpop.f32.mrb[99].mxu0  ;;  %vm10860_vm15 = vcmp.gt.f32.partialorder %v10859_v46, 0.0 }
 0x6d8   :  { %v5787_v60 = vsel %vm2341_vm10, %v5601_v57, %v5590_v43  ;;  %v5610_v49 = vmax.f32 %v5608_v9, %v5609_v12  ;;  %v5618_v52 = vrot.slane %v5617_v15, 4  ;;  %v5624_v14 = vsel %vm530_vm1, %v5456_v56, -inf  ;;  %v10861_v9 = vld [vmem:[#allocation58_spill] sm:$0xff] }
 0x6d9   :  { %v5626_v19 = vmax.f32 %v5624_v14, %v5625_v45  ;;  %v5386_v53 = vadd.f32 %v9836_v22, %v5175_v39  ;;  %v5459_v24 = vsel %vm10852_vm2, %v5387_v47, -1e+30  ;;  %vm10862_vm5 = vcmp.gt.f32.partialorder %v10861_v9, 0.0 }
 0x6da   :  { %v5611_v29 = vrot.slane %v5610_v49, 1  ;;  %v5619_v38 = vmax.f32 %v5617_v15, %v5618_v52  ;;  %v7064_v31 = vpop.f32.mrb[100].mxu0  ;;  %v5635_v58 = vsel %vm530_vm1, %v5459_v24, -inf }
 0x6db   :  { %v5458_v16 = vsel %vm10854_vm6, %v5386_v53, -1e+30  ;;  %v5389_v27 = vadd.f32 %v7064_v31, %v9836_v22  ;;  %v5185_v33 = vpop.f32.mrb[101].mxu0  ;;  %vm10872_vm6 = vcmask 1044484  }
 0x6dc   :  { %v5612_v2 = vmax.f32 %v5610_v49, %v5611_v29  ;;  %v5620_v3 = vrot.slane %v5619_v38, 2  ;;  %v5627_v11 = vsel %vm530_vm1, %v5458_v16, -inf  ;;  %v5388_v36 = vadd.f32 %v9836_v22, %v5185_v33 }
 0x6dd   :  { %v5628_v1 = vmax.f32 %v5626_v19, %v5627_v11  ;;  %v5461_v44 = vsel %vm10856_vm8, %v5389_v27, -1e+30  ;;  %v10866_v19 = vld [vmem:[#allocation69_spill] sm:$0xff]  ;;  %v10870_v27 = vld [vmem:[#allocation64_spill] sm:$0xff] }
 0x6de   :  { %v5788_v54 = vsel %vm2343_vm7, %v5612_v2, %v5787_v60  ;;  %v5621_v26 = vmax.f32 %v5619_v38, %v5620_v3  ;;  %v5460_v61 = vsel %vm10858_vm9, %v5388_v36, -1e+30  ;;  %v7067_v55 = vpop.f32.mrb[102].mxu0  ;;  %v5638_v63 = vsel %vm530_vm1, %v5461_v44, -inf }
 0x6df   :  { %v5629_v51 = vrot.slane %v5628_v1, 4  ;;  %v5636_v50 = vsel %vm530_vm1, %v5460_v61, -inf  ;;  %v5391_v62 = vadd.f32 %v7067_v55, %v9836_v22  ;;  %v5195_v25 = vpop.f32.mrb[103].mxu0  ;;  %vm10867_vm11 = vcmp.gt.f32.partialorder %v10866_v19, 0.0  ;;  %v10873_v55 = vld [vmem:[#allocation54_spill] sm:$0xff] }
 0x6e0   :  { %v5622_v37 = vrot.slane %v5621_v26, 1  ;;  %v5637_v6 = vmax.f32 %v5635_v58, %v5636_v50  ;;  %v5390_v35 = vadd.f32 %v9836_v22, %v5195_v25  ;;  %vm10871_vm2 = vcmp.gt.f32.partialorder %v10870_v27, 0.0 }
 0x6e1   :  { %v5630_v8 = vmax.f32 %v5628_v1, %v5629_v51  ;;  %v5463_v10 = vsel %vm10860_vm15, %v5391_v62, -1e+30  ;;  %vm10874_vm8 = vcmp.gt.f32.partialorder %v10873_v55, 0.0  ;;  %vm10877_vm15 = vcmask 1045509  }
 0x6e2   :  { %v5623_v42 = vmax.f32 %v5621_v26, %v5622_v37  ;;  %v5639_v5 = vmax.f32 %v5637_v6, %v5638_v63  ;;  %v5647_v7 = vsel %vm530_vm1, %v5463_v10, -inf  ;;  %v5462_v48 = vsel %vm10862_vm5, %v5390_v35, -1e+30  ;;  %v7070_v17 = vpop.f32.mrb[104].mxu0  ;;  %v10875_v6 = vld [vmem:[#allocation59_spill] sm:$0xff] }
 0x6e3   :  { %v5631_v43 = vrot.slane %v5630_v8, 2  ;;  %v5646_v32 = vsel %vm530_vm1, %v5462_v48, -inf  ;;  %v5393_v41 = vadd.f32 %v7070_v17, %v9836_v22  ;;  %v5205_v0 = vpop.f32.mrb[105].mxu0  ;;  %vm10876_vm9 = vcmp.gt.f32.partialorder %v10875_v6, 0.0  ;;  %v10890_v6 = vld [vmem:[#allocation70_spill] sm:$0xff] }
 0x6e4   :  { %v5789_v40 = vsel %vm10863_vm13, %v5623_v42, %v5788_v54  ;;  %v5640_v57 = vrot.slane %v5639_v5, 4  ;;  %v5648_v12 = vmax.f32 %v5646_v32, %v5647_v7  ;;  %v5392_v15 = vadd.f32 %v9836_v22, %v5205_v0  ;;  %v10880_v0 = vld [vmem:[#allocation61_spill] sm:$0xff] }
 0x6e5   :  { %v5632_v45 = vmax.f32 %v5630_v8, %v5631_v43  ;;  %v5465_v53 = vsel %vm10867_vm11, %v5393_v41, -1e+30  ;;  %v10878_v43 = vld [vmem:[#allocation71_spill] sm:$0xff]  ;;  %vm10881_vm13 = vcmp.gt.f32.partialorder %v10880_v0, 0.0 }
 0x6e6   :  { %v5641_v30 = vmax.f32 %v5639_v5, %v5640_v57  ;;  %v5464_v56 = vsel %vm10865_vm4, %v5392_v15, -1e+30  ;;  %v7073_v47 = vpop.f32.mrb[106].mxu0  ;;  %v5657_v11 = vsel %vm530_vm1, %v5465_v53, -inf  ;;  %vm10879_vm5 = vcmp.gt.f32.partialorder %v10878_v43, 0.0 }
 0x6e7   :  { %v5633_v39 = vrot.slane %v5632_v45, 1  ;;  %v5649_v60 = vsel %vm530_vm1, %v5464_v56, -inf  ;;  %v5395_v49 = vadd.f32 %v7073_v47, %v9836_v22  ;;  %v5215_v52 = vpop.f32.mrb[107].mxu0 }
 0x6e8   :  { %v5642_v14 = vrot.slane %v5641_v30, 2  ;;  %v5650_v29 = vmax.f32 %v5648_v12, %v5649_v60  ;;  %v5394_v38 = vadd.f32 %v9836_v22, %v5215_v52  ;;  %v10882_v60 = vld [vmem:[#allocation66_spill] sm:$0xff]  ;;  %v10884_v52 = vld [vmem:[#allocation56_spill] sm:$0xff] }
 0x6e9   :  { %v5634_v31 = vmax.f32 %v5632_v45, %v5633_v39  ;;  %v5467_v16 = vsel %vm10869_vm12, %v5395_v49, -1e+30  ;;  %vm10883_vm4 = vcmp.gt.f32.partialorder %v10882_v60, 0.0  ;;  %vm10885_vm11 = vcmp.gt.f32.partialorder %v10884_v52, 0.0 }
 0x6ea   :  { %v5643_v4 = vmax.f32 %v5641_v30, %v5642_v14  ;;  %v5651_v24 = vrot.slane %v5650_v29, 4  ;;  %v5466_v33 = vsel %vm10871_vm2, %v5394_v38, -1e+30  ;;  %v7076_v2 = vpop.f32.mrb[108].mxu0  ;;  %v5660_v61 = vsel %vm530_vm1, %v5467_v16, -inf }
 0x6eb   :  { %v5790_v3 = vsel %vm10872_vm6, %v5634_v31, %v5789_v40  ;;  %v5658_v36 = vsel %vm530_vm1, %v5466_v33, -inf  ;;  %v5397_v1 = vadd.f32 %v7076_v2, %v9836_v22  ;;  %v5225_v54 = vpop.f32.mrb[109].mxu0  ;;  %v10886_v2 = vld [vmem:[#allocation67_spill] sm:$0xff]  ;;  %vm10891_vm6 = vcmp.gt.f32.partialorder %v10890_v6, 0.0 }
 0x6ec   :  { %v5644_v26 = vrot.slane %v5643_v4, 1  ;;  %v5652_v13 = vmax.f32 %v5650_v29, %v5651_v24  ;;  %v5659_v44 = vmax.f32 %v5657_v11, %v5658_v36  ;;  %v5396_v21 = vadd.f32 %v9836_v22, %v5225_v54 }
 0x6ed   :  { %v5469_v58 = vsel %vm10874_vm8, %v5397_v1, -1e+30  ;;  %vm10887_vm12 = vcmp.gt.f32.partialorder %v10886_v2, 0.0  ;;  %v10902_v2 = vld [vmem:[#allocation83_spill] sm:$0xff] }
 0x6ee   :  { %v5645_v51 = vmax.f32 %v5643_v4, %v5644_v26  ;;  %v5653_v50 = vrot.slane %v5652_v13, 2  ;;  %v5661_v62 = vmax.f32 %v5659_v44, %v5660_v61  ;;  %v5669_v25 = vsel %vm530_vm1, %v5469_v58, -inf  ;;  %v7079_v37 = vpop.f32.mrb[110].mxu0 }
 0x6ef   :  { %v5468_v35 = vsel %vm10876_vm9, %v5396_v21, -1e+30  ;;  %v5399_v8 = vadd.f32 %v7079_v37, %v9836_v22  ;;  %v5235_v63 = vpop.f32.mrb[111].mxu0 }
 0x6f0   :  { %v5654_v46 = vmax.f32 %v5652_v13, %v5653_v50  ;;  %v5662_v10 = vrot.slane %v5661_v62, 4  ;;  %v5668_v42 = vsel %vm530_vm1, %v5468_v35, -inf  ;;  %v5398_v5 = vadd.f32 %v9836_v22, %v5235_v63  ;;  %v10888_v13 = vld [vmem:[#allocation60_spill] sm:$0xff] }
 0x6f1   :  { %v5670_v7 = vmax.f32 %v5668_v42, %v5669_v25  ;;  %v5791_v9 = vsel %vm10877_vm15, %v5645_v51, %v5790_v3  ;;  %v5471_v40 = vsel %vm10881_vm13, %v5399_v8, -1e+30  ;;  %vm10889_vm2 = vcmp.gt.f32.partialorder %v10888_v13, 0.0  ;;  %v10892_v42 = vld [vmem:[#allocation91_spill] sm:$0xff] }
 0x6f2   :  { %v5655_v48 = vrot.slane %v5654_v46, 1  ;;  %v5663_v17 = vmax.f32 %v5661_v62, %v5662_v10  ;;  %v5470_v32 = vsel %vm10879_vm5, %v5398_v5, -1e+30  ;;  %v7082_v41 = vpop.f32.mrb[112].mxu0  ;;  %v5679_v53 = vsel %vm530_vm1, %v5471_v40, -inf }
 0x6f3   :  { %v5671_v57 = vsel %vm530_vm1, %v5470_v32, -inf  ;;  %v5401_v12 = vadd.f32 %v7082_v41, %v9836_v22  ;;  %v5245_v15 = vpop.f32.mrb[113].mxu0  ;;  %vm10893_vm8 = vcmp.gt.f32.partialorder %v10892_v42, 0.0 }
 0x6f4   :  { %v5656_v45 = vmax.f32 %v5654_v46, %v5655_v48  ;;  %v5664_v30 = vrot.slane %v5663_v17, 2  ;;  %v5672_v20 = vmax.f32 %v5670_v7, %v5671_v57  ;;  %v5400_v56 = vadd.f32 %v9836_v22, %v5245_v15  ;;  %v10896_v57 = vld [vmem:[#allocation78_spill] sm:$0xff]  ;;  %v10898_v15 = vld [vmem:[#allocation68_spill] sm:$0xff] }
 0x6f5   :  { %v5473_v49 = vsel %vm10883_vm4, %v5401_v12, -1e+30  ;;  %vm10897_vm15 = vcmp.gt.f32.partialorder %v10896_v57, 0.0  ;;  %vm10899_vm5 = vcmp.gt.f32.partialorder %v10898_v15, 0.0  ;;  %vm10903_vm4 = vcmp.gt.f32.partialorder %v10902_v2, 0.0 }
 0x6f6   :  { %v5665_v47 = vmax.f32 %v5663_v17, %v5664_v30  ;;  %v5673_v39 = vrot.slane %v5672_v20, 4  ;;  %v5472_v14 = vsel %vm10885_vm11, %v5400_v56, -1e+30  ;;  %v7085_v19 = vpop.f32.mrb[114].mxu0  ;;  %v5792_v4 = vsel %vm2351_vm3, %v5656_v45, %v5791_v9  ;;  %v10894_v9 = vld [vmem:[#allocation73_spill] sm:$0xff] }
 0x6f7   :  { %v5680_v29 = vsel %vm530_vm1, %v5472_v14, -inf  ;;  %v5403_v38 = vadd.f32 %v7085_v19, %v9836_v22  ;;  %v5255_v31 = vpop.f32.mrb[115].mxu0  ;;  %v5682_v33 = vsel %vm530_vm1, %v5473_v49, -inf  ;;  %vm10895_vm9 = vcmp.gt.f32.partialorder %v10894_v9, 0.0  ;;  %v10909_v9 = vld [vmem:[#allocation85_spill] sm:$0xff] }
 0x6f8   :  { %v5666_v24 = vrot.slane %v5665_v47, 1  ;;  %v5674_v59 = vmax.f32 %v5672_v20, %v5673_v39  ;;  %v5681_v16 = vmax.f32 %v5679_v53, %v5680_v29  ;;  %v5402_v27 = vadd.f32 %v9836_v22, %v5255_v31 }
 0x6f9   :  { %v5475_v3 = vsel %vm10887_vm12, %v5403_v38, -1e+30  ;;  %v10900_v38 = vld [vmem:[#allocation72_spill] sm:$0xff] }
 0x6fa   :  { %v5667_v11 = vmax.f32 %v5665_v47, %v5666_v24  ;;  %v5675_v36 = vrot.slane %v5674_v59, 2  ;;  %v5683_v1 = vmax.f32 %v5681_v16, %v5682_v33  ;;  %v5691_v54 = vsel %vm530_vm1, %v5475_v3, -inf  ;;  %v7088_v26 = vpop.f32.mrb[116].mxu0 }
 0x6fb   :  { %v5474_v44 = vsel %vm10889_vm2, %v5402_v27, -1e+30  ;;  %v5265_v21 = vpop.f32.mrb[117].mxu0  ;;  %v5405_v58 = vadd.f32 %v7088_v26, %v9836_v22  ;;  %vm10901_vm13 = vcmp.gt.f32.partialorder %v10900_v38, 0.0 }
 0x6fc   :  { %v5684_v61 = vrot.slane %v5683_v1, 4  ;;  %v5690_v55 = vsel %vm530_vm1, %v5474_v44, -inf  ;;  %v5404_v51 = vadd.f32 %v9836_v22, %v5265_v21  ;;  %v5676_v50 = vmax.f32 %v5674_v59, %v5675_v36 }
 0x6fd   :  { %v5692_v62 = vmax.f32 %v5690_v55, %v5691_v54  ;;  %v5793_v25 = vsel %vm2353_vm14, %v5667_v11, %v5792_v4  ;;  %v5477_v48 = vsel %vm10895_vm9, %v5405_v58, -1e+30 }
 0x6fe   :  { %v5685_v37 = vmax.f32 %v5683_v1, %v5684_v61  ;;  %v5476_v35 = vsel %vm10891_vm6, %v5404_v51, -1e+30  ;;  %v7091_v8 = vpop.f32.mrb[118].mxu0  ;;  %v5805_v5 = vsel %vm10893_vm8, %v5793_v25, 0.0  ;;  %v5677_v32 = vrot.slane %v5676_v50, 1  ;;  %v10904_v51 = vld [vmem:[#allocation79_spill] sm:$0xff] }
 0x6ff   :  { %v5693_v63 = vsel %vm530_vm1, %v5476_v35, -inf  ;;  %v5407_v46 = vadd.f32 %v7091_v8, %v9836_v22  ;;  %v5275_v10 = vpop.f32.mrb[119].mxu0  ;;  %v5812_v41 = vmul.f32 %v9988_v28, %v5805_v5  ;;  %v5701_v20 = vsel %vm530_vm1, %v5477_v48, -inf }
 0x700   :  { %v5686_v7 = vrot.slane %v5685_v37, 2  ;;  %v5694_v17 = vmax.f32 %v5692_v62, %v5693_v63  ;;  %v5406_v43 = vadd.f32 %v9836_v22, %v5275_v10  ;;  %v5678_v53 = vmax.f32 %v5676_v50, %v5677_v32  ;;  %v10906_v62 = vld [vmem:[#allocation81_spill] sm:$0xff] }
 0x701   :  { %v5479_v12 = vsel %vm10897_vm15, %v5407_v46, -1e+30  ;;  %v5819_v60 = vadd.f32 %v9997_v23, %v5812_v41  ;;  %vm10905_vm11 = vcmp.gt.f32.partialorder %v10904_v51, 0.0  ;;  %vm10907_vm12 = vcmp.gt.f32.partialorder %v10906_v62, 0.0 }
 0x702   :  { %v5687_v0 = vmax.f32 %v5685_v37, %v5686_v7  ;;  %v5695_v40 = vrot.slane %v5694_v17, 4  ;;  %v5478_v45 = vsel %vm10899_vm5, %v5406_v43, -1e+30  ;;  %v7094_v30 = vpop.f32.mrb[120].mxu0  ;;  %v5704_v29 = vsel %vm530_vm1, %v5479_v12, -inf  ;;  %v10908_v37 = vld [vmem:[#allocation11_spill] sm:$0xff] }
 0x703   :  { %v5702_v56 = vsel %vm530_vm1, %v5478_v45, -inf  ;;  %v5409_v47 = vadd.f32 %v7094_v30, %v9836_v22  ;;  %v5285_v39 = vpop.f32.mrb[121].mxu0  ;;  %v5822_v4 = vmax.f32 %v5819_v60, 0.0  ;;  %vm10917_vm8 = vcmask 1043459  }
 0x704   :  { %v5688_v49 = vrot.slane %v5687_v0, 1  ;;  %v5696_v52 = vmax.f32 %v5694_v17, %v5695_v40  ;;  %v5703_v14 = vmax.f32 %v5701_v20, %v5702_v56  ;;  %v5408_v19 = vadd.f32 %v9836_v22, %v5285_v39  ;;  %v10911_v17 = vld [vmem:[#allocation80_spill] sm:$0xff] }
 0x705   :  { %v5481_v31 = vsel %vm10901_vm13, %v5409_v47, -1e+30  ;;  %5838 = vrot.lane.b32.xlu1 %v5822_v4, %s7251_s7  ;;  %vm10912_vm2 = vcmp.gt.f32.partialorder %v10911_v17, 0.0  ;;  %v10913_v47 = vld [vmem:[#allocation84_spill] sm:$0xff] }
 0x706   :  { %v5689_v24 = vmax.f32 %v5687_v0, %v5688_v49  ;;  %v5697_v59 = vrot.slane %v5696_v52, 2  ;;  %v5705_v16 = vmax.f32 %v5703_v14, %v5704_v29  ;;  %v5713_v27 = vsel %vm530_vm1, %v5481_v31, -inf  ;;  %v7097_v33 = vpop.f32.mrb[122].mxu0  ;;  %v10915_v14 = vld [vmem:[#allocation82_spill] sm:$0xff] }
 0x707   :  { %v5480_v3 = vsel %vm10903_vm4, %v5408_v19, -1e+30  ;;  %v5411_v11 = vadd.f32 %v7097_v33, %v9836_v22  ;;  %v5295_v36 = vpop.f32.mrb[123].mxu0  ;;  %vm10916_vm6 = vcmp.gt.f32.partialorder %v10915_v14, 0.0  ;;  %vm10926_vm4 = vcmask 1044484   ;;  %v10930_v14 = vld [vmem:[#allocation75_spill] sm:$0xff] }
 0x708   :  { %v5794_v1 = vsel %vm2341_vm10, %v5689_v24, %v5678_v53  ;;  %v5698_v54 = vmax.f32 %v5696_v52, %v5697_v59  ;;  %v5706_v26 = vrot.slane %v5705_v16, 4  ;;  %v5712_v13 = vsel %vm530_vm1, %v5480_v3, -inf  ;;  %v10918_v3 = vld [vmem:[#allocation89_spill] sm:$0xff] }
 0x709   :  { %v5714_v44 = vmax.f32 %v5712_v13, %v5713_v27  ;;  %v5410_v21 = vadd.f32 %v9836_v22, %v5295_v36  ;;  %v5483_v50 = vsel %vm10905_vm11, %v5411_v11, -1e+30  ;;  %5828 = vrot.lane.b32.xlu1 %v10908_v37, %s7249_s21  ;;  %vm10910_vm10 = vcmp.gt.f32.partialorder %v10909_v9, 0.0 }
 0x70a   :  { %v5699_v61 = vrot.slane %v5698_v54, 1  ;;  %v5707_v55 = vmax.f32 %v5705_v16, %v5706_v26  ;;  %v7100_v58 = vpop.f32.mrb[124].mxu0  ;;  %v5723_v41 = vsel %vm530_vm1, %v5483_v50, -inf  ;;  %vm10919_vm9 = vcmp.gt.f32.partialorder %v10918_v3, 0.0 }
 0x70b   :  { %v5482_v25 = vsel %vm10907_vm12, %v5410_v21, -1e+30  ;;  %v5413_v6 = vadd.f32 %v7100_v58, %v9836_v22  ;;  %v5305_v35 = vpop.f32.mrb[125].mxu0  ;;  %v10920_v21 = vld [vmem:[#allocation88_spill] sm:$0xff]  ;;  %vm10927_vm11 = vcmask 1045509  }
 0x70c   :  { %v5700_v8 = vmax.f32 %v5698_v54, %v5699_v61  ;;  %v5708_v63 = vrot.slane %v5707_v55, 2  ;;  %v5715_v46 = vsel %vm530_vm1, %v5482_v25, -inf  ;;  %v5412_v10 = vadd.f32 %v9836_v22, %v5305_v35  ;;  %v10922_v25 = vld [vmem:[#allocation90_spill] sm:$0xff] }
 0x70d   :  { %v5716_v42 = vmax.f32 %v5714_v44, %v5715_v46  ;;  %v5485_v48 = vsel %vm10910_vm10, %v5413_v6, -1e+30  ;;  %vm10921_vm15 = vcmp.gt.f32.partialorder %v10920_v21, 0.0  ;;  %vm10923_vm5 = vcmp.gt.f32.partialorder %v10922_v25, 0.0  ;;  %v10924_v6 = vld [vmem:[#allocation87_spill] sm:$0xff]  ;;  %v6108_v25 = vld [vmem:[%s10251_s11 + $0x8] sm:$0xff] }
 0x70e   :  { %v5795_v5 = vsel %vm2343_vm7, %v5700_v8, %v5794_v1  ;;  %v5709_v7 = vmax.f32 %v5707_v55, %v5708_v63  ;;  %v5484_v43 = vsel %vm10912_vm2, %v5412_v10, -1e+30  ;;  %v7103_v32 = vpop.f32.mrb[126].mxu0  ;;  %v5726_v56 = vsel %vm530_vm1, %v5485_v48, -inf }
 0x70f   :  { %v5717_v0 = vrot.slane %v5716_v42, 4  ;;  %v5724_v40 = vsel %vm530_vm1, %v5484_v43, -inf  ;;  %v5415_v57 = vadd.f32 %v7103_v32, %v9836_v22  ;;  %v5315_v12 = vpop.f32.mrb[127].mxu0  ;;  %vm10914_vm7 = vcmp.gt.f32.partialorder %v10913_v47, 0.0 }
 0x710   :  { %v5710_v15 = vrot.slane %v5709_v7, 1  ;;  %v5725_v45 = vmax.f32 %v5723_v41, %v5724_v40  ;;  %v5414_v30 = vadd.f32 %v9836_v22, %v5315_v12  ;;  %vm10925_vm13 = vcmp.gt.f32.partialorder %v10924_v6, 0.0 }
 0x711   :  { %v5718_v20 = vmax.f32 %v5716_v42, %v5717_v0  ;;  %v5487_v39 = vsel %vm10914_vm7, %v5415_v57, -1e+30  ;;  %vm5848_vm10 = vcmask 130048  }
 0x712   :  { %v5711_v60 = vmax.f32 %v5709_v7, %v5710_v15  ;;  %v5727_v49 = vmax.f32 %v5725_v45, %v5726_v56  ;;  %v5735_v52 = vsel %vm530_vm1, %v5487_v39, -inf  ;;  %v5486_v19 = vsel %vm10916_vm6, %v5414_v30, -1e+30  ;;  %v7106_v53 = vpop.f32.mrb[128].mxu0  ;;  %v10928_v56 = vld [vmem:[#allocation76_spill] sm:$0xff] }
 0x713   :  { %v5719_v29 = vrot.slane %v5718_v20, 2  ;;  %v5734_v38 = vsel %vm530_vm1, %v5486_v19, -inf  ;;  %v5417_v31 = vadd.f32 %v7106_v53, %v9836_v22  ;;  %v5325_v4 = vpop.f32.mrb[129].mxu0  ;;  %vm10929_vm12 = vcmp.gt.f32.partialorder %v10928_v56, 0.0 }
 0x714   :  { %v5796_v24 = vsel %vm10917_vm8, %v5711_v60, %v5795_v5  ;;  %v5728_v59 = vrot.slane %v5727_v49, 4  ;;  %v5736_v16 = vmax.f32 %v5734_v38, %v5735_v52  ;;  %v5416_v27 = vadd.f32 %v9836_v22, %v5325_v4  ;;  %v5825_v52 = vpop.permute.xlu1 %5824 }
 0x715   :  { %v5720_v33 = vmax.f32 %v5718_v20, %v5719_v29  ;;  %v5489_v61 = vsel %vm10921_vm15, %v5417_v31, -1e+30  ;;  %v5845_v19 = vsel %vm530_vm1, %v10930_v14, %v5825_v52 }
 0x716   :  { %v5729_v2 = vmax.f32 %v5727_v49, %v5728_v59  ;;  %v5488_v11 = vsel %vm10919_vm9, %v5416_v27, -1e+30  ;;  %v7109_v36 = vpop.f32.mrb[130].mxu0  ;;  %v5745_v63 = vsel %vm530_vm1, %v5489_v61, -inf  ;;  %v10934_v59 = vld [vmem:[#allocation93_spill] sm:$0xff] }
 0x717   :  { %v5721_v1 = vrot.slane %v5720_v33, 1  ;;  %v5737_v54 = vsel %vm530_vm1, %v5488_v11, -inf  ;;  %v5419_v26 = vadd.f32 %v7109_v36, %v9836_v22  ;;  %v5335_v13 = vpop.f32.mrb[131].mxu0  ;;  %v6447_v11 = vld [vmem:[%s10248_s8] ss:$0 sm:$0xff] }
 0x718   :  { %v5730_v44 = vrot.slane %v5729_v2, 2  ;;  %v5738_v55 = vmax.f32 %v5736_v16, %v5737_v54  ;;  %v5418_v58 = vadd.f32 %v9836_v22, %v5335_v13  ;;  %v5827_v38 = vpop.permute.xlu1 %5826 }
 0x719   :  { %v5722_v51 = vmax.f32 %v5720_v33, %v5721_v1  ;;  %v5491_v37 = vsel %vm10923_vm5, %v5419_v26, -1e+30 }
 0x71a   :  { %v5731_v50 = vmax.f32 %v5729_v2, %v5730_v44  ;;  %v5739_v62 = vrot.slane %v5738_v55, 4  ;;  %v5490_v35 = vsel %vm10925_vm13, %v5418_v58, -1e+30  ;;  %v5748_v22 = vsel %vm530_vm1, %v5491_v37, -inf  ;;  %v6025_v58 = vld [vmem:[%s10249_s9] sm:$0xff] }
 0x71b   :  { %v5797_v8 = vsel %vm10926_vm4, %v5722_v51, %v5796_v24  ;;  %v5746_v46 = vsel %vm530_vm1, %v5490_v35, -inf }
 0x71c   :  { %v5732_v10 = vrot.slane %v5731_v50, 1  ;;  %v5740_v42 = vmax.f32 %v5738_v55, %v5739_v62  ;;  %v5747_v5 = vmax.f32 %v5745_v63, %v5746_v46  ;;  %v5951_v55 = vld [vmem:[#allocation2] sm:$0x3] }
 0x71d   :  { %v6107_v62 = vld [vmem:[%s10251_s11] sm:$0xff]  ;;  %s7214_s11 = scalar_lea.vmem %s6198_s18, 32 }
 0x71e   :  { %v5733_v7 = vmax.f32 %v5731_v50, %v5732_v10  ;;  %v5741_v9 = vrot.slane %v5740_v42, 2  ;;  %v5749_v48 = vmax.f32 %v5747_v5, %v5748_v22  ;;  %v7153_v37 = vpack.c.bf16 %v6108_v25, %v6107_v62  ;;  %p7215_p2 = scmp.ne.s32.totalorder %s6198_s18, %s7214_s11  ;;  %p7220_p4 = scmp.lt.s32.totalorder %s7214_s11, %s7214_s11 }
 0x720   :  { %v5742_v17 = vmax.f32 %v5740_v42, %v5741_v9  ;;  %v5750_v43 = vrot.slane %v5749_v48, 4  ;;  %v5798_v32 = vsel %vm10927_vm11, %v5733_v7, %v5797_v8  ;;  %p7221_p5 = por %p7220_p4, %p7219_p3 }
 0x722   :  { %v5743_v41 = vrot.slane %v5742_v17, 1  ;;  %v5751_v0 = vmax.f32 %v5749_v48, %v5750_v43  ;;  %p7222_p6 = pnand %p7221_p5, %p7215_p2 }
 0x724   :  { %v5744_v40 = vmax.f32 %v5742_v17, %v5743_v41  ;;  %v5752_v57 = vrot.slane %v5751_v0, 2 }
 0x726   :  { %v5753_v12 = vmax.f32 %v5751_v0, %v5752_v57  ;;  %v5799_v15 = vsel %vm2351_vm3, %v5744_v40, %v5798_v32  ;;  %vm10931_vm3 = vcmask 195584  }
 0x727   :  { %vm10935_vm2 = vmmov %vm10931_vm3 }
 0x728   :  { %v5754_v45 = vrot.slane %v5753_v12, 1  ;;  %vm10936_vm7 = vmmov %vm10935_vm2 }
 0x72a   :  { %v5755_v30 = vmax.f32 %v5753_v12, %v5754_v45 }
 0x72c   :  { %v5800_v20 = vsel %vm2353_vm14, %v5755_v30, %v5799_v15  ;;  %vm10933_vm14 = vmmov %vm10931_vm3 }
 0x72d   :  { %v5806_v47 = vsel %vm10929_vm12, %v5800_v20, 0.0 }
 0x72e   :  { %v5813_v39 = vmul.f32 %v9988_v28, %v5806_v47  ;;  %v10932_v28 = vld [vmem:[#allocation92_spill] sm:$0xff] }
 0x730   :  { %v5820_v60 = vadd.f32 %v9997_v23, %v5813_v39  ;;  %v5846_v23 = vsel %vm530_vm1, %v10932_v28, %v5827_v38 }
 0x732   :  { %v5823_v49 = vmax.f32 %v5820_v60, 0.0 }
 0x734   :  { %5840 = vrot.lane.b32.xlu1 %v5823_v49, %s7251_s7 }
 0x747   :  { %v5837_v53 = vpop.permute.xlu0 %5836 }
 0x748   :  { %v5849_v29 = vsel %vm5848_vm10, %v5845_v19, %v5837_v53 }
 0x749   :  { %7117 = vmatmul.mubr.msk.f32.vlgmr.msra.gmra.mrb[120].mxu1 %vm10931_vm3, %v5849_v29 }
 0x74a   :  { %7119 = vmatprep.mubr.msk.f32.mxu1 %vm7247_vm0, %v10801_v18 }
 0x777   :  { %v5839_v31 = vpop.permute.xlu1 %5838 }
 0x778   :  { %v5850_v4 = vsel %vm5848_vm10, %v5846_v23, %v5839_v31 }
 0x779   :  { %7120 = vmatmul.mubr.msk.f32.gmra.mrb[122].mxu1 %vm10933_vm14, %v5850_v4 }
 0x77a   :  { %7122 = vmatprep.mubr.msk.f32.mxu1 %vm7247_vm0, %v10801_v18 }
 0x77b   :  { %v5829_v24 = vpop.permute.xlu1 %5828 }
 0x77c   :  { %v5847_v16 = vsel %vm530_vm1, %v10934_v59, %v5829_v24 }
 0x7a6   :  { %v5841_v27 = vpop.permute.xlu1 %5840 }
 0x7a7   :  { %v5851_v33 = vsel %vm5848_vm10, %v5847_v16, %v5841_v27 }
 0x7a8   :  { %7123 = vmatmul.mubr.msk.f32.gmra.mrb[124].mxu1 %vm10935_vm2, %v5851_v33 }
 0x7a9   :  { %7131 = vmatprep.mubr.msk.f32.mxu1 %vm7247_vm0, %v10801_v18 }
 0x81c   :  { %v5937_v2 = vpop.f32.mrb[120].mxu1 }
 0x81d   :  { %v7118_v3 = vpop.f32.mrb[121].mxu1  ;;  %v5938_v1 = vadd.f32 %v6447_v11, %v5937_v2 }
 0x84c   :  { %v5942_v36 = vpop.f32.mrb[122].mxu1 }
 0x84d   :  { %v5943_v54 = vadd.f32 %v6447_v11, %v5942_v36  ;;  %v7121_v26 = vpop.f32.mrb[123].mxu1 }
 0x84f   :  { %v7150_v13 = vpack.c.bf16 %v5943_v54, %v5938_v1 }
 0x851   :  { %7151 = vmatpush3.bf16.msra.mxu1 %v7150_v13 }
 0x852   :  { %7129 = vmatprep.subr.mxu1 %v10801_v18 }
 0x87b   :  { %v5947_v44 = vpop.f32.mrb[124].mxu1 }
 0x87c   :  { %v5948_v21 = vadd.f32 %v6447_v11, %v5947_v44  ;;  %v7124_v61 = vpop.f32.mrb[125].mxu1 }
 0x87e   :  { %7130 = vmatpush3.msra.mxu1 %v5948_v21 }
 0x87f   :  { %7132 = vmatmul.mubr.msk.f32.vlgmr.msra.gmra.mrb[126].mxu1 %vm10936_vm7, %v5951_v55  ;;  %7134 = vmatprep.subr.mxu1 %v10801_v18 }
 0x880   :  { %7135 = vmatpush3.msra.mxu1 %v6025_v58  ;;  %7136 = vmatprep.mubr.msk.f32.mxu1 %vm7247_vm0, %v10801_v18 }
 0x881   :  { %7152 = vmatprep.subr.bf16.mxu1 %v7250_v34  ;;  %v6452_v34 = vld [vmem:[%s10250_s10] ss:$0 sm:$0xff] }
 0x952   :  { %v6021_v51 = vpop.f32.mrb[126].mxu1 }
 0x953   :  { %v7133_v50 = vpop.f32.mrb[127].mxu1  ;;  %7137 = vmatmul.mubr.msk.f32.vlgmr.msra.gmra.mrb[128].mxu1 %vm530_vm1, %v6021_v51 }
 0x954   :  { %7143 = vmatprep.mubr.msk.f32.mxu1 %vm7247_vm0, %v10801_v18  ;;  %7154 = vmatpush3.bf16.msra.mxu1 %v7153_v37  ;;  %v6454_v18 = vld [vmem:[%s10252_s12] ss:$0 sm:$0xff]  ;;  %vm6189_vm0 = vcmask 9216  }
 0xa26   :  { %v6102_v6 = vpop.f32.mrb[128].mxu1 }
 0xa27   :  { %v6103_v35 = vadd.f32 %v6452_v34, %v6102_v6  ;;  %v7138_v8 = vpop.f32.mrb[129].mxu1 }
 0xa29   :  { %v6106_v63 = vmax.f32 %v6103_v35, 0.0 }
 0xa2b   :  { %7144 = vmatmul.mubr.msk.f32.vlgmr.msra.gmra.mrb[130].mxu1 %vm5848_vm10, %v6106_v63 }
 0xafe   :  { %v6185_v46 = vpop.f32.mrb[130].mxu1 }
 0xaff   :  { %v6186_v10 = vadd.f32 %v6454_v18, %v6185_v46  ;;  %v7145_v42 = vpop.f32.mrb[131].mxu1 }
 0xb01   :  { %6190 = vst.msk [vmem:[#allocation7] sm:$0x3] %vm6189_vm0, %v6186_v10 }
 0xb02   :  { %7225 = shalt.err (!%p7222_p6)
}
 0xb03   :  { %s7226_s3 = scalar_lea.hbm %s10253_s13, 32 }
 0xb04   :  { %p7227_p7 = scmp.ne.s32.totalorder %s10253_s13, %s7226_s3  ;;  %p7230_p8 = scmp.lt.u32.totalorder %s7226_s3, %s10253_s13 }
 0xb06   :  { %p7232_p9 = pnand %p7230_p8, %p7227_p7 }
 0xb08   :  { %7235 = shalt.err (!%p7232_p9)
}
 0xb09   :  { %6200 = dma.vmem_to_hbm [thread:$0]  %s6198_s18, 32, %s10253_s13, [#allocation4]  }
 0xb0a   :  { %7240 = dma.done.wait [#allocation4], 32  }
 0xb0b   :  { %7241 = vsyncadd [#allocation4], 4294967264 }
 0xb0c   :  { %6204 = vsyncpa [#allocation3], 1 }
 0xb0d   :  { %6205 = vsyncpa [#allocation6], 1 }
 0xb0e   :  { %6206 = vsyncpa [#allocation4], 1 }

</bundles_post_ra>
